<compile_context>
chip_gen: v7x
topology: tpu7x:2x2x1
jax: 0.10.0
libtpu: 0.0.40
codegen_flags: <defaults>
</compile_context>

<pallas_src>
import functools

import jax
import jax.numpy as jnp
from jax import lax
from jax.experimental import pallas as pl
from jax.experimental.pallas import tpu as pltpu

_NEG_BIG = -1e30
_LANE = 128


def _round_up(x, m):
    return ((x + m - 1) // m) * m


# ---------------------------------------------------------------------------
# Fused kernel: Initializer + main LSTM + attention + output heads + pointer
# mixture.  One grid step owns one batch block.
# ---------------------------------------------------------------------------
def _decoder_kernel(he_ref, sm_ref, ptr_ref, emb_ref, tmask_ref,
                    wih_t_ref, whh_t_ref, b_lstm_ref, w_init_t_ref, b_init_ref,
                    wa_ref, whs1_t_ref, whs2_t_ref, whs3_t_ref, bhs_ref,
                    wp_t_ref, bp_ref,
                    prob_ref, alpha_ref, ph_ref, pc_ref,
                    hd_ref, *, p_tile):
    f32, bf16 = jnp.float32, jnp.bfloat16
    he = he_ref[...]                       # (BB, S_pad, De)  bf16
    sm = sm_ref[...]                       # (BB, 1, S_pad)   f32 source mask
    emb = emb_ref[...]                     # (BB, T, E)       bf16
    tmask = tmask_ref[...]                 # (BB, T, 1)       f32 target-len mask

    BB, T, E = emb.shape
    S_pad, De = he.shape[1], he.shape[2]
    GP = whh_t_ref.shape[0]                # per-gate / state width (128-aligned)
    Dhp = wp_t_ref.shape[0]                # hidden width (128-aligned)
    P_pad = wp_t_ref.shape[1]

    # ---- Initializer: masked mean-pool (as an MXU matvec) -> tanh(Linear) ---
    denom = jnp.maximum(jnp.sum(sm, axis=2, keepdims=True), 1.0)     # (BB,1,1)
    smn = (sm / denom).astype(bf16)                                  # (BB,1,S_pad)
    pooled = jnp.einsum('bos,bsd->bod', smn, he,
                        preferred_element_type=f32).reshape(BB, De).astype(bf16)
    hc0 = jnp.tanh(jnp.dot(pooled, w_init_t_ref[...], preferred_element_type=f32)
                   + b_init_ref[...])                                # (BB, 2GP) f32
    h = hc0[:, :GP]                        # pad lanes are exactly 0 by construction
    c = hc0[:, GP:]

    # ---- main LSTM: input projection hoisted over BB*T rows; recurrence ----
    # ---- statically unrolled; each gate occupies a 128-aligned lane block ---
    emb_flat = emb.reshape(BB * T, E)
    gx = (jnp.dot(emb_flat, wih_t_ref[...], preferred_element_type=f32)
          + b_lstm_ref[...]).reshape(BB, T, 4 * GP)
    whh_t = whh_t_ref[...]
    for t in range(T):                                               # static unroll
        gates = gx[:, t, :] + jnp.dot(h.astype(bf16), whh_t,
                                      preferred_element_type=f32)    # (BB, 4GP) f32
        i_g = jax.nn.sigmoid(gates[:, 0 * GP:1 * GP])
        f_g = jax.nn.sigmoid(gates[:, 1 * GP:2 * GP])
        g_g = jnp.tanh(gates[:, 2 * GP:3 * GP])
        o_g = jax.nn.sigmoid(gates[:, 3 * GP:4 * GP])
        c_new = f_g * c + i_g * g_g
        h_new = o_g * jnp.tanh(c_new)
        m_t = tmask[:, t, :]               # (BB, 1) precomputed length mask
        hd_ref[:, t, :] = (m_t * h_new).astype(bf16)   # zero-padded outputs
        h = m_t * h_new + (1.0 - m_t) * h  # freeze state past each sequence length
        c = m_t * c_new + (1.0 - m_t) * c
    ph_ref[...] = h.reshape(BB, 1, GP)     # final state = last valid step
    pc_ref[...] = c.reshape(BB, 1, GP)

    hd_flat = hd_ref[...].reshape(BB * T, GP)          # bf16, batch-major, no interleave

    # ---- Attention (bilinear) with masked softmax over the source axis ------
    q = jnp.dot(hd_flat, wa_ref[...], preferred_element_type=f32)    # (BB*T, De)
    q3 = q.reshape(BB, T, De).astype(bf16)
    scores = jnp.einsum('btd,bsd->bts', q3, he, preferred_element_type=f32)
    scores = jnp.where(sm > 0.5, scores, _NEG_BIG)     # sm broadcasts over t
    scores = scores - jnp.max(scores, axis=-1, keepdims=True)
    es = jnp.exp(scores)
    alpha = es * pl.reciprocal(jnp.sum(es, axis=-1, keepdims=True), approx=True)
    alpha_ref[...] = alpha                                           # (BB, T, S_pad)
    alpha_b = alpha.astype(bf16)

    context = jnp.einsum('bts,bsd->btd', alpha_b, he, preferred_element_type=f32)
    ctx_flat = context.reshape(BB * T, De).astype(bf16)

    # ---- hidden + switcher heads fused into one 128-aligned matmul ----------
    g = (jnp.dot(hd_flat, whs1_t_ref[...], preferred_element_type=f32)
         + jnp.dot(ctx_flat, whs2_t_ref[...], preferred_element_type=f32)
         + jnp.dot(emb_flat, whs3_t_ref[...], preferred_element_type=f32)
         + bhs_ref[...])                                             # (BB*T, Dhp+128)
    hidden = jnp.tanh(g[:, :Dhp]).astype(bf16)         # full-width; pad cols are 0
    swb = jax.nn.sigmoid(g[:, Dhp:])                   # full-width sigmoid
    sw3 = swb[:, :1].reshape(BB, T, 1)                 # real switch in block col 0

    # ---- predict softmax over the LVT-pool-padded columns (pad logit -1e30) -
    logits = jnp.dot(hidden, wp_t_ref[...], preferred_element_type=f32) + bp_ref[...]
    logits = logits - jnp.max(logits, axis=-1, keepdims=True)
    pe = jnp.exp(logits)
    pred = (pe * pl.reciprocal(jnp.sum(pe, axis=-1, keepdims=True), approx=True)
            ).reshape(BB, T, P_pad)

    # ---- pointer copy distribution + switcher mixture, tiled over the pool --
    ptr = ptr_ref[...]                                               # (BB, 1, S_pad) int32
    one_m_sw = 1.0 - sw3
    for p0 in range(0, P_pad, p_tile):                               # static tiling
        ohT = (lax.broadcasted_iota(jnp.int32, (BB, p_tile, S_pad), 1) + p0
               == ptr).astype(bf16)                                  # (BB, p_tile, S_pad)
        copy = jnp.einsum('bts,bps->btp', alpha_b, ohT, preferred_element_type=f32)
        prob_ref[:, :, p0:p0 + p_tile] = (sw3 * pred[:, :, p0:p0 + p_tile]
                                          + one_m_sw * copy)


# ---------------------------------------------------------------------------
# Wrapper: padding / gate alignment / weight fusion glue + pallas_call plumbing
# ---------------------------------------------------------------------------
class LVTPool:
    def __init__(self, size, pointer):
        self.size = size          # pool size (int)
        self.Pointer = pointer    # (B, S) int32 indices into the pool


def _block_vmem_bytes(bb, S_pad, T, De, E, GP, Dhp, P_pad, p_tile):
    """Rough double-buffered per-block VMEM footprint (bytes)."""
    bf, f4 = 2, 4
    dsw = Dhp + _LANE
    per_block_io = (bb * S_pad * De * bf + 2 * bb * S_pad * f4 + bb * T * E * bf
                    + bb * T * f4 + bb * T * P_pad * f4 + bb * T * S_pad * f4
                    + 2 * bb * GP * f4)
    weights = ((E + GP) * 4 * GP + De * 2 * GP + GP * De
               + (GP + De + E) * dsw + Dhp * P_pad) * bf \
              + (4 * GP + 2 * GP + dsw + P_pad) * f4
    scratch = bb * T * GP * bf
    temps = (bb * T * 4 * GP * f4 + bb * p_tile * S_pad * bf + 3 * bb * T * S_pad * f4
             + 2 * bb * T * P_pad * f4 + bb * T * dsw * f4 + 2 * bb * T * De * f4)
    return 2 * per_block_io + 2 * weights + scratch + temps


def decoder_flat_lvt_forward(params, lvt, target_emb, len_target, state_below,
                             hidden_prev=None, batch_block=128, copy_p_tile=512,
                             vmem_budget_bytes=40 * 1024 * 1024):
    # TODO(synk): hidden_prev (incremental decoding) path not implemented; the
    # Initializer provides (h0, c0) exactly as in the hidden_prev=None branch.
    h_e, source_mask = state_below
    B, S, De = h_e.shape
    _, T, E = target_emb.shape
    H = params['w_hh'].shape[1]
    Dh = params['w_hidden'].shape[0]
    V = params['w_predict'].shape[0]
    P = lvt.size
    assert P >= V, "LVT pool must be at least the predict vocab size"

    f32, bf16 = jnp.float32, jnp.bfloat16
    S_pad = _round_up(S, _LANE)
    P_pad = _round_up(max(P, V), _LANE)
    GP = _round_up(H, _LANE)               # per-gate / state lane width
    Dhp = _round_up(Dh, _LANE)             # hidden head lane width
    DSW = Dhp + _LANE                      # fused [hidden | switch] width

    # Pool-axis tile for the one-hot copy matmul (multiple of 128, divides P_pad).
    p_tile = max(_LANE, (min(copy_p_tile, P_pad) // _LANE) * _LANE)
    while P_pad % p_tile != 0:
        p_tile -= _LANE

    # Batch block: largest divisor of B that fits the VMEM budget, then shrunk
    # so nb >= 2 (v7x megacore sharding of the "parallel" axis + pipelining).
    divisors = [d for d in range(1, B + 1) if B % d == 0]
    cands = [d for d in divisors
             if d <= batch_block
             and _block_vmem_bytes(d, S_pad, T, De, E, GP, Dhp, P_pad, p_tile)
             <= vmem_budget_bytes] or [1]
    BB = max(cands)
    if B // BB < 2 and B > 1:
        smaller = [d for d in cands if d <= BB // 2] or [d for d in divisors if d < BB]
        if smaller:
            BB = max(smaller)
    nb = B // BB

    # ---- activations: bf16 MXU operands, lane-dense masks/pointer -----------
    he_p = jnp.pad(h_e, ((0, 0), (0, S_pad - S), (0, 0))).astype(bf16)
    sm_p = jnp.pad(source_mask.astype(f32), ((0, 0), (0, S_pad - S))
                   ).reshape(B, 1, S_pad)
    ptr_p = jnp.pad(lvt.Pointer.astype(jnp.int32), ((0, 0), (0, S_pad - S)),
                    constant_values=P_pad).reshape(B, 1, S_pad)  # pad -> no pool hit
    emb_b = target_emb.astype(bf16)
    tmask = (jnp.arange(T, dtype=jnp.int32)[None, :]
             < len_target.astype(jnp.int32)[:, None]).astype(f32).reshape(B, T, 1)

    # ---- weights: [in, out] layout, gate/head blocks padded to 128 lanes ----
    wih_t = jnp.zeros((E, 4 * GP), f32)
    whh_t = jnp.zeros((GP, 4 * GP), f32)
    b_lstm = jnp.zeros((1, 4 * GP), f32)
    for k in range(4):                      # PyTorch gate order: i, f, g, o
        wih_t = wih_t.at[:, k * GP:k * GP + H].set(params['w_ih'][k * H:(k + 1) * H, :].T)
        whh_t = whh_t.at[:H, k * GP:k * GP + H].set(params['w_hh'][k * H:(k + 1) * H, :].T)
        b_lstm = b_lstm.at[0, k * GP:k * GP + H].set(params['b_lstm'][k * H:(k + 1) * H])
    wih_t, whh_t = wih_t.astype(bf16), whh_t.astype(bf16)

    w_init_t = jnp.zeros((De, 2 * GP), f32)
    w_init_t = w_init_t.at[:, :H].set(params['w_init_h'].T)
    w_init_t = w_init_t.at[:, GP:GP + H].set(params['w_init_c'].T)
    w_init_t = w_init_t.astype(bf16)
    b_init = jnp.zeros((1, 2 * GP), f32)
    b_init = b_init.at[0, :H].set(params['b_init_h'])
    b_init = b_init.at[0, GP:GP + H].set(params['b_init_c'])

    wa_pad = jnp.zeros((GP, De), f32).at[:H, :].set(params['w_attn']).astype(bf16)

    wh = params['w_hidden']                 # (Dh, H+De)
    ws = params['w_switch']                 # (1, H+De+E)
    whs1_t = jnp.zeros((GP, DSW), f32)
    whs1_t = whs1_t.at[:H, :Dh].set(wh[:, :H].T)
    whs1_t = whs1_t.at[:H, Dhp].set(ws[0, :H])
    whs2_t = jnp.zeros((De, DSW), f32)
    whs2_t = whs2_t.at[:, :Dh].set(wh[:, H:H + De].T)
    whs2_t = whs2_t.at[:, Dhp].set(ws[0, H:H + De])
    whs3_t = jnp.zeros((E, DSW), f32).at[:, Dhp].set(ws[0, H + De:])
    whs1_t, whs2_t, whs3_t = whs1_t.astype(bf16), whs2_t.astype(bf16), whs3_t.astype(bf16)
    bhs = jnp.zeros((1, DSW), f32)
    bhs = bhs.at[0, :Dh].set(params['b_hidden'])
    bhs = bhs.at[0, Dhp].set(params['b_switch'][0])

    wp_t = jnp.zeros((Dhp, P_pad), f32).at[:Dh, :V].set(params['w_predict'].T).astype(bf16)
    bp = jnp.full((1, P_pad), _NEG_BIG, f32).at[0, :V].set(params['b_predict'])

    # ---- BlockSpecs ----------------------------------------------------------
    def bspec(shape):
        blk = (BB,) + tuple(shape[1:])
        nd = len(shape)
        return pl.BlockSpec(blk, lambda i, _nd=nd: (i,) + (0,) * (_nd - 1))

    def wspec(shape):
        nd = len(shape)
        return pl.BlockSpec(tuple(shape), lambda i, _nd=nd: (0,) * _nd)

    # ---- advisory cost estimate ---------------------------------------------
    flops = 2 * B * (S_pad * De + De * 2 * GP
                     + T * E * 4 * GP + T * GP * 4 * GP
                     + T * GP * De + 2 * T * S_pad * De
                     + T * (GP + De + E) * DSW
                     + T * Dhp * P_pad + T * S_pad * P_pad)
    transcendentals = B * (2 * GP + T * (5 * GP + S_pad + P_pad + DSW))
    bytes_accessed = (B * (S_pad * De * 2 + 2 * S_pad * 4 + T * E * 2 + T * 4
                           + T * P_pad * 4 + T * S_pad * 4 + 2 * GP * 4)
                      + ((E + GP) * 4 * GP + De * 2 * GP + GP * De
                         + (GP + De + E) * DSW + Dhp * P_pad) * 2
                      + (4 * GP + 2 * GP + DSW + P_pad) * 4)
    cost = pl.CostEstimate(flops=int(flops), transcendentals=int(transcendentals),
                           bytes_accessed=int(bytes_accessed))

    kernel = functools.partial(_decoder_kernel, p_tile=p_tile)

    prob_p, alpha_p, ph_p, pc_p = pl.pallas_call(
        kernel,
        grid=(nb,),
        in_specs=[bspec(he_p.shape), bspec(sm_p.shape), bspec(ptr_p.shape),
                  bspec(emb_b.shape), bspec(tmask.shape),
                  wspec(wih_t.shape), wspec(whh_t.shape), wspec(b_lstm.shape),
                  wspec(w_init_t.shape), wspec(b_init.shape), wspec(wa_pad.shape),
                  wspec(whs1_t.shape), wspec(whs2_t.shape), wspec(whs3_t.shape),
                  wspec(bhs.shape), wspec(wp_t.shape), wspec(bp.shape)],
        out_specs=[bspec((B, T, P_pad)), bspec((B, T, S_pad)),
                   bspec((B, 1, GP)), bspec((B, 1, GP))],
        out_shape=[jax.ShapeDtypeStruct((B, T, P_pad), f32),
                   jax.ShapeDtypeStruct((B, T, S_pad), f32),
                   jax.ShapeDtypeStruct((B, 1, GP), f32),
                   jax.ShapeDtypeStruct((B, 1, GP), f32)],
        scratch_shapes=[pltpu.VMEM((BB, T, GP), jnp.bfloat16)],
        compiler_params=pltpu.CompilerParams(
            dimension_semantics=("parallel",),
            vmem_limit_bytes=64 * 1024 * 1024),
        cost_estimate=cost,
    )(he_p, sm_p, ptr_p, emb_b, tmask,
      wih_t, whh_t, b_lstm, w_init_t, b_init, wa_pad,
      whs1_t, whs2_t, whs3_t, bhs, wp_t, bp)

    prob = prob_p[:, :, :P]        # strip lane padding outside the kernel
    alpha = alpha_p[:, :, :S]
    ph = ph_p[:, 0, :H].reshape(1, B, H)   # nn.LSTM convention: (num_layers=1, B, H)
    pc = pc_p[:, 0, :H].reshape(1, B, H)
    return ([prob, alpha], [ph, pc])


if __name__ == "__main__":
    B, S, T = 4, 10, 8           # batch, source length, target length
    De, E, H = 32, 16, 32        # encoder hidden, target-emb dim, decoder hidden
    Dh, V, P = 32, 32, 40        # hidden-layer dim, predict vocab, LVT pool size

    key = jax.random.PRNGKey(0)
    ks = jax.random.split(key, 16)
    sc = 0.1
    params = {
        'w_ih': sc * jax.random.normal(ks[0], (4 * H, E), jnp.float32),
        'w_hh': sc * jax.random.normal(ks[1], (4 * H, H), jnp.float32),
        'b_lstm': sc * jax.random.normal(ks[2], (4 * H,), jnp.float32),
        'w_init_h': sc * jax.random.normal(ks[3], (H, De), jnp.float32),
        'b_init_h': jnp.zeros((H,), jnp.float32),
        'w_init_c': sc * jax.random.normal(ks[4], (H, De), jnp.float32),
        'b_init_c': jnp.zeros((H,), jnp.float32),
        'w_attn': sc * jax.random.normal(ks[5], (H, De), jnp.float32),
        'w_hidden': sc * jax.random.normal(ks[6], (Dh, H + De), jnp.float32),
        'b_hidden': jnp.zeros((Dh,), jnp.float32),
        'w_predict': sc * jax.random.normal(ks[7], (V, Dh), jnp.float32),
        'b_predict': jnp.zeros((V,), jnp.float32),
        'w_switch': sc * jax.random.normal(ks[8], (1, H + De + E), jnp.float32),
        'b_switch': jnp.zeros((1,), jnp.float32),
    }

    h_e = jax.random.normal(ks[9], (B, S, De), jnp.float32)
    src_len = jnp.array([S, 5, 8, S], jnp.int32)
    source_mask = (jnp.arange(S)[None, :] < src_len[:, None]).astype(jnp.float32)
    target_emb = jax.random.normal(ks[10], (B, T, E), jnp.float32)
    len_target = jnp.array([T, 6, 7, 3], jnp.int32)
    pointer = jax.random.randint(ks[11], (B, S), 0, P, jnp.int32)
    lvt = LVTPool(P, pointer)

    (prob, alpha), (ph_d, pc_d) = decoder_flat_lvt_forward(
        params, lvt, target_emb, len_target, (h_e, source_mask), hidden_prev=None)
    jax.block_until_ready((prob, alpha, ph_d, pc_d))

    assert prob.shape == (B, T, P) and alpha.shape == (B, T, S)
    assert ph_d.shape == (1, B, H) and pc_d.shape == (1, B, H)
    assert bool(jnp.all(jnp.isfinite(prob))) and bool(jnp.all(jnp.isfinite(alpha)))
    assert bool(jnp.all(jnp.isfinite(ph_d))) and bool(jnp.all(jnp.isfinite(pc_d)))
    # prob rows mix two (approx-reciprocal) softmaxes -> should sum to ~1.
    row_sums = jnp.sum(prob, axis=-1)
    assert bool(jnp.all(jnp.abs(row_sums - 1.0) < 5e-2))
    print("KERNEL_OK")
</pallas_src>

<mosaic_0001>
module attributes {stable_mosaic.version = 11 : i64} {
  func.func @_decoder_kernel(%arg0: i32, %arg1: memref<2x128x32xbf16, #tpu.memory_space<vmem>>, %arg2: memref<2x1x128xf32, #tpu.memory_space<vmem>>, %arg3: memref<2x1x128xi32, #tpu.memory_space<vmem>>, %arg4: memref<2x8x16xbf16, #tpu.memory_space<vmem>>, %arg5: memref<2x8x1xf32, #tpu.memory_space<vmem>>, %arg6: memref<16x512xbf16, #tpu.memory_space<vmem>>, %arg7: memref<128x512xbf16, #tpu.memory_space<vmem>>, %arg8: memref<1x512xf32, #tpu.memory_space<vmem>>, %arg9: memref<32x256xbf16, #tpu.memory_space<vmem>>, %arg10: memref<1x256xf32, #tpu.memory_space<vmem>>, %arg11: memref<128x32xbf16, #tpu.memory_space<vmem>>, %arg12: memref<128x256xbf16, #tpu.memory_space<vmem>>, %arg13: memref<32x256xbf16, #tpu.memory_space<vmem>>, %arg14: memref<16x256xbf16, #tpu.memory_space<vmem>>, %arg15: memref<1x256xf32, #tpu.memory_space<vmem>>, %arg16: memref<128x128xbf16, #tpu.memory_space<vmem>>, %arg17: memref<1x128xf32, #tpu.memory_space<vmem>>, %arg18: memref<2x8x128xf32, #tpu.memory_space<vmem>>, %arg19: memref<2x8x128xf32, #tpu.memory_space<vmem>>, %arg20: memref<2x1x128xf32, #tpu.memory_space<vmem>>, %arg21: memref<2x1x128xf32, #tpu.memory_space<vmem>>, %arg22: memref<2x8x128xbf16, #tpu.memory_space<vmem>>) attributes {dimension_semantics = [#tpu.dimension_semantics<parallel>], iteration_bounds = array<i64: 2>, scalar_prefetch = 0 : i64, scratch_operands = 1 : i64, tpu.core_type = #tpu.core_type<tc>, window_params = [{transform_indices = @transform_0, window_bounds = array<i64: 2, 128, 32>}, {transform_indices = @transform_1, window_bounds = array<i64: 2, 1, 128>}, {transform_indices = @transform_2, window_bounds = array<i64: 2, 1, 128>}, {transform_indices = @transform_3, window_bounds = array<i64: 2, 8, 16>}, {transform_indices = @transform_4, window_bounds = array<i64: 2, 8, 1>}, {pipeline_mode = #tpu.pipeline_mode<synchronous>, transform_indices = @transform_5, window_bounds = array<i64: 16, 512>}, {pipeline_mode = #tpu.pipeline_mode<synchronous>, transform_indices = @transform_6, window_bounds = array<i64: 128, 512>}, {pipeline_mode = #tpu.pipeline_mode<synchronous>, transform_indices = @transform_7, window_bounds = array<i64: 1, 512>}, {pipeline_mode = #tpu.pipeline_mode<synchronous>, transform_indices = @transform_8, window_bounds = array<i64: 32, 256>}, {pipeline_mode = #tpu.pipeline_mode<synchronous>, transform_indices = @transform_9, window_bounds = array<i64: 1, 256>}, {pipeline_mode = #tpu.pipeline_mode<synchronous>, transform_indices = @transform_10, window_bounds = array<i64: 128, 32>}, {pipeline_mode = #tpu.pipeline_mode<synchronous>, transform_indices = @transform_11, window_bounds = array<i64: 128, 256>}, {pipeline_mode = #tpu.pipeline_mode<synchronous>, transform_indices = @transform_12, window_bounds = array<i64: 32, 256>}, {pipeline_mode = #tpu.pipeline_mode<synchronous>, transform_indices = @transform_13, window_bounds = array<i64: 16, 256>}, {pipeline_mode = #tpu.pipeline_mode<synchronous>, transform_indices = @transform_14, window_bounds = array<i64: 1, 256>}, {pipeline_mode = #tpu.pipeline_mode<synchronous>, transform_indices = @transform_15, window_bounds = array<i64: 128, 128>}, {pipeline_mode = #tpu.pipeline_mode<synchronous>, transform_indices = @transform_16, window_bounds = array<i64: 1, 128>}, {transform_indices = @transform_17, window_bounds = array<i64: 2, 8, 128>}, {transform_indices = @transform_18, window_bounds = array<i64: 2, 8, 128>}, {transform_indices = @transform_19, window_bounds = array<i64: 2, 1, 128>}, {transform_indices = @transform_20, window_bounds = array<i64: 2, 1, 128>}]} {
    %c0 = arith.constant 0 : index
    %c0_0 = arith.constant 0 : index
    %c0_1 = arith.constant 0 : index
    %0 = vector.load %arg1[%c0, %c0_0, %c0_1] : memref<2x128x32xbf16, #tpu.memory_space<vmem>>, vector<2x128x32xbf16>
    %c0_2 = arith.constant 0 : index
    %c0_3 = arith.constant 0 : index
    %c0_4 = arith.constant 0 : index
    %1 = vector.load %arg2[%c0_2, %c0_3, %c0_4] : memref<2x1x128xf32, #tpu.memory_space<vmem>>, vector<2x1x128xf32>
    %c0_5 = arith.constant 0 : index
    %c0_6 = arith.constant 0 : index
    %c0_7 = arith.constant 0 : index
    %2 = vector.load %arg4[%c0_5, %c0_6, %c0_7] : memref<2x8x16xbf16, #tpu.memory_space<vmem>>, vector<2x8x16xbf16>
    %c0_8 = arith.constant 0 : index
    %c0_9 = arith.constant 0 : index
    %c0_10 = arith.constant 0 : index
    %3 = vector.load %arg5[%c0_8, %c0_9, %c0_10] : memref<2x8x1xf32, #tpu.memory_space<vmem>>, vector<2x8x1xf32>
    %cst = arith.constant dense<0.000000e+00> : vector<2x1xf32>
    %4 = vector.multi_reduction <add>, %1, %cst [2] : vector<2x1x128xf32> to vector<2x1xf32>
    %5 = vector.shape_cast %4 : vector<2x1xf32> to vector<2x1x1xf32>
    %cst_11 = arith.constant 1.000000e+00 : f32
    %6 = vector.broadcast %cst_11 : f32 to vector<2x1x1xf32>
    %7 = arith.maximumf %5, %6 : vector<2x1x1xf32>
    %8 = vector.broadcast %7 : vector<2x1x1xf32> to vector<2x1x128xf32>
    %9 = arith.divf %1, %8 : vector<2x1x128xf32>
    %10 = arith.truncf %9 : vector<2x1x128xf32> to vector<2x1x128xbf16>
    "tpu.trace_start"() <{level = 10 : i32, message = "bos,bsd->bod"}> : () -> ()
    %cst_12 = arith.constant dense<0.000000e+00> : vector<2x1x32xf32>
    %11 = tpu.matmul %10, %0, %cst_12 {dimension_numbers = #tpu.dot_dimension_numbers<[2], [1], [1], [2], [0, 0, 0, 1, 1, 2], [0], [0]>} : vector<2x1x128xbf16>, vector<2x128x32xbf16>, vector<2x1x32xf32> -> vector<2x1x32xf32>
    "tpu.trace_stop"() : () -> ()
    %12 = vector.shape_cast %11 : vector<2x1x32xf32> to vector<2x32xf32>
    %13 = arith.truncf %12 : vector<2x32xf32> to vector<2x32xbf16>
    %c0_13 = arith.constant 0 : index
    %c0_14 = arith.constant 0 : index
    %14 = vector.load %arg9[%c0_13, %c0_14] : memref<32x256xbf16, #tpu.memory_space<vmem>>, vector<32x256xbf16>
    %cst_15 = arith.constant dense<0.000000e+00> : vector<2x256xf32>
    %15 = tpu.matmul %13, %14, %cst_15 {dimension_numbers = #tpu.dot_dimension_numbers<[1], [0], [0], [1], [0, 0, 1, 1], [], []>} : vector<2x32xbf16>, vector<32x256xbf16>, vector<2x256xf32> -> vector<2x256xf32>
    %c0_16 = arith.constant 0 : index
    %c0_17 = arith.constant 0 : index
    %16 = vector.load %arg10[%c0_16, %c0_17] : memref<1x256xf32, #tpu.memory_space<vmem>>, vector<1x256xf32>
    %17 = vector.broadcast %16 : vector<1x256xf32> to vector<2x256xf32>
    %18 = arith.addf %15, %17 : vector<2x256xf32>
    %19 = math.tanh %18 : vector<2x256xf32>
    %20 = vector.extract_strided_slice %19 {offsets = [0, 0], sizes = [2, 128], strides = [1, 1]} : vector<2x256xf32> to vector<2x128xf32>
    %21 = vector.extract_strided_slice %19 {offsets = [0, 128], sizes = [2, 128], strides = [1, 1]} : vector<2x256xf32> to vector<2x128xf32>
    %22 = vector.shape_cast %2 : vector<2x8x16xbf16> to vector<16x16xbf16>
    %c0_18 = arith.constant 0 : index
    %c0_19 = arith.constant 0 : index
    %23 = vector.load %arg6[%c0_18, %c0_19] : memref<16x512xbf16, #tpu.memory_space<vmem>>, vector<16x512xbf16>
    %cst_20 = arith.constant dense<0.000000e+00> : vector<16x512xf32>
    %24 = tpu.matmul %22, %23, %cst_20 {dimension_numbers = #tpu.dot_dimension_numbers<[1], [0], [0], [1], [0, 0, 1, 1], [], []>} : vector<16x16xbf16>, vector<16x512xbf16>, vector<16x512xf32> -> vector<16x512xf32>
    %c0_21 = arith.constant 0 : index
    %c0_22 = arith.constant 0 : index
    %25 = vector.load %arg8[%c0_21, %c0_22] : memref<1x512xf32, #tpu.memory_space<vmem>>, vector<1x512xf32>
    %26 = vector.broadcast %25 : vector<1x512xf32> to vector<16x512xf32>
    %27 = arith.addf %24, %26 : vector<16x512xf32>
    %28 = vector.shape_cast %27 : vector<16x512xf32> to vector<2x8x512xf32>
    %c0_23 = arith.constant 0 : index
    %c0_24 = arith.constant 0 : index
    %29 = vector.load %arg7[%c0_23, %c0_24] : memref<128x512xbf16, #tpu.memory_space<vmem>>, vector<128x512xbf16>
    %30 = vector.extract_strided_slice %28 {offsets = [0, 0, 0], sizes = [2, 1, 512], strides = [1, 1, 1]} : vector<2x8x512xf32> to vector<2x1x512xf32>
    %31 = vector.shape_cast %30 : vector<2x1x512xf32> to vector<2x512xf32>
    %32 = arith.truncf %20 : vector<2x128xf32> to vector<2x128xbf16>
    %cst_25 = arith.constant dense<0.000000e+00> : vector<2x512xf32>
    %33 = tpu.matmul %32, %29, %cst_25 {dimension_numbers = #tpu.dot_dimension_numbers<[1], [0], [0], [1], [0, 0, 1, 1], [], []>} : vector<2x128xbf16>, vector<128x512xbf16>, vector<2x512xf32> -> vector<2x512xf32>
    %34 = arith.addf %31, %33 : vector<2x512xf32>
    %35 = vector.extract_strided_slice %34 {offsets = [0, 0], sizes = [2, 128], strides = [1, 1]} : vector<2x512xf32> to vector<2x128xf32>
    %36 = arith.negf %35 : vector<2x128xf32>
    %37 = math.exp %36 : vector<2x128xf32>
    %cst_26 = arith.constant 1.000000e+00 : f32
    %38 = vector.broadcast %cst_26 : f32 to vector<2x128xf32>
    %39 = arith.addf %38, %37 : vector<2x128xf32>
    %40 = arith.divf %38, %39 : vector<2x128xf32>
    %41 = vector.extract_strided_slice %34 {offsets = [0, 128], sizes = [2, 128], strides = [1, 1]} : vector<2x512xf32> to vector<2x128xf32>
    %42 = arith.negf %41 : vector<2x128xf32>
    %43 = math.exp %42 : vector<2x128xf32>
    %cst_27 = arith.constant 1.000000e+00 : f32
    %44 = vector.broadcast %cst_27 : f32 to vector<2x128xf32>
    %45 = arith.addf %44, %43 : vector<2x128xf32>
    %46 = arith.divf %44, %45 : vector<2x128xf32>
    %47 = vector.extract_strided_slice %34 {offsets = [0, 256], sizes = [2, 128], strides = [1, 1]} : vector<2x512xf32> to vector<2x128xf32>
    %48 = math.tanh %47 : vector<2x128xf32>
    %49 = vector.extract_strided_slice %34 {offsets = [0, 384], sizes = [2, 128], strides = [1, 1]} : vector<2x512xf32> to vector<2x128xf32>
    %50 = arith.negf %49 : vector<2x128xf32>
    %51 = math.exp %50 : vector<2x128xf32>
    %cst_28 = arith.constant 1.000000e+00 : f32
    %52 = vector.broadcast %cst_28 : f32 to vector<2x128xf32>
    %53 = arith.addf %52, %51 : vector<2x128xf32>
    %54 = arith.divf %52, %53 : vector<2x128xf32>
    %55 = arith.mulf %46, %21 : vector<2x128xf32>
    %56 = arith.mulf %40, %48 : vector<2x128xf32>
    %57 = arith.addf %55, %56 : vector<2x128xf32>
    %58 = math.tanh %57 : vector<2x128xf32>
    %59 = arith.mulf %54, %58 : vector<2x128xf32>
    %60 = vector.extract_strided_slice %3 {offsets = [0, 0, 0], sizes = [2, 1, 1], strides = [1, 1, 1]} : vector<2x8x1xf32> to vector<2x1x1xf32>
    %61 = vector.shape_cast %60 : vector<2x1x1xf32> to vector<2x1xf32>
    %62 = vector.broadcast %61 : vector<2x1xf32> to vector<2x128xf32>
    %63 = arith.mulf %62, %59 : vector<2x128xf32>
    %64 = arith.truncf %63 : vector<2x128xf32> to vector<2x128xbf16>
    %c0_29 = arith.constant 0 : index
    %c0_30 = arith.constant 0 : index
    %c0_31 = arith.constant 0 : index
    %65 = vector.load %arg22[%c0_29, %c0_30, %c0_31] : memref<2x8x128xbf16, #tpu.memory_space<vmem>>, vector<2x1x128xbf16>
    %66 = vector.shape_cast %65 : vector<2x1x128xbf16> to vector<2x128xbf16>
    %67 = vector.shape_cast %64 : vector<2x128xbf16> to vector<2x1x128xbf16>
    tpu.vector_store %arg22[%c0_29, %c0_30, %c0_31], %67 {strides = array<i32>} : memref<2x8x128xbf16, #tpu.memory_space<vmem>>, vector<2x1x128xbf16>,
    %68 = vector.broadcast %61 : vector<2x1xf32> to vector<2x128xf32>
    %69 = arith.mulf %68, %59 : vector<2x128xf32>
    %cst_32 = arith.constant 1.000000e+00 : f32
    %70 = vector.broadcast %cst_32 : f32 to vector<2x1xf32>
    %71 = arith.subf %70, %61 : vector<2x1xf32>
    %72 = vector.broadcast %71 : vector<2x1xf32> to vector<2x128xf32>
    %73 = arith.mulf %72, %20 : vector<2x128xf32>
    %74 = arith.addf %69, %73 : vector<2x128xf32>
    %75 = vector.broadcast %61 : vector<2x1xf32> to vector<2x128xf32>
    %76 = arith.mulf %75, %57 : vector<2x128xf32>
    %cst_33 = arith.constant 1.000000e+00 : f32
    %77 = vector.broadcast %cst_33 : f32 to vector<2x1xf32>
    %78 = arith.subf %77, %61 : vector<2x1xf32>
    %79 = vector.broadcast %78 : vector<2x1xf32> to vector<2x128xf32>
    %80 = arith.mulf %79, %21 : vector<2x128xf32>
    %81 = arith.addf %76, %80 : vector<2x128xf32>
    %82 = vector.extract_strided_slice %28 {offsets = [0, 1, 0], sizes = [2, 1, 512], strides = [1, 1, 1]} : vector<2x8x512xf32> to vector<2x1x512xf32>
    %83 = vector.shape_cast %82 : vector<2x1x512xf32> to vector<2x512xf32>
    %84 = arith.truncf %74 : vector<2x128xf32> to vector<2x128xbf16>
    %cst_34 = arith.constant dense<0.000000e+00> : vector<2x512xf32>
    %85 = tpu.matmul %84, %29, %cst_34 {dimension_numbers = #tpu.dot_dimension_numbers<[1], [0], [0], [1], [0, 0, 1, 1], [], []>} : vector<2x128xbf16>, vector<128x512xbf16>, vector<2x512xf32> -> vector<2x512xf32>
    %86 = arith.addf %83, %85 : vector<2x512xf32>
    %87 = vector.extract_strided_slice %86 {offsets = [0, 0], sizes = [2, 128], strides = [1, 1]} : vector<2x512xf32> to vector<2x128xf32>
    %88 = arith.negf %87 : vector<2x128xf32>
    %89 = math.exp %88 : vector<2x128xf32>
    %cst_35 = arith.constant 1.000000e+00 : f32
    %90 = vector.broadcast %cst_35 : f32 to vector<2x128xf32>
    %91 = arith.addf %90, %89 : vector<2x128xf32>
    %92 = arith.divf %90, %91 : vector<2x128xf32>
    %93 = vector.extract_strided_slice %86 {offsets = [0, 128], sizes = [2, 128], strides = [1, 1]} : vector<2x512xf32> to vector<2x128xf32>
    %94 = arith.negf %93 : vector<2x128xf32>
    %95 = math.exp %94 : vector<2x128xf32>
    %cst_36 = arith.constant 1.000000e+00 : f32
    %96 = vector.broadcast %cst_36 : f32 to vector<2x128xf32>
    %97 = arith.addf %96, %95 : vector<2x128xf32>
    %98 = arith.divf %96, %97 : vector<2x128xf32>
    %99 = vector.extract_strided_slice %86 {offsets = [0, 256], sizes = [2, 128], strides = [1, 1]} : vector<2x512xf32> to vector<2x128xf32>
    %100 = math.tanh %99 : vector<2x128xf32>
    %101 = vector.extract_strided_slice %86 {offsets = [0, 384], sizes = [2, 128], strides = [1, 1]} : vector<2x512xf32> to vector<2x128xf32>
    %102 = arith.negf %101 : vector<2x128xf32>
    %103 = math.exp %102 : vector<2x128xf32>
    %cst_37 = arith.constant 1.000000e+00 : f32
    %104 = vector.broadcast %cst_37 : f32 to vector<2x128xf32>
    %105 = arith.addf %104, %103 : vector<2x128xf32>
    %106 = arith.divf %104, %105 : vector<2x128xf32>
    %107 = arith.mulf %98, %81 : vector<2x128xf32>
    %108 = arith.mulf %92, %100 : vector<2x128xf32>
    %109 = arith.addf %107, %108 : vector<2x128xf32>
    %110 = math.tanh %109 : vector<2x128xf32>
    %111 = arith.mulf %106, %110 : vector<2x128xf32>
    %112 = vector.extract_strided_slice %3 {offsets = [0, 1, 0], sizes = [2, 1, 1], strides = [1, 1, 1]} : vector<2x8x1xf32> to vector<2x1x1xf32>
    %113 = vector.shape_cast %112 : vector<2x1x1xf32> to vector<2x1xf32>
    %114 = vector.broadcast %113 : vector<2x1xf32> to vector<2x128xf32>
    %115 = arith.mulf %114, %111 : vector<2x128xf32>
    %116 = arith.truncf %115 : vector<2x128xf32> to vector<2x128xbf16>
    %c0_38 = arith.constant 0 : index
    %c1 = arith.constant 1 : index
    %c0_39 = arith.constant 0 : index
    %117 = vector.load %arg22[%c0_38, %c1, %c0_39] : memref<2x8x128xbf16, #tpu.memory_space<vmem>>, vector<2x1x128xbf16>
    %118 = vector.shape_cast %117 : vector<2x1x128xbf16> to vector<2x128xbf16>
    %119 = vector.shape_cast %116 : vector<2x128xbf16> to vector<2x1x128xbf16>
    tpu.vector_store %arg22[%c0_38, %c1, %c0_39], %119 {strides = array<i32>} : memref<2x8x128xbf16, #tpu.memory_space<vmem>>, vector<2x1x128xbf16>,
    %120 = vector.broadcast %113 : vector<2x1xf32> to vector<2x128xf32>
    %121 = arith.mulf %120, %111 : vector<2x128xf32>
    %cst_40 = arith.constant 1.000000e+00 : f32
    %122 = vector.broadcast %cst_40 : f32 to vector<2x1xf32>
    %123 = arith.subf %122, %113 : vector<2x1xf32>
    %124 = vector.broadcast %123 : vector<2x1xf32> to vector<2x128xf32>
    %125 = arith.mulf %124, %74 : vector<2x128xf32>
    %126 = arith.addf %121, %125 : vector<2x128xf32>
    %127 = vector.broadcast %113 : vector<2x1xf32> to vector<2x128xf32>
    %128 = arith.mulf %127, %109 : vector<2x128xf32>
    %cst_41 = arith.constant 1.000000e+00 : f32
    %129 = vector.broadcast %cst_41 : f32 to vector<2x1xf32>
    %130 = arith.subf %129, %113 : vector<2x1xf32>
    %131 = vector.broadcast %130 : vector<2x1xf32> to vector<2x128xf32>
    %132 = arith.mulf %131, %81 : vector<2x128xf32>
    %133 = arith.addf %128, %132 : vector<2x128xf32>
    %134 = vector.extract_strided_slice %28 {offsets = [0, 2, 0], sizes = [2, 1, 512], strides = [1, 1, 1]} : vector<2x8x512xf32> to vector<2x1x512xf32>
    %135 = vector.shape_cast %134 : vector<2x1x512xf32> to vector<2x512xf32>
    %136 = arith.truncf %126 : vector<2x128xf32> to vector<2x128xbf16>
    %cst_42 = arith.constant dense<0.000000e+00> : vector<2x512xf32>
    %137 = tpu.matmul %136, %29, %cst_42 {dimension_numbers = #tpu.dot_dimension_numbers<[1], [0], [0], [1], [0, 0, 1, 1], [], []>} : vector<2x128xbf16>, vector<128x512xbf16>, vector<2x512xf32> -> vector<2x512xf32>
    %138 = arith.addf %135, %137 : vector<2x512xf32>
    %139 = vector.extract_strided_slice %138 {offsets = [0, 0], sizes = [2, 128], strides = [1, 1]} : vector<2x512xf32> to vector<2x128xf32>
    %140 = arith.negf %139 : vector<2x128xf32>
    %141 = math.exp %140 : vector<2x128xf32>
    %cst_43 = arith.constant 1.000000e+00 : f32
    %142 = vector.broadcast %cst_43 : f32 to vector<2x128xf32>
    %143 = arith.addf %142, %141 : vector<2x128xf32>
    %144 = arith.divf %142, %143 : vector<2x128xf32>
    %145 = vector.extract_strided_slice %138 {offsets = [0, 128], sizes = [2, 128], strides = [1, 1]} : vector<2x512xf32> to vector<2x128xf32>
    %146 = arith.negf %145 : vector<2x128xf32>
    %147 = math.exp %146 : vector<2x128xf32>
    %cst_44 = arith.constant 1.000000e+00 : f32
    %148 = vector.broadcast %cst_44 : f32 to vector<2x128xf32>
    %149 = arith.addf %148, %147 : vector<2x128xf32>
    %150 = arith.divf %148, %149 : vector<2x128xf32>
    %151 = vector.extract_strided_slice %138 {offsets = [0, 256], sizes = [2, 128], strides = [1, 1]} : vector<2x512xf32> to vector<2x128xf32>
    %152 = math.tanh %151 : vector<2x128xf32>
    %153 = vector.extract_strided_slice %138 {offsets = [0, 384], sizes = [2, 128], strides = [1, 1]} : vector<2x512xf32> to vector<2x128xf32>
    %154 = arith.negf %153 : vector<2x128xf32>
    %155 = math.exp %154 : vector<2x128xf32>
    %cst_45 = arith.constant 1.000000e+00 : f32
    %156 = vector.broadcast %cst_45 : f32 to vector<2x128xf32>
    %157 = arith.addf %156, %155 : vector<2x128xf32>
    %158 = arith.divf %156, %157 : vector<2x128xf32>
    %159 = arith.mulf %150, %133 : vector<2x128xf32>
    %160 = arith.mulf %144, %152 : vector<2x128xf32>
    %161 = arith.addf %159, %160 : vector<2x128xf32>
    %162 = math.tanh %161 : vector<2x128xf32>
    %163 = arith.mulf %158, %162 : vector<2x128xf32>
    %164 = vector.extract_strided_slice %3 {offsets = [0, 2, 0], sizes = [2, 1, 1], strides = [1, 1, 1]} : vector<2x8x1xf32> to vector<2x1x1xf32>
    %165 = vector.shape_cast %164 : vector<2x1x1xf32> to vector<2x1xf32>
    %166 = vector.broadcast %165 : vector<2x1xf32> to vector<2x128xf32>
    %167 = arith.mulf %166, %163 : vector<2x128xf32>
    %168 = arith.truncf %167 : vector<2x128xf32> to vector<2x128xbf16>
    %c0_46 = arith.constant 0 : index
    %c2 = arith.constant 2 : index
    %c0_47 = arith.constant 0 : index
    %169 = vector.load %arg22[%c0_46, %c2, %c0_47] : memref<2x8x128xbf16, #tpu.memory_space<vmem>>, vector<2x1x128xbf16>
    %170 = vector.shape_cast %169 : vector<2x1x128xbf16> to vector<2x128xbf16>
    %171 = vector.shape_cast %168 : vector<2x128xbf16> to vector<2x1x128xbf16>
    tpu.vector_store %arg22[%c0_46, %c2, %c0_47], %171 {strides = array<i32>} : memref<2x8x128xbf16, #tpu.memory_space<vmem>>, vector<2x1x128xbf16>,
    %172 = vector.broadcast %165 : vector<2x1xf32> to vector<2x128xf32>
    %173 = arith.mulf %172, %163 : vector<2x128xf32>
    %cst_48 = arith.constant 1.000000e+00 : f32
    %174 = vector.broadcast %cst_48 : f32 to vector<2x1xf32>
    %175 = arith.subf %174, %165 : vector<2x1xf32>
    %176 = vector.broadcast %175 : vector<2x1xf32> to vector<2x128xf32>
    %177 = arith.mulf %176, %126 : vector<2x128xf32>
    %178 = arith.addf %173, %177 : vector<2x128xf32>
    %179 = vector.broadcast %165 : vector<2x1xf32> to vector<2x128xf32>
    %180 = arith.mulf %179, %161 : vector<2x128xf32>
    %cst_49 = arith.constant 1.000000e+00 : f32
    %181 = vector.broadcast %cst_49 : f32 to vector<2x1xf32>
    %182 = arith.subf %181, %165 : vector<2x1xf32>
    %183 = vector.broadcast %182 : vector<2x1xf32> to vector<2x128xf32>
    %184 = arith.mulf %183, %133 : vector<2x128xf32>
    %185 = arith.addf %180, %184 : vector<2x128xf32>
    %186 = vector.extract_strided_slice %28 {offsets = [0, 3, 0], sizes = [2, 1, 512], strides = [1, 1, 1]} : vector<2x8x512xf32> to vector<2x1x512xf32>
    %187 = vector.shape_cast %186 : vector<2x1x512xf32> to vector<2x512xf32>
    %188 = arith.truncf %178 : vector<2x128xf32> to vector<2x128xbf16>
    %cst_50 = arith.constant dense<0.000000e+00> : vector<2x512xf32>
    %189 = tpu.matmul %188, %29, %cst_50 {dimension_numbers = #tpu.dot_dimension_numbers<[1], [0], [0], [1], [0, 0, 1, 1], [], []>} : vector<2x128xbf16>, vector<128x512xbf16>, vector<2x512xf32> -> vector<2x512xf32>
    %190 = arith.addf %187, %189 : vector<2x512xf32>
    %191 = vector.extract_strided_slice %190 {offsets = [0, 0], sizes = [2, 128], strides = [1, 1]} : vector<2x512xf32> to vector<2x128xf32>
    %192 = arith.negf %191 : vector<2x128xf32>
    %193 = math.exp %192 : vector<2x128xf32>
    %cst_51 = arith.constant 1.000000e+00 : f32
    %194 = vector.broadcast %cst_51 : f32 to vector<2x128xf32>
    %195 = arith.addf %194, %193 : vector<2x128xf32>
    %196 = arith.divf %194, %195 : vector<2x128xf32>
    %197 = vector.extract_strided_slice %190 {offsets = [0, 128], sizes = [2, 128], strides = [1, 1]} : vector<2x512xf32> to vector<2x128xf32>
    %198 = arith.negf %197 : vector<2x128xf32>
    %199 = math.exp %198 : vector<2x128xf32>
    %cst_52 = arith.constant 1.000000e+00 : f32
    %200 = vector.broadcast %cst_52 : f32 to vector<2x128xf32>
    %201 = arith.addf %200, %199 : vector<2x128xf32>
    %202 = arith.divf %200, %201 : vector<2x128xf32>
    %203 = vector.extract_strided_slice %190 {offsets = [0, 256], sizes = [2, 128], strides = [1, 1]} : vector<2x512xf32> to vector<2x128xf32>
    %204 = math.tanh %203 : vector<2x128xf32>
    %205 = vector.extract_strided_slice %190 {offsets = [0, 384], sizes = [2, 128], strides = [1, 1]} : vector<2x512xf32> to vector<2x128xf32>
    %206 = arith.negf %205 : vector<2x128xf32>
    %207 = math.exp %206 : vector<2x128xf32>
    %cst_53 = arith.constant 1.000000e+00 : f32
    %208 = vector.broadcast %cst_53 : f32 to vector<2x128xf32>
    %209 = arith.addf %208, %207 : vector<2x128xf32>
    %210 = arith.divf %208, %209 : vector<2x128xf32>
    %211 = arith.mulf %202, %185 : vector<2x128xf32>
    %212 = arith.mulf %196, %204 : vector<2x128xf32>
    %213 = arith.addf %211, %212 : vector<2x128xf32>
    %214 = math.tanh %213 : vector<2x128xf32>
    %215 = arith.mulf %210, %214 : vector<2x128xf32>
    %216 = vector.extract_strided_slice %3 {offsets = [0, 3, 0], sizes = [2, 1, 1], strides = [1, 1, 1]} : vector<2x8x1xf32> to vector<2x1x1xf32>
    %217 = vector.shape_cast %216 : vector<2x1x1xf32> to vector<2x1xf32>
    %218 = vector.broadcast %217 : vector<2x1xf32> to vector<2x128xf32>
    %219 = arith.mulf %218, %215 : vector<2x128xf32>
    %220 = arith.truncf %219 : vector<2x128xf32> to vector<2x128xbf16>
    %c0_54 = arith.constant 0 : index
    %c3 = arith.constant 3 : index
    %c0_55 = arith.constant 0 : index
    %221 = vector.load %arg22[%c0_54, %c3, %c0_55] : memref<2x8x128xbf16, #tpu.memory_space<vmem>>, vector<2x1x128xbf16>
    %222 = vector.shape_cast %221 : vector<2x1x128xbf16> to vector<2x128xbf16>
    %223 = vector.shape_cast %220 : vector<2x128xbf16> to vector<2x1x128xbf16>
    tpu.vector_store %arg22[%c0_54, %c3, %c0_55], %223 {strides = array<i32>} : memref<2x8x128xbf16, #tpu.memory_space<vmem>>, vector<2x1x128xbf16>,
    %224 = vector.broadcast %217 : vector<2x1xf32> to vector<2x128xf32>
    %225 = arith.mulf %224, %215 : vector<2x128xf32>
    %cst_56 = arith.constant 1.000000e+00 : f32
    %226 = vector.broadcast %cst_56 : f32 to vector<2x1xf32>
    %227 = arith.subf %226, %217 : vector<2x1xf32>
    %228 = vector.broadcast %227 : vector<2x1xf32> to vector<2x128xf32>
    %229 = arith.mulf %228, %178 : vector<2x128xf32>
    %230 = arith.addf %225, %229 : vector<2x128xf32>
    %231 = vector.broadcast %217 : vector<2x1xf32> to vector<2x128xf32>
    %232 = arith.mulf %231, %213 : vector<2x128xf32>
    %cst_57 = arith.constant 1.000000e+00 : f32
    %233 = vector.broadcast %cst_57 : f32 to vector<2x1xf32>
    %234 = arith.subf %233, %217 : vector<2x1xf32>
    %235 = vector.broadcast %234 : vector<2x1xf32> to vector<2x128xf32>
    %236 = arith.mulf %235, %185 : vector<2x128xf32>
    %237 = arith.addf %232, %236 : vector<2x128xf32>
    %238 = vector.extract_strided_slice %28 {offsets = [0, 4, 0], sizes = [2, 1, 512], strides = [1, 1, 1]} : vector<2x8x512xf32> to vector<2x1x512xf32>
    %239 = vector.shape_cast %238 : vector<2x1x512xf32> to vector<2x512xf32>
    %240 = arith.truncf %230 : vector<2x128xf32> to vector<2x128xbf16>
    %cst_58 = arith.constant dense<0.000000e+00> : vector<2x512xf32>
    %241 = tpu.matmul %240, %29, %cst_58 {dimension_numbers = #tpu.dot_dimension_numbers<[1], [0], [0], [1], [0, 0, 1, 1], [], []>} : vector<2x128xbf16>, vector<128x512xbf16>, vector<2x512xf32> -> vector<2x512xf32>
    %242 = arith.addf %239, %241 : vector<2x512xf32>
    %243 = vector.extract_strided_slice %242 {offsets = [0, 0], sizes = [2, 128], strides = [1, 1]} : vector<2x512xf32> to vector<2x128xf32>
    %244 = arith.negf %243 : vector<2x128xf32>
    %245 = math.exp %244 : vector<2x128xf32>
    %cst_59 = arith.constant 1.000000e+00 : f32
    %246 = vector.broadcast %cst_59 : f32 to vector<2x128xf32>
    %247 = arith.addf %246, %245 : vector<2x128xf32>
    %248 = arith.divf %246, %247 : vector<2x128xf32>
    %249 = vector.extract_strided_slice %242 {offsets = [0, 128], sizes = [2, 128], strides = [1, 1]} : vector<2x512xf32> to vector<2x128xf32>
    %250 = arith.negf %249 : vector<2x128xf32>
    %251 = math.exp %250 : vector<2x128xf32>
    %cst_60 = arith.constant 1.000000e+00 : f32
    %252 = vector.broadcast %cst_60 : f32 to vector<2x128xf32>
    %253 = arith.addf %252, %251 : vector<2x128xf32>
    %254 = arith.divf %252, %253 : vector<2x128xf32>
    %255 = vector.extract_strided_slice %242 {offsets = [0, 256], sizes = [2, 128], strides = [1, 1]} : vector<2x512xf32> to vector<2x128xf32>
    %256 = math.tanh %255 : vector<2x128xf32>
    %257 = vector.extract_strided_slice %242 {offsets = [0, 384], sizes = [2, 128], strides = [1, 1]} : vector<2x512xf32> to vector<2x128xf32>
    %258 = arith.negf %257 : vector<2x128xf32>
    %259 = math.exp %258 : vector<2x128xf32>
    %cst_61 = arith.constant 1.000000e+00 : f32
    %260 = vector.broadcast %cst_61 : f32 to vector<2x128xf32>
    %261 = arith.addf %260, %259 : vector<2x128xf32>
    %262 = arith.divf %260, %261 : vector<2x128xf32>
    %263 = arith.mulf %254, %237 : vector<2x128xf32>
    %264 = arith.mulf %248, %256 : vector<2x128xf32>
    %265 = arith.addf %263, %264 : vector<2x128xf32>
    %266 = math.tanh %265 : vector<2x128xf32>
    %267 = arith.mulf %262, %266 : vector<2x128xf32>
    %268 = vector.extract_strided_slice %3 {offsets = [0, 4, 0], sizes = [2, 1, 1], strides = [1, 1, 1]} : vector<2x8x1xf32> to vector<2x1x1xf32>
    %269 = vector.shape_cast %268 : vector<2x1x1xf32> to vector<2x1xf32>
    %270 = vector.broadcast %269 : vector<2x1xf32> to vector<2x128xf32>
    %271 = arith.mulf %270, %267 : vector<2x128xf32>
    %272 = arith.truncf %271 : vector<2x128xf32> to vector<2x128xbf16>
    %c0_62 = arith.constant 0 : index
    %c4 = arith.constant 4 : index
    %c0_63 = arith.constant 0 : index
    %273 = vector.load %arg22[%c0_62, %c4, %c0_63] : memref<2x8x128xbf16, #tpu.memory_space<vmem>>, vector<2x1x128xbf16>
    %274 = vector.shape_cast %273 : vector<2x1x128xbf16> to vector<2x128xbf16>
    %275 = vector.shape_cast %272 : vector<2x128xbf16> to vector<2x1x128xbf16>
    tpu.vector_store %arg22[%c0_62, %c4, %c0_63], %275 {strides = array<i32>} : memref<2x8x128xbf16, #tpu.memory_space<vmem>>, vector<2x1x128xbf16>,
    %276 = vector.broadcast %269 : vector<2x1xf32> to vector<2x128xf32>
    %277 = arith.mulf %276, %267 : vector<2x128xf32>
    %cst_64 = arith.constant 1.000000e+00 : f32
    %278 = vector.broadcast %cst_64 : f32 to vector<2x1xf32>
    %279 = arith.subf %278, %269 : vector<2x1xf32>
    %280 = vector.broadcast %279 : vector<2x1xf32> to vector<2x128xf32>
    %281 = arith.mulf %280, %230 : vector<2x128xf32>
    %282 = arith.addf %277, %281 : vector<2x128xf32>
    %283 = vector.broadcast %269 : vector<2x1xf32> to vector<2x128xf32>
    %284 = arith.mulf %283, %265 : vector<2x128xf32>
    %cst_65 = arith.constant 1.000000e+00 : f32
    %285 = vector.broadcast %cst_65 : f32 to vector<2x1xf32>
    %286 = arith.subf %285, %269 : vector<2x1xf32>
    %287 = vector.broadcast %286 : vector<2x1xf32> to vector<2x128xf32>
    %288 = arith.mulf %287, %237 : vector<2x128xf32>
    %289 = arith.addf %284, %288 : vector<2x128xf32>
    %290 = vector.extract_strided_slice %28 {offsets = [0, 5, 0], sizes = [2, 1, 512], strides = [1, 1, 1]} : vector<2x8x512xf32> to vector<2x1x512xf32>
    %291 = vector.shape_cast %290 : vector<2x1x512xf32> to vector<2x512xf32>
    %292 = arith.truncf %282 : vector<2x128xf32> to vector<2x128xbf16>
    %cst_66 = arith.constant dense<0.000000e+00> : vector<2x512xf32>
    %293 = tpu.matmul %292, %29, %cst_66 {dimension_numbers = #tpu.dot_dimension_numbers<[1], [0], [0], [1], [0, 0, 1, 1], [], []>} : vector<2x128xbf16>, vector<128x512xbf16>, vector<2x512xf32> -> vector<2x512xf32>
    %294 = arith.addf %291, %293 : vector<2x512xf32>
    %295 = vector.extract_strided_slice %294 {offsets = [0, 0], sizes = [2, 128], strides = [1, 1]} : vector<2x512xf32> to vector<2x128xf32>
    %296 = arith.negf %295 : vector<2x128xf32>
    %297 = math.exp %296 : vector<2x128xf32>
    %cst_67 = arith.constant 1.000000e+00 : f32
    %298 = vector.broadcast %cst_67 : f32 to vector<2x128xf32>
    %299 = arith.addf %298, %297 : vector<2x128xf32>
    %300 = arith.divf %298, %299 : vector<2x128xf32>
    %301 = vector.extract_strided_slice %294 {offsets = [0, 128], sizes = [2, 128], strides = [1, 1]} : vector<2x512xf32> to vector<2x128xf32>
    %302 = arith.negf %301 : vector<2x128xf32>
    %303 = math.exp %302 : vector<2x128xf32>
    %cst_68 = arith.constant 1.000000e+00 : f32
    %304 = vector.broadcast %cst_68 : f32 to vector<2x128xf32>
    %305 = arith.addf %304, %303 : vector<2x128xf32>
    %306 = arith.divf %304, %305 : vector<2x128xf32>
    %307 = vector.extract_strided_slice %294 {offsets = [0, 256], sizes = [2, 128], strides = [1, 1]} : vector<2x512xf32> to vector<2x128xf32>
    %308 = math.tanh %307 : vector<2x128xf32>
    %309 = vector.extract_strided_slice %294 {offsets = [0, 384], sizes = [2, 128], strides = [1, 1]} : vector<2x512xf32> to vector<2x128xf32>
    %310 = arith.negf %309 : vector<2x128xf32>
    %311 = math.exp %310 : vector<2x128xf32>
    %cst_69 = arith.constant 1.000000e+00 : f32
    %312 = vector.broadcast %cst_69 : f32 to vector<2x128xf32>
    %313 = arith.addf %312, %311 : vector<2x128xf32>
    %314 = arith.divf %312, %313 : vector<2x128xf32>
    %315 = arith.mulf %306, %289 : vector<2x128xf32>
    %316 = arith.mulf %300, %308 : vector<2x128xf32>
    %317 = arith.addf %315, %316 : vector<2x128xf32>
    %318 = math.tanh %317 : vector<2x128xf32>
    %319 = arith.mulf %314, %318 : vector<2x128xf32>
    %320 = vector.extract_strided_slice %3 {offsets = [0, 5, 0], sizes = [2, 1, 1], strides = [1, 1, 1]} : vector<2x8x1xf32> to vector<2x1x1xf32>
    %321 = vector.shape_cast %320 : vector<2x1x1xf32> to vector<2x1xf32>
    %322 = vector.broadcast %321 : vector<2x1xf32> to vector<2x128xf32>
    %323 = arith.mulf %322, %319 : vector<2x128xf32>
    %324 = arith.truncf %323 : vector<2x128xf32> to vector<2x128xbf16>
    %c0_70 = arith.constant 0 : index
    %c5 = arith.constant 5 : index
    %c0_71 = arith.constant 0 : index
    %325 = vector.load %arg22[%c0_70, %c5, %c0_71] : memref<2x8x128xbf16, #tpu.memory_space<vmem>>, vector<2x1x128xbf16>
    %326 = vector.shape_cast %325 : vector<2x1x128xbf16> to vector<2x128xbf16>
    %327 = vector.shape_cast %324 : vector<2x128xbf16> to vector<2x1x128xbf16>
    tpu.vector_store %arg22[%c0_70, %c5, %c0_71], %327 {strides = array<i32>} : memref<2x8x128xbf16, #tpu.memory_space<vmem>>, vector<2x1x128xbf16>,
    %328 = vector.broadcast %321 : vector<2x1xf32> to vector<2x128xf32>
    %329 = arith.mulf %328, %319 : vector<2x128xf32>
    %cst_72 = arith.constant 1.000000e+00 : f32
    %330 = vector.broadcast %cst_72 : f32 to vector<2x1xf32>
    %331 = arith.subf %330, %321 : vector<2x1xf32>
    %332 = vector.broadcast %331 : vector<2x1xf32> to vector<2x128xf32>
    %333 = arith.mulf %332, %282 : vector<2x128xf32>
    %334 = arith.addf %329, %333 : vector<2x128xf32>
    %335 = vector.broadcast %321 : vector<2x1xf32> to vector<2x128xf32>
    %336 = arith.mulf %335, %317 : vector<2x128xf32>
    %cst_73 = arith.constant 1.000000e+00 : f32
    %337 = vector.broadcast %cst_73 : f32 to vector<2x1xf32>
    %338 = arith.subf %337, %321 : vector<2x1xf32>
    %339 = vector.broadcast %338 : vector<2x1xf32> to vector<2x128xf32>
    %340 = arith.mulf %339, %289 : vector<2x128xf32>
    %341 = arith.addf %336, %340 : vector<2x128xf32>
    %342 = vector.extract_strided_slice %28 {offsets = [0, 6, 0], sizes = [2, 1, 512], strides = [1, 1, 1]} : vector<2x8x512xf32> to vector<2x1x512xf32>
    %343 = vector.shape_cast %342 : vector<2x1x512xf32> to vector<2x512xf32>
    %344 = arith.truncf %334 : vector<2x128xf32> to vector<2x128xbf16>
    %cst_74 = arith.constant dense<0.000000e+00> : vector<2x512xf32>
    %345 = tpu.matmul %344, %29, %cst_74 {dimension_numbers = #tpu.dot_dimension_numbers<[1], [0], [0], [1], [0, 0, 1, 1], [], []>} : vector<2x128xbf16>, vector<128x512xbf16>, vector<2x512xf32> -> vector<2x512xf32>
    %346 = arith.addf %343, %345 : vector<2x512xf32>
    %347 = vector.extract_strided_slice %346 {offsets = [0, 0], sizes = [2, 128], strides = [1, 1]} : vector<2x512xf32> to vector<2x128xf32>
    %348 = arith.negf %347 : vector<2x128xf32>
    %349 = math.exp %348 : vector<2x128xf32>
    %cst_75 = arith.constant 1.000000e+00 : f32
    %350 = vector.broadcast %cst_75 : f32 to vector<2x128xf32>
    %351 = arith.addf %350, %349 : vector<2x128xf32>
    %352 = arith.divf %350, %351 : vector<2x128xf32>
    %353 = vector.extract_strided_slice %346 {offsets = [0, 128], sizes = [2, 128], strides = [1, 1]} : vector<2x512xf32> to vector<2x128xf32>
    %354 = arith.negf %353 : vector<2x128xf32>
    %355 = math.exp %354 : vector<2x128xf32>
    %cst_76 = arith.constant 1.000000e+00 : f32
    %356 = vector.broadcast %cst_76 : f32 to vector<2x128xf32>
    %357 = arith.addf %356, %355 : vector<2x128xf32>
    %358 = arith.divf %356, %357 : vector<2x128xf32>
    %359 = vector.extract_strided_slice %346 {offsets = [0, 256], sizes = [2, 128], strides = [1, 1]} : vector<2x512xf32> to vector<2x128xf32>
    %360 = math.tanh %359 : vector<2x128xf32>
    %361 = vector.extract_strided_slice %346 {offsets = [0, 384], sizes = [2, 128], strides = [1, 1]} : vector<2x512xf32> to vector<2x128xf32>
    %362 = arith.negf %361 : vector<2x128xf32>
    %363 = math.exp %362 : vector<2x128xf32>
    %cst_77 = arith.constant 1.000000e+00 : f32
    %364 = vector.broadcast %cst_77 : f32 to vector<2x128xf32>
    %365 = arith.addf %364, %363 : vector<2x128xf32>
    %366 = arith.divf %364, %365 : vector<2x128xf32>
    %367 = arith.mulf %358, %341 : vector<2x128xf32>
    %368 = arith.mulf %352, %360 : vector<2x128xf32>
    %369 = arith.addf %367, %368 : vector<2x128xf32>
    %370 = math.tanh %369 : vector<2x128xf32>
    %371 = arith.mulf %366, %370 : vector<2x128xf32>
    %372 = vector.extract_strided_slice %3 {offsets = [0, 6, 0], sizes = [2, 1, 1], strides = [1, 1, 1]} : vector<2x8x1xf32> to vector<2x1x1xf32>
    %373 = vector.shape_cast %372 : vector<2x1x1xf32> to vector<2x1xf32>
    %374 = vector.broadcast %373 : vector<2x1xf32> to vector<2x128xf32>
    %375 = arith.mulf %374, %371 : vector<2x128xf32>
    %376 = arith.truncf %375 : vector<2x128xf32> to vector<2x128xbf16>
    %c0_78 = arith.constant 0 : index
    %c6 = arith.constant 6 : index
    %c0_79 = arith.constant 0 : index
    %377 = vector.load %arg22[%c0_78, %c6, %c0_79] : memref<2x8x128xbf16, #tpu.memory_space<vmem>>, vector<2x1x128xbf16>
    %378 = vector.shape_cast %377 : vector<2x1x128xbf16> to vector<2x128xbf16>
    %379 = vector.shape_cast %376 : vector<2x128xbf16> to vector<2x1x128xbf16>
    tpu.vector_store %arg22[%c0_78, %c6, %c0_79], %379 {strides = array<i32>} : memref<2x8x128xbf16, #tpu.memory_space<vmem>>, vector<2x1x128xbf16>,
    %380 = vector.broadcast %373 : vector<2x1xf32> to vector<2x128xf32>
    %381 = arith.mulf %380, %371 : vector<2x128xf32>
    %cst_80 = arith.constant 1.000000e+00 : f32
    %382 = vector.broadcast %cst_80 : f32 to vector<2x1xf32>
    %383 = arith.subf %382, %373 : vector<2x1xf32>
    %384 = vector.broadcast %383 : vector<2x1xf32> to vector<2x128xf32>
    %385 = arith.mulf %384, %334 : vector<2x128xf32>
    %386 = arith.addf %381, %385 : vector<2x128xf32>
    %387 = vector.broadcast %373 : vector<2x1xf32> to vector<2x128xf32>
    %388 = arith.mulf %387, %369 : vector<2x128xf32>
    %cst_81 = arith.constant 1.000000e+00 : f32
    %389 = vector.broadcast %cst_81 : f32 to vector<2x1xf32>
    %390 = arith.subf %389, %373 : vector<2x1xf32>
    %391 = vector.broadcast %390 : vector<2x1xf32> to vector<2x128xf32>
    %392 = arith.mulf %391, %341 : vector<2x128xf32>
    %393 = arith.addf %388, %392 : vector<2x128xf32>
    %394 = vector.extract_strided_slice %28 {offsets = [0, 7, 0], sizes = [2, 1, 512], strides = [1, 1, 1]} : vector<2x8x512xf32> to vector<2x1x512xf32>
    %395 = vector.shape_cast %394 : vector<2x1x512xf32> to vector<2x512xf32>
    %396 = arith.truncf %386 : vector<2x128xf32> to vector<2x128xbf16>
    %cst_82 = arith.constant dense<0.000000e+00> : vector<2x512xf32>
    %397 = tpu.matmul %396, %29, %cst_82 {dimension_numbers = #tpu.dot_dimension_numbers<[1], [0], [0], [1], [0, 0, 1, 1], [], []>} : vector<2x128xbf16>, vector<128x512xbf16>, vector<2x512xf32> -> vector<2x512xf32>
    %398 = arith.addf %395, %397 : vector<2x512xf32>
    %399 = vector.extract_strided_slice %398 {offsets = [0, 0], sizes = [2, 128], strides = [1, 1]} : vector<2x512xf32> to vector<2x128xf32>
    %400 = arith.negf %399 : vector<2x128xf32>
    %401 = math.exp %400 : vector<2x128xf32>
    %cst_83 = arith.constant 1.000000e+00 : f32
    %402 = vector.broadcast %cst_83 : f32 to vector<2x128xf32>
    %403 = arith.addf %402, %401 : vector<2x128xf32>
    %404 = arith.divf %402, %403 : vector<2x128xf32>
    %405 = vector.extract_strided_slice %398 {offsets = [0, 128], sizes = [2, 128], strides = [1, 1]} : vector<2x512xf32> to vector<2x128xf32>
    %406 = arith.negf %405 : vector<2x128xf32>
    %407 = math.exp %406 : vector<2x128xf32>
    %cst_84 = arith.constant 1.000000e+00 : f32
    %408 = vector.broadcast %cst_84 : f32 to vector<2x128xf32>
    %409 = arith.addf %408, %407 : vector<2x128xf32>
    %410 = arith.divf %408, %409 : vector<2x128xf32>
    %411 = vector.extract_strided_slice %398 {offsets = [0, 256], sizes = [2, 128], strides = [1, 1]} : vector<2x512xf32> to vector<2x128xf32>
    %412 = math.tanh %411 : vector<2x128xf32>
    %413 = vector.extract_strided_slice %398 {offsets = [0, 384], sizes = [2, 128], strides = [1, 1]} : vector<2x512xf32> to vector<2x128xf32>
    %414 = arith.negf %413 : vector<2x128xf32>
    %415 = math.exp %414 : vector<2x128xf32>
    %cst_85 = arith.constant 1.000000e+00 : f32
    %416 = vector.broadcast %cst_85 : f32 to vector<2x128xf32>
    %417 = arith.addf %416, %415 : vector<2x128xf32>
    %418 = arith.divf %416, %417 : vector<2x128xf32>
    %419 = arith.mulf %410, %393 : vector<2x128xf32>
    %420 = arith.mulf %404, %412 : vector<2x128xf32>
    %421 = arith.addf %419, %420 : vector<2x128xf32>
    %422 = math.tanh %421 : vector<2x128xf32>
    %423 = arith.mulf %418, %422 : vector<2x128xf32>
    %424 = vector.extract_strided_slice %3 {offsets = [0, 7, 0], sizes = [2, 1, 1], strides = [1, 1, 1]} : vector<2x8x1xf32> to vector<2x1x1xf32>
    %425 = vector.shape_cast %424 : vector<2x1x1xf32> to vector<2x1xf32>
    %426 = vector.broadcast %425 : vector<2x1xf32> to vector<2x128xf32>
    %427 = arith.mulf %426, %423 : vector<2x128xf32>
    %428 = arith.truncf %427 : vector<2x128xf32> to vector<2x128xbf16>
    %c0_86 = arith.constant 0 : index
    %c7 = arith.constant 7 : index
    %c0_87 = arith.constant 0 : index
    %429 = vector.load %arg22[%c0_86, %c7, %c0_87] : memref<2x8x128xbf16, #tpu.memory_space<vmem>>, vector<2x1x128xbf16>
    %430 = vector.shape_cast %429 : vector<2x1x128xbf16> to vector<2x128xbf16>
    %431 = vector.shape_cast %428 : vector<2x128xbf16> to vector<2x1x128xbf16>
    tpu.vector_store %arg22[%c0_86, %c7, %c0_87], %431 {strides = array<i32>} : memref<2x8x128xbf16, #tpu.memory_space<vmem>>, vector<2x1x128xbf16>,
    %432 = vector.broadcast %425 : vector<2x1xf32> to vector<2x128xf32>
    %433 = arith.mulf %432, %423 : vector<2x128xf32>
    %cst_88 = arith.constant 1.000000e+00 : f32
    %434 = vector.broadcast %cst_88 : f32 to vector<2x1xf32>
    %435 = arith.subf %434, %425 : vector<2x1xf32>
    %436 = vector.broadcast %435 : vector<2x1xf32> to vector<2x128xf32>
    %437 = arith.mulf %436, %386 : vector<2x128xf32>
    %438 = arith.addf %433, %437 : vector<2x128xf32>
    %439 = vector.broadcast %425 : vector<2x1xf32> to vector<2x128xf32>
    %440 = arith.mulf %439, %421 : vector<2x128xf32>
    %cst_89 = arith.constant 1.000000e+00 : f32
    %441 = vector.broadcast %cst_89 : f32 to vector<2x1xf32>
    %442 = arith.subf %441, %425 : vector<2x1xf32>
    %443 = vector.broadcast %442 : vector<2x1xf32> to vector<2x128xf32>
    %444 = arith.mulf %443, %393 : vector<2x128xf32>
    %445 = arith.addf %440, %444 : vector<2x128xf32>
    %446 = vector.shape_cast %438 : vector<2x128xf32> to vector<2x1x128xf32>
    %c0_90 = arith.constant 0 : index
    %c0_91 = arith.constant 0 : index
    %c0_92 = arith.constant 0 : index
    %447 = vector.load %arg20[%c0_90, %c0_91, %c0_92] : memref<2x1x128xf32, #tpu.memory_space<vmem>>, vector<2x1x128xf32>
    tpu.vector_store %arg20[%c0_90, %c0_91, %c0_92], %446 {strides = array<i32>} : memref<2x1x128xf32, #tpu.memory_space<vmem>>, vector<2x1x128xf32>,
    %448 = vector.shape_cast %445 : vector<2x128xf32> to vector<2x1x128xf32>
    %c0_93 = arith.constant 0 : index
    %c0_94 = arith.constant 0 : index
    %c0_95 = arith.constant 0 : index
    %449 = vector.load %arg21[%c0_93, %c0_94, %c0_95] : memref<2x1x128xf32, #tpu.memory_space<vmem>>, vector<2x1x128xf32>
    tpu.vector_store %arg21[%c0_93, %c0_94, %c0_95], %448 {strides = array<i32>} : memref<2x1x128xf32, #tpu.memory_space<vmem>>, vector<2x1x128xf32>,
    %c0_96 = arith.constant 0 : index
    %c0_97 = arith.constant 0 : index
    %c0_98 = arith.constant 0 : index
    %450 = vector.load %arg22[%c0_96, %c0_97, %c0_98] : memref<2x8x128xbf16, #tpu.memory_space<vmem>>, vector<2x8x128xbf16>
    %451 = vector.shape_cast %450 : vector<2x8x128xbf16> to vector<16x128xbf16>
    %c0_99 = arith.constant 0 : index
    %c0_100 = arith.constant 0 : index
    %452 = vector.load %arg11[%c0_99, %c0_100] : memref<128x32xbf16, #tpu.memory_space<vmem>>, vector<128x32xbf16>
    %cst_101 = arith.constant dense<0.000000e+00> : vector<16x32xf32>
    %453 = tpu.matmul %451, %452, %cst_101 {dimension_numbers = #tpu.dot_dimension_numbers<[1], [0], [0], [1], [0, 0, 1, 1], [], []>} : vector<16x128xbf16>, vector<128x32xbf16>, vector<16x32xf32> -> vector<16x32xf32>
    %454 = vector.shape_cast %453 : vector<16x32xf32> to vector<2x8x32xf32>
    %455 = arith.truncf %454 : vector<2x8x32xf32> to vector<2x8x32xbf16>
    "tpu.trace_start"() <{level = 10 : i32, message = "btd,bsd->bts"}> : () -> ()
    %cst_102 = arith.constant dense<0.000000e+00> : vector<2x8x128xf32>
    %456 = tpu.matmul %455, %0, %cst_102 {dimension_numbers = #tpu.dot_dimension_numbers<[2], [2], [1], [1], [0, 0, 0, 1, 1, 1], [0], [0]>} : vector<2x8x32xbf16>, vector<2x128x32xbf16>, vector<2x8x128xf32> -> vector<2x8x128xf32>
    %cst_103 = arith.constant 5.000000e-01 : f32
    "tpu.trace_stop"() : () -> ()
    %457 = vector.broadcast %cst_103 : f32 to vector<2x1x128xf32>
    %458 = arith.cmpf ogt, %1, %457 : vector<2x1x128xf32>
    %cst_104 = arith.constant -1.000000e+30 : f32
    %459 = vector.shape_cast %458 : vector<2x1x128xi1> to vector<2x1x128xi1>
    %460 = vector.broadcast %459 : vector<2x1x128xi1> to vector<2x8x128xi1>
    %461 = vector.broadcast %cst_104 : f32 to vector<2x8x128xf32>
    %462 = arith.select %460, %456, %461 : vector<2x8x128xi1>, vector<2x8x128xf32>
    %cst_105 = arith.constant dense<0xFF800000> : vector<2x8xf32>
    %463 = vector.multi_reduction <maximumf>, %462, %cst_105 [2] : vector<2x8x128xf32> to vector<2x8xf32>
    %464 = vector.shape_cast %463 : vector<2x8xf32> to vector<2x8x1xf32>
    %465 = vector.broadcast %464 : vector<2x8x1xf32> to vector<2x8x128xf32>
    %466 = arith.subf %462, %465 : vector<2x8x128xf32>
    %467 = math.exp %466 : vector<2x8x128xf32>
    %cst_106 = arith.constant dense<0.000000e+00> : vector<2x8xf32>
    %468 = vector.multi_reduction <add>, %467, %cst_106 [2] : vector<2x8x128xf32> to vector<2x8xf32>
    %469 = vector.shape_cast %468 : vector<2x8xf32> to vector<2x8x1xf32>
    %470 = tpu.reciprocal %469 {approx = true} : vector<2x8x1xf32> -> vector<2x8x1xf32>
    %471 = vector.broadcast %470 : vector<2x8x1xf32> to vector<2x8x128xf32>
    %472 = arith.mulf %467, %471 : vector<2x8x128xf32>
    %c0_107 = arith.constant 0 : index
    %c0_108 = arith.constant 0 : index
    %c0_109 = arith.constant 0 : index
    %473 = vector.load %arg19[%c0_107, %c0_108, %c0_109] : memref<2x8x128xf32, #tpu.memory_space<vmem>>, vector<2x8x128xf32>
    tpu.vector_store %arg19[%c0_107, %c0_108, %c0_109], %472 {strides = array<i32>} : memref<2x8x128xf32, #tpu.memory_space<vmem>>, vector<2x8x128xf32>,
    %474 = arith.truncf %472 : vector<2x8x128xf32> to vector<2x8x128xbf16>
    "tpu.trace_start"() <{level = 10 : i32, message = "bts,bsd->btd"}> : () -> ()
    %cst_110 = arith.constant dense<0.000000e+00> : vector<2x8x32xf32>
    %475 = tpu.matmul %474, %0, %cst_110 {dimension_numbers = #tpu.dot_dimension_numbers<[2], [1], [1], [2], [0, 0, 0, 1, 1, 2], [0], [0]>} : vector<2x8x128xbf16>, vector<2x128x32xbf16>, vector<2x8x32xf32> -> vector<2x8x32xf32>
    "tpu.trace_stop"() : () -> ()
    %476 = vector.shape_cast %475 : vector<2x8x32xf32> to vector<16x32xf32>
    %477 = arith.truncf %476 : vector<16x32xf32> to vector<16x32xbf16>
    %c0_111 = arith.constant 0 : index
    %c0_112 = arith.constant 0 : index
    %478 = vector.load %arg12[%c0_111, %c0_112] : memref<128x256xbf16, #tpu.memory_space<vmem>>, vector<128x256xbf16>
    %cst_113 = arith.constant dense<0.000000e+00> : vector<16x256xf32>
    %479 = tpu.matmul %451, %478, %cst_113 {dimension_numbers = #tpu.dot_dimension_numbers<[1], [0], [0], [1], [0, 0, 1, 1], [], []>} : vector<16x128xbf16>, vector<128x256xbf16>, vector<16x256xf32> -> vector<16x256xf32>
    %c0_114 = arith.constant 0 : index
    %c0_115 = arith.constant 0 : index
    %480 = vector.load %arg13[%c0_114, %c0_115] : memref<32x256xbf16, #tpu.memory_space<vmem>>, vector<32x256xbf16>
    %cst_116 = arith.constant dense<0.000000e+00> : vector<16x256xf32>
    %481 = tpu.matmul %477, %480, %cst_116 {dimension_numbers = #tpu.dot_dimension_numbers<[1], [0], [0], [1], [0, 0, 1, 1], [], []>} : vector<16x32xbf16>, vector<32x256xbf16>, vector<16x256xf32> -> vector<16x256xf32>
    %482 = arith.addf %479, %481 : vector<16x256xf32>
    %c0_117 = arith.constant 0 : index
    %c0_118 = arith.constant 0 : index
    %483 = vector.load %arg14[%c0_117, %c0_118] : memref<16x256xbf16, #tpu.memory_space<vmem>>, vector<16x256xbf16>
    %cst_119 = arith.constant dense<0.000000e+00> : vector<16x256xf32>
    %484 = tpu.matmul %22, %483, %cst_119 {dimension_numbers = #tpu.dot_dimension_numbers<[1], [0], [0], [1], [0, 0, 1, 1], [], []>} : vector<16x16xbf16>, vector<16x256xbf16>, vector<16x256xf32> -> vector<16x256xf32>
    %485 = arith.addf %482, %484 : vector<16x256xf32>
    %c0_120 = arith.constant 0 : index
    %c0_121 = arith.constant 0 : index
    %486 = vector.load %arg15[%c0_120, %c0_121] : memref<1x256xf32, #tpu.memory_space<vmem>>, vector<1x256xf32>
    %487 = vector.broadcast %486 : vector<1x256xf32> to vector<16x256xf32>
    %488 = arith.addf %485, %487 : vector<16x256xf32>
    %489 = vector.extract_strided_slice %488 {offsets = [0, 0], sizes = [16, 128], strides = [1, 1]} : vector<16x256xf32> to vector<16x128xf32>
    %490 = math.tanh %489 : vector<16x128xf32>
    %491 = arith.truncf %490 : vector<16x128xf32> to vector<16x128xbf16>
    %492 = vector.extract_strided_slice %488 {offsets = [0, 128], sizes = [16, 128], strides = [1, 1]} : vector<16x256xf32> to vector<16x128xf32>
    %493 = arith.negf %492 : vector<16x128xf32>
    %494 = math.exp %493 : vector<16x128xf32>
    %cst_122 = arith.constant 1.000000e+00 : f32
    %495 = vector.broadcast %cst_122 : f32 to vector<16x128xf32>
    %496 = arith.addf %495, %494 : vector<16x128xf32>
    %497 = arith.divf %495, %496 : vector<16x128xf32>
    %498 = vector.extract_strided_slice %497 {offsets = [0, 0], sizes = [16, 1], strides = [1, 1]} : vector<16x128xf32> to vector<16x1xf32>
    %499 = vector.shape_cast %498 : vector<16x1xf32> to vector<2x8x1xf32>
    %c0_123 = arith.constant 0 : index
    %c0_124 = arith.constant 0 : index
    %500 = vector.load %arg16[%c0_123, %c0_124] : memref<128x128xbf16, #tpu.memory_space<vmem>>, vector<128x128xbf16>
    %cst_125 = arith.constant dense<0.000000e+00> : vector<16x128xf32>
    %501 = tpu.matmul %491, %500, %cst_125 {dimension_numbers = #tpu.dot_dimension_numbers<[1], [0], [0], [1], [0, 0, 1, 1], [], []>} : vector<16x128xbf16>, vector<128x128xbf16>, vector<16x128xf32> -> vector<16x128xf32>
    %c0_126 = arith.constant 0 : index
    %c0_127 = arith.constant 0 : index
    %502 = vector.load %arg17[%c0_126, %c0_127] : memref<1x128xf32, #tpu.memory_space<vmem>>, vector<1x128xf32>
    %503 = vector.broadcast %502 : vector<1x128xf32> to vector<16x128xf32>
    %504 = arith.addf %501, %503 : vector<16x128xf32>
    %cst_128 = arith.constant dense<0xFF800000> : vector<16xf32>
    %505 = vector.multi_reduction <maximumf>, %504, %cst_128 [1] : vector<16x128xf32> to vector<16xf32>
    %506 = vector.shape_cast %505 : vector<16xf32> to vector<16x1xf32>
    %507 = vector.broadcast %506 : vector<16x1xf32> to vector<16x128xf32>
    %508 = arith.subf %504, %507 : vector<16x128xf32>
    %509 = math.exp %508 : vector<16x128xf32>
    %cst_129 = arith.constant dense<0.000000e+00> : vector<16xf32>
    %510 = vector.multi_reduction <add>, %509, %cst_129 [1] : vector<16x128xf32> to vector<16xf32>
    %511 = vector.shape_cast %510 : vector<16xf32> to vector<16x1xf32>
    %512 = tpu.reciprocal %511 {approx = true} : vector<16x1xf32> -> vector<16x1xf32>
    %513 = vector.broadcast %512 : vector<16x1xf32> to vector<16x128xf32>
    %514 = arith.mulf %509, %513 : vector<16x128xf32>
    %515 = vector.shape_cast %514 : vector<16x128xf32> to vector<2x8x128xf32>
    %c0_130 = arith.constant 0 : index
    %c0_131 = arith.constant 0 : index
    %c0_132 = arith.constant 0 : index
    %516 = vector.load %arg3[%c0_130, %c0_131, %c0_132] : memref<2x1x128xi32, #tpu.memory_space<vmem>>, vector<2x1x128xi32>
    %cst_133 = arith.constant 1.000000e+00 : f32
    %517 = vector.broadcast %cst_133 : f32 to vector<2x8x1xf32>
    %518 = arith.subf %517, %499 : vector<2x8x1xf32>
    %519 = tpu.iota {dimensions = array<i32: 1>} : vector<2x128x128xi32>
    %c0_i32 = arith.constant 0 : i32
    %520 = vector.broadcast %c0_i32 : i32 to vector<2x128x128xi32>
    %521 = arith.addi %519, %520 : vector<2x128x128xi32>
    %522 = vector.broadcast %516 : vector<2x1x128xi32> to vector<2x128x128xi32>
    %523 = arith.cmpi eq, %521, %522 : vector<2x128x128xi32>
    %524 = arith.extui %523 : vector<2x128x128xi1> to vector<2x128x128xi32>
    %525 = arith.sitofp %524 : vector<2x128x128xi32> to vector<2x128x128xf32>
    %526 = arith.truncf %525 : vector<2x128x128xf32> to vector<2x128x128xbf16>
    "tpu.trace_start"() <{level = 10 : i32, message = "bts,bps->btp"}> : () -> ()
    %cst_134 = arith.constant dense<0.000000e+00> : vector<2x8x128xf32>
    %527 = tpu.matmul %474, %526, %cst_134 {dimension_numbers = #tpu.dot_dimension_numbers<[2], [2], [1], [1], [0, 0, 0, 1, 1, 1], [0], [0]>} : vector<2x8x128xbf16>, vector<2x128x128xbf16>, vector<2x8x128xf32> -> vector<2x8x128xf32>
    "tpu.trace_stop"() : () -> ()
    %528 = vector.broadcast %499 : vector<2x8x1xf32> to vector<2x8x128xf32>
    %529 = arith.mulf %528, %515 : vector<2x8x128xf32>
    %530 = vector.broadcast %518 : vector<2x8x1xf32> to vector<2x8x128xf32>
    %531 = arith.mulf %530, %527 : vector<2x8x128xf32>
    %532 = arith.addf %529, %531 : vector<2x8x128xf32>
    %c0_135 = arith.constant 0 : index
    %c0_136 = arith.constant 0 : index
    %c0_137 = arith.constant 0 : index
    %533 = vector.load %arg18[%c0_135, %c0_136, %c0_137] : memref<2x8x128xf32, #tpu.memory_space<vmem>>, vector<2x8x128xf32>
    tpu.vector_store %arg18[%c0_135, %c0_136, %c0_137], %532 {strides = array<i32>} : memref<2x8x128xf32, #tpu.memory_space<vmem>>, vector<2x8x128xf32>,
    return
  }
  func.func @transform_0(%arg0: i32) -> (i32, i32, i32) {
    %c0_i32 = arith.constant 0 : i32
    %c0_i32_0 = arith.constant 0 : i32
    %c0_i32_1 = arith.constant 0 : i32
    return %arg0, %c0_i32, %c0_i32_0 : i32, i32, i32
  }
  func.func @transform_1(%arg0: i32) -> (i32, i32, i32) {
    %c0_i32 = arith.constant 0 : i32
    %c0_i32_0 = arith.constant 0 : i32
    %c0_i32_1 = arith.constant 0 : i32
    return %arg0, %c0_i32, %c0_i32_0 : i32, i32, i32
  }
  func.func @transform_2(%arg0: i32) -> (i32, i32, i32) {
    %c0_i32 = arith.constant 0 : i32
    %c0_i32_0 = arith.constant 0 : i32
    %c0_i32_1 = arith.constant 0 : i32
    return %arg0, %c0_i32, %c0_i32_0 : i32, i32, i32
  }
  func.func @transform_3(%arg0: i32) -> (i32, i32, i32) {
    %c0_i32 = arith.constant 0 : i32
    %c0_i32_0 = arith.constant 0 : i32
    %c0_i32_1 = arith.constant 0 : i32
    return %arg0, %c0_i32, %c0_i32_0 : i32, i32, i32
  }
  func.func @transform_4(%arg0: i32) -> (i32, i32, i32) {
    %c0_i32 = arith.constant 0 : i32
    %c0_i32_0 = arith.constant 0 : i32
    %c0_i32_1 = arith.constant 0 : i32
    return %arg0, %c0_i32, %c0_i32_0 : i32, i32, i32
  }
  func.func @transform_5(%arg0: i32) -> (i32, i32) {
    %c0_i32 = arith.constant 0 : i32
    %c0_i32_0 = arith.constant 0 : i32
    %c0_i32_1 = arith.constant 0 : i32
    return %c0_i32, %c0_i32_0 : i32, i32
  }
  func.func @transform_6(%arg0: i32) -> (i32, i32) {
    %c0_i32 = arith.constant 0 : i32
    %c0_i32_0 = arith.constant 0 : i32
    %c0_i32_1 = arith.constant 0 : i32
    return %c0_i32, %c0_i32_0 : i32, i32
  }
  func.func @transform_7(%arg0: i32) -> (i32, i32) {
    %c0_i32 = arith.constant 0 : i32
    %c0_i32_0 = arith.constant 0 : i32
    %c0_i32_1 = arith.constant 0 : i32
    return %c0_i32, %c0_i32_0 : i32, i32
  }
  func.func @transform_8(%arg0: i32) -> (i32, i32) {
    %c0_i32 = arith.constant 0 : i32
    %c0_i32_0 = arith.constant 0 : i32
    %c0_i32_1 = arith.constant 0 : i32
    return %c0_i32, %c0_i32_0 : i32, i32
  }
  func.func @transform_9(%arg0: i32) -> (i32, i32) {
    %c0_i32 = arith.constant 0 : i32
    %c0_i32_0 = arith.constant 0 : i32
    %c0_i32_1 = arith.constant 0 : i32
    return %c0_i32, %c0_i32_0 : i32, i32
  }
  func.func @transform_10(%arg0: i32) -> (i32, i32) {
    %c0_i32 = arith.constant 0 : i32
    %c0_i32_0 = arith.constant 0 : i32
    %c0_i32_1 = arith.constant 0 : i32
    return %c0_i32, %c0_i32_0 : i32, i32
  }
  func.func @transform_11(%arg0: i32) -> (i32, i32) {
    %c0_i32 = arith.constant 0 : i32
    %c0_i32_0 = arith.constant 0 : i32
    %c0_i32_1 = arith.constant 0 : i32
    return %c0_i32, %c0_i32_0 : i32, i32
  }
  func.func @transform_12(%arg0: i32) -> (i32, i32) {
    %c0_i32 = arith.constant 0 : i32
    %c0_i32_0 = arith.constant 0 : i32
    %c0_i32_1 = arith.constant 0 : i32
    return %c0_i32, %c0_i32_0 : i32, i32
  }
  func.func @transform_13(%arg0: i32) -> (i32, i32) {
    %c0_i32 = arith.constant 0 : i32
    %c0_i32_0 = arith.constant 0 : i32
    %c0_i32_1 = arith.constant 0 : i32
    return %c0_i32, %c0_i32_0 : i32, i32
  }
  func.func @transform_14(%arg0: i32) -> (i32, i32) {
    %c0_i32 = arith.constant 0 : i32
    %c0_i32_0 = arith.constant 0 : i32
    %c0_i32_1 = arith.constant 0 : i32
    return %c0_i32, %c0_i32_0 : i32, i32
  }
  func.func @transform_15(%arg0: i32) -> (i32, i32) {
    %c0_i32 = arith.constant 0 : i32
    %c0_i32_0 = arith.constant 0 : i32
    %c0_i32_1 = arith.constant 0 : i32
    return %c0_i32, %c0_i32_0 : i32, i32
  }
  func.func @transform_16(%arg0: i32) -> (i32, i32) {
    %c0_i32 = arith.constant 0 : i32
    %c0_i32_0 = arith.constant 0 : i32
    %c0_i32_1 = arith.constant 0 : i32
    return %c0_i32, %c0_i32_0 : i32, i32
  }
  func.func @transform_17(%arg0: i32) -> (i32, i32, i32) {
    %c0_i32 = arith.constant 0 : i32
    %c0_i32_0 = arith.constant 0 : i32
    %c0_i32_1 = arith.constant 0 : i32
    return %arg0, %c0_i32, %c0_i32_0 : i32, i32, i32
  }
  func.func @transform_18(%arg0: i32) -> (i32, i32, i32) {
    %c0_i32 = arith.constant 0 : i32
    %c0_i32_0 = arith.constant 0 : i32
    %c0_i32_1 = arith.constant 0 : i32
    return %arg0, %c0_i32, %c0_i32_0 : i32, i32, i32
  }
  func.func @transform_19(%arg0: i32) -> (i32, i32, i32) {
    %c0_i32 = arith.constant 0 : i32
    %c0_i32_0 = arith.constant 0 : i32
    %c0_i32_1 = arith.constant 0 : i32
    return %arg0, %c0_i32, %c0_i32_0 : i32, i32, i32
  }
  func.func @transform_20(%arg0: i32) -> (i32, i32, i32) {
    %c0_i32 = arith.constant 0 : i32
    %c0_i32_0 = arith.constant 0 : i32
    %c0_i32_1 = arith.constant 0 : i32
    return %arg0, %c0_i32, %c0_i32_0 : i32, i32, i32
  }
}

</mosaic_0001>

<bundles_post_ra>
// kernel: tpu_custom_call.1
= control target key start
LH: loop header
LB: loop body
LE: loop exit
PB: predicated region body
PF: predicated region fallthrough
CT: control target
= control target key end

     0   :  { %s8855_s0 = inlined_call_operand.hbm [shape: bf16[4,128,32], index: 0, kind: input, shape index: {}]   ;;  %s8856_s1 = inlined_call_operand.hbm [shape: f32[4,1,128], index: 1, kind: input, shape index: {}]   ;;  %s8857_s2 = inlined_call_operand.hbm [shape: s32[4,1,128], index: 2, kind: input, shape index: {}]   ;;  %s8858_s3 = inlined_call_operand.hbm [shape: bf16[4,8,16], index: 3, kind: input, shape index: {}]   ;;  %s8859_s4 = inlined_call_operand.hbm [shape: f32[4,8,1], index: 4, kind: input, shape index: {}]   ;;  %s8860_s5 = inlined_call_operand.hbm [shape: bf16[16,512], index: 5, kind: input, shape index: {}]   ;;  %s8861_s6 = inlined_call_operand.hbm [shape: bf16[128,512], index: 6, kind: input, shape index: {}]   ;;  %s8862_s7 = inlined_call_operand.hbm [shape: f32[1,512], index: 7, kind: input, shape index: {}]   ;;  %s8863_s8 = inlined_call_operand.hbm [shape: bf16[32,256], index: 8, kind: input, shape index: {}]   ;;  %s8864_s9 = inlined_call_operand.hbm [shape: f32[1,256], index: 9, kind: input, shape index: {}]   ;;  %s8865_s10 = inlined_call_operand.hbm [shape: bf16[128,32], index: 10, kind: input, shape index: {}]   ;;  %s8866_s11 = inlined_call_operand.hbm [shape: bf16[128,256], index: 11, kind: input, shape index: {}]   ;;  %s8867_s12 = inlined_call_operand.hbm [shape: bf16[32,256], index: 12, kind: input, shape index: {}]   ;;  %s8868_s13 = inlined_call_operand.hbm [shape: bf16[16,256], index: 13, kind: input, shape index: {}]   ;;  %s8869_s14 = inlined_call_operand.hbm [shape: f32[1,256], index: 14, kind: input, shape index: {}]   ;;  %s8870_s15 = inlined_call_operand.hbm [shape: bf16[128,128], index: 15, kind: input, shape index: {}]   ;;  %s8871_s16 = inlined_call_operand.hbm [shape: f32[1,128], index: 16, kind: input, shape index: {}]   ;;  %s8872_s17 = inlined_call_operand.hbm [shape: f32[4,8,128], index: 17, kind: output, shape index: {0}]   ;;  %s8873_s18 = inlined_call_operand.hbm [shape: f32[4,8,128], index: 18, kind: output, shape index: {1}]   ;;  %s8874_s19 = inlined_call_operand.hbm [shape: f32[4,1,128], index: 19, kind: output, shape index: {2}]   ;;  %s8875_s20 = inlined_call_operand.hbm [shape: f32[4,1,128], index: 20, kind: output, shape index: {3}]  }
   0x1   :  { %8974 = sst [smem:[#allocation70_spill]] %s8855_s0 }
   0x2   :  { %8975 = sst [smem:[#allocation71_spill]] %s8856_s1 }
   0x3   :  { %8976 = sst [smem:[#allocation72_spill]] %s8857_s2 }
   0x4   :  { %8977 = sst [smem:[#allocation73_spill]] %s8858_s3 }
   0x5   :  { %8978 = sst [smem:[#allocation74_spill]] %s8859_s4 }
   0x6   :  { %8979 = sst [smem:[#allocation75_spill]] %s8860_s5 }
   0x7   :  { %8980 = sst [smem:[#allocation76_spill]] %s8861_s6 }
   0x8   :  { %8981 = sst [smem:[#allocation77_spill]] %s8862_s7 }
   0x9   :  { %8982 = sst [smem:[#allocation78_spill]] %s8863_s8 }
   0xa   :  { %8983 = sst [smem:[#allocation79_spill]] %s8864_s9 }
   0xb   :  { %8984 = sst [smem:[#allocation80_spill]] %s8866_s11 }
   0xc   :  { %8985 = sst [smem:[#allocation81_spill]] %s8868_s13 }
   0xd   :  { %8986 = sst [smem:[#allocation82_spill]] %s8869_s14 }
   0xe   :  { %8987 = sst [smem:[#allocation83_spill]] %s8870_s15 }
   0xf   :  { %8988 = sst [smem:[#allocation84_spill]] %s8871_s16 }
  0x10   :  { %8989 = sst [smem:[#allocation85_spill]] %s8872_s17 }
  0x11   :  { %8990 = sst [smem:[#allocation86_spill]] %s8873_s18 }
  0x12   :  { %8991 = sst [smem:[#allocation87_spill]] %s8874_s19 }
  0x13   :  { %8992 = sst [smem:[#allocation88_spill]] %s8875_s20 }
  0x14   :  { %26 = vsyncpa [#allocation4], 0 }
  0x15   :  { %28 = vsyncpa [#allocation4 + $0x1], 0 }
  0x16   :  { %29 = vsyncpa [#allocation7], 0 }
  0x17   :  { %31 = vsyncpa [#allocation7 + $0x1], 0 }
  0x18   :  { %32 = vsyncpa [#allocation10], 0 }
  0x19   :  { %34 = vsyncpa [#allocation10 + $0x1], 0 }
  0x1a   :  { %35 = vsyncpa [#allocation13], 0 }
  0x1b   :  { %36 = vsyncpa [#allocation16], 0 }
  0x1c   :  { %37 = vsyncpa [#allocation19], 0 }
  0x1d   :  { %38 = vsyncpa [#allocation22], 0 }
  0x1e   :  { %39 = vsyncpa [#allocation25], 0 }
  0x1f   :  { %40 = vsyncpa [#allocation28], 0 }
  0x20   :  { %41 = vsyncpa [#allocation5], 0 }
  0x21   :  { %43 = vsyncpa [#allocation5 + $0x1], 0 }
  0x22   :  { %44 = vsyncpa [#allocation32], 0 }
  0x23   :  { %46 = vsyncpa [#allocation32 + $0x1], 0 }
  0x24   :  { %47 = vsyncpa [#allocation35], 0 }
  0x25   :  { %49 = vsyncpa [#allocation35 + $0x1], 0  ;;  %s6884_s1 = smov 0   ;;  %s6886_s22 = smov 0  }
  0x26   :  { %s6888_s23 = smov 0   ;;  %s6890_s24 = smov 0  }
  0x27 LB: > { %8993 = sst [smem:[#allocation48_spill]] %s6729_s1  ;;  %s6743_s2 = smov [#allocation12]   ;;  %s6741_s24 = sphi %s6890_s24, %s9125_s24   ;;  %s6737_s23 = sphi %s6888_s23, %s9128_s23   ;;  %s6733_s22 = sphi %s6886_s22, %s9127_s22   ;;  %s6729_s1 = sphi %s6884_s1, %s9126_s1  }
  0x28   : > { %8994 = sst [smem:[#allocation49_spill]] %s6733_s22  ;;  %s558_s25 = sshll.u32 %s6743_s2, 4  ;;  %s6910_s25 = int_to_ptr.vmem [resolvable:$true] %s558_s25 }
  0x29   : > { %8995 = sst [smem:[#allocation50_spill]] %s6737_s23  ;;  %s6905_s3 = sadd.s32 4294967295, %s6741_s24  }
  0x2a   : > { %8996 = sst [smem:[#allocation51_spill]] %s6905_s3  ;;  %p4782_p0 = scmp.ge.s32.totalorder %s6741_s24, 1 }
  0x2b   : > { %p8889_p1 = scmp.eq.s32.totalorder %s6905_s3, 0  ;;  %p546_p2 = scmp.lt.s32.totalorder %s6741_s24, 3 }
  0x2c   : > { %s6744_s27 = smov [#allocation15]   ;;  %s6745_s29 = smov [#allocation18]  }
  0x2d   : > { %p6912_p3 = pnand %p4782_p0, %p546_p2  ;;  %s585_s28 = sshll.u32 %s6744_s27, 4  ;;  %s6925_s28 = int_to_ptr.vmem [resolvable:$true] %s585_s28 }
  0x2e   : > { %s609_s30 = sshll.u32 %s6745_s29, 4  ;;  %s9000_s5 = sld [smem:[#allocation75_spill]]  ;;  %s6927_s30 = int_to_ptr.vmem [resolvable:$true] %s609_s30 }
  0x2f   : > { %s8997_s26 = scalar_select %p6912_p3, 1, 0 }
  0x30   : > { %p5442_p5 = pneg %p6912_p3 }
  0x31   : > { %8998 = sst [smem:[#allocation52_spill]] %s8997_s26 }
  0x32   : > { %p6921_p6 = pnand %p5442_p5, %p8889_p1 }
  0x34   : > { %s8999_s4 = scalar_select %p6921_p6, 1, 0 }
  0x35   : > { %s6065_s2 = scalar_lea.hbm %s9000_s5, 512  ;;  %p6937_p8 = pneg %p6921_p6 }
  0x36   : > { %p6066_p7 = scmp.ne.s32.totalorder %s9000_s5, %s6065_s2  ;;  %p6072_p11 = scmp.lt.u32.totalorder %s6065_s2, %s9000_s5 }
  0x37   : > { %s9001_s27 = scalar_select %p6937_p8, 1, 0 }
  0x38   : > { %p6068_p9 = pnand %p6937_p8, %p6066_p7 }
  0x3a   : > { %p6069_p10 = pneg %p6068_p9 }
  0x3c   : > { %p6074_p12 = pnand %p6072_p11, %p6069_p10 }
  0x3e   : > { %6077 = shalt.err (!%p6074_p12)
}
  0x3f   : > { %s6078_s17 = scalar_lea.vmem %s6910_s25, 512  ;;  %p6086_p5 = scmp.lt.s32.totalorder %s6910_s25, %s6910_s25 }
  0x40   : > { %p6079_p13 = scmp.ne.s32.totalorder %s6910_s25, %s6078_s17  ;;  %p6087_p4 = scmp.lt.s32.totalorder %s6078_s17, %s6078_s17 }
  0x42   : > { %p6081_p0 = pnand %p6079_p13, %p6937_p8  ;;  %p6088_p7 = por %p6087_p4, %p6086_p5 }
  0x44   : > { %p6082_p2 = pneg %p6081_p0 }
  0x46   : > { %p6089_p9 = pnand %p6088_p7, %p6082_p2 }
  0x48   : > { %6092 = shalt.err (!%p6089_p9)
}
  0x49   : > { %s8888_s20 = smov 256   ;;  %s8891_s19 = smov 16  }
  0x4a   : > { %5445 = dma.hbm_to_vmem [thread:$0]  (!%p6921_p6), %s9000_s5, 512, %s6910_s25, [#allocation13], %s8888_s20, %s8888_s20, %s8891_s19  }
  0x4b   : > { %s9002_s7 = sld [smem:[#allocation77_spill]] }
  0x51   : > { %s6093_s17 = scalar_lea.hbm %s9002_s7, 64 }
  0x52   : > { %p6094_p4 = scmp.ne.s32.totalorder %s9002_s7, %s6093_s17  ;;  %p6100_p12 = scmp.lt.u32.totalorder %s6093_s17, %s9002_s7 }
  0x54   : > { %p6096_p10 = pnand %p6094_p4, %p6937_p8 }
  0x56   : > { %p6097_p11 = pneg %p6096_p10 }
  0x58   : > { %p6102_p13 = pnand %p6100_p12, %p6097_p11 }
  0x5a   : > { %6105 = shalt.err (!%p6102_p13)
}
  0x5b   : > { %s6106_s25 = scalar_lea.vmem %s6925_s28, 64  ;;  %p6114_p7 = scmp.lt.s32.totalorder %s6925_s28, %s6925_s28 }
  0x5c   : > { %p6107_p0 = scmp.ne.s32.totalorder %s6925_s28, %s6106_s25  ;;  %p6115_p9 = scmp.lt.s32.totalorder %s6106_s25, %s6106_s25 }
  0x5e   : > { %p6109_p2 = pnand %p6107_p0, %p6937_p8  ;;  %p6116_p4 = por %p6115_p9, %p6114_p7 }
  0x60   : > { %p6110_p5 = pneg %p6109_p2 }
  0x62   : > { %p6117_p10 = pnand %p6116_p4, %p6110_p5 }
  0x64   : > { %6120 = shalt.err (!%p6117_p10)
}
  0x65   : > { %5451 = dma.hbm_to_vmem [thread:$0]  (!%p6921_p6), %s9002_s7, 64, %s6925_s28, [#allocation16]  }
  0x66   : > { %s9003_s9 = sld [smem:[#allocation79_spill]] }
  0x6c   : > { %s6121_s0 = scalar_lea.hbm %s9003_s9, 32 }
  0x6d   : > { %p6122_p11 = scmp.ne.s32.totalorder %s9003_s9, %s6121_s0  ;;  %p6128_p0 = scmp.lt.u32.totalorder %s6121_s0, %s9003_s9 }
  0x6f   : > { %p6124_p12 = pnand %p6122_p11, %p6937_p8 }
  0x71   : > { %p6125_p13 = pneg %p6124_p12 }
  0x73   : > { %p6130_p2 = pnand %p6128_p0, %p6125_p13 }
  0x75   : > { %6133 = shalt.err (!%p6130_p2)
}
  0x76   : > { %s6134_s28 = scalar_lea.vmem %s6927_s30, 32  ;;  %p6142_p4 = scmp.lt.s32.totalorder %s6927_s30, %s6927_s30 }
  0x77   : > { %p6135_p5 = scmp.ne.s32.totalorder %s6927_s30, %s6134_s28  ;;  %p6143_p10 = scmp.lt.s32.totalorder %s6134_s28, %s6134_s28 }
  0x79   : > { %p6137_p7 = pnand %p6135_p5, %p6937_p8  ;;  %p6144_p11 = por %p6143_p10, %p6142_p4 }
  0x7b   : > { %p6138_p9 = pneg %p6137_p7 }
  0x7d   : > { %p6145_p12 = pnand %p6144_p11, %p6138_p9 }
  0x7f   : > { %6148 = shalt.err (!%p6145_p12)
}
  0x80   : > { %5457 = dma.hbm_to_vmem [thread:$0]  (!%p6921_p6), %s9003_s9, 32, %s6927_s30, [#allocation19]  }
  0x81   : > { %s6748_s16 = smov [#allocation21]   ;;  %s6749_s26 = smov [#allocation24]  }
  0x82   : > { %s632_s18 = sshll.u32 %s6748_s16, 4  ;;  %s658_s0 = sshll.u32 %s6749_s26, 4  ;;  %s633_s18 = int_to_ptr.vmem [resolvable:$true] %s632_s18  ;;  %s659_s0 = int_to_ptr.vmem [resolvable:$true] %s658_s0 }
  0x83   : > { %s9004_s11 = sld [smem:[#allocation80_spill]] }
  0x89   : > { %s6149_s29 = scalar_lea.hbm %s9004_s11, 2048 }
  0x8a   : > { %p6150_p13 = scmp.ne.s32.totalorder %s9004_s11, %s6149_s29  ;;  %p6156_p5 = scmp.lt.u32.totalorder %s6149_s29, %s9004_s11 }
  0x8c   : > { %p6152_p0 = pnand %p6150_p13, %p6937_p8 }
  0x8e   : > { %p6153_p2 = pneg %p6152_p0 }
  0x90   : > { %p6158_p7 = pnand %p6156_p5, %p6153_p2 }
  0x92   : > { %6161 = shalt.err (!%p6158_p7)
}
  0x93   : > { %s6162_s30 = scalar_lea.vmem %s633_s18, 2048  ;;  %p6170_p11 = scmp.lt.s32.totalorder %s633_s18, %s633_s18 }
  0x94   : > { %p6163_p9 = scmp.ne.s32.totalorder %s633_s18, %s6162_s30  ;;  %p6171_p12 = scmp.lt.s32.totalorder %s6162_s30, %s6162_s30 }
  0x96   : > { %p6165_p4 = pnand %p6163_p9, %p6937_p8  ;;  %p6172_p1 = por %p6171_p12, %p6170_p11 }
  0x98   : > { %p6166_p10 = pneg %p6165_p4 }
  0x9a   : > { %p6173_p3 = pnand %p6172_p1, %p6166_p10 }
  0x9c   : > { %6176 = shalt.err (!%p6173_p3)
}
  0x9d   : > { %s8894_s14 = smov 128   ;;  %s8896_s16 = smov 8  }
  0x9e   : > { %5463 = dma.hbm_to_vmem [thread:$0]  (!%p6921_p6), %s9004_s11, 2048, %s633_s18, [#allocation22], %s8894_s14, %s8894_s14, %s8896_s16  }
  0x9f   : > { %s9005_s13 = sld [smem:[#allocation81_spill]] }
  0xa5   : > { %s6177_s29 = scalar_lea.hbm %s9005_s13, 256 }
  0xa6   : > { %p6178_p1 = scmp.ne.s32.totalorder %s9005_s13, %s6177_s29  ;;  %p6184_p0 = scmp.lt.u32.totalorder %s6177_s29, %s9005_s13 }
  0xa8   : > { %p6180_p3 = pnand %p6178_p1, %p6937_p8 }
  0xaa   : > { %p6181_p13 = pneg %p6180_p3 }
  0xac   : > { %p6186_p2 = pnand %p6184_p0, %p6181_p13 }
  0xae   : > { %6189 = shalt.err (!%p6186_p2)
}
  0xaf   : > { %s6190_s20 = scalar_lea.vmem %s659_s0, 256  ;;  %p6198_p4 = scmp.lt.s32.totalorder %s659_s0, %s659_s0 }
  0xb0   : > { %p6191_p5 = scmp.ne.s32.totalorder %s659_s0, %s6190_s20  ;;  %p6199_p10 = scmp.lt.s32.totalorder %s6190_s20, %s6190_s20 }
  0xb2   : > { %p6193_p7 = pnand %p6191_p5, %p6937_p8  ;;  %p6200_p11 = por %p6199_p10, %p6198_p4 }
  0xb4   : > { %p6194_p9 = pneg %p6193_p7 }
  0xb6   : > { %p6201_p12 = pnand %p6200_p11, %p6194_p9 }
  0xb8   : > { %6204 = shalt.err (!%p6201_p12)
}
  0xb9   : > { %5469 = dma.hbm_to_vmem [thread:$0]  (!%p6921_p6), %s9005_s13, 256, %s659_s0, [#allocation25], %s8894_s14, %s8894_s14, %s8896_s16  }
  0xba   : > { %s6752_s21 = smov [#allocation27]   ;;  %s9006_s15 = sld [smem:[#allocation83_spill]] }
  0xbb   : > { %s682_s2 = sshll.u32 %s6752_s21, 4  ;;  %s683_s2 = int_to_ptr.vmem [resolvable:$true] %s682_s2 }
  0xc0   : > { %s6205_s28 = scalar_lea.hbm %s9006_s15, 1024 }
  0xc1   : > { %p6206_p1 = scmp.ne.s32.totalorder %s9006_s15, %s6205_s28  ;;  %p6212_p0 = scmp.lt.u32.totalorder %s6205_s28, %s9006_s15 }
  0xc3   : > { %p6208_p3 = pnand %p6206_p1, %p6937_p8 }
  0xc5   : > { %p6209_p13 = pneg %p6208_p3 }
  0xc7   : > { %p6214_p2 = pnand %p6212_p0, %p6209_p13 }
  0xc9   : > { %6217 = shalt.err (!%p6214_p2)
}
  0xca   : > { %s6218_s0 = scalar_lea.vmem %s683_s2, 1024  ;;  %p6226_p4 = scmp.lt.s32.totalorder %s683_s2, %s683_s2 }
  0xcb   : > { %p6219_p5 = scmp.ne.s32.totalorder %s683_s2, %s6218_s0  ;;  %p6227_p10 = scmp.lt.s32.totalorder %s6218_s0, %s6218_s0 }
  0xcd   : > { %p6221_p7 = pnand %p6219_p5, %p6937_p8  ;;  %p6228_p11 = por %p6227_p10, %p6226_p4 }
  0xcf   : > { %p6222_p9 = pneg %p6221_p7 }
  0xd1   : > { %p6229_p12 = pnand %p6228_p11, %p6222_p9 }
  0xd3   : > { %6232 = shalt.err (!%p6229_p12)
}
  0xd4   : > { %s8898_s18 = smov 64   ;;  %s8900_s19 = smov 4  }
  0xd5   : > { %5475 = dma.hbm_to_vmem [thread:$0]  (!%p6921_p6), %s9006_s15, 1024, %s683_s2, [#allocation28], %s8898_s18, %s8898_s18, %s8900_s19  }
  0xd6   : > { %s8893_s29 = sadd.s32 4294967294, %s6741_s24   ;;  %s7072_s17 = sadd.s32 1, %s6741_s24  }
  0xd7   : > { %9007 = sst [smem:[#allocation53_spill]] %s7072_s17  ;;  %s59_s28 = ssub.s32 %s6741_s24, %s7072_s17 }
  0xd8   : > { %s62_s25 = sadd.s32 1, %s6737_s23  ;;  %p60_p1 = scmp.eq.s32.totalorder %s59_s28, 0 }
  0xd9   : > { %p69_p3 = scmp.ne.s32.totalorder %s6737_s23, %s6733_s22  ;;  %p70_p13 = scmp.eq.s32.totalorder %s6741_s24, 0 }
  0xda   : > { %p75_p0 = scmp.ne.s32.totalorder %s6733_s22, %s6729_s1  ;;  %p9009_p5 = scmp.eq.s32.totalorder %s6905_s3, 0 }
  0xdb   : > { %s7083_s30 = scalar_select %p60_p1, %s6737_s23, %s62_s25  }
  0xdc   : > { %p71_p2 = por %p70_p13, %p69_p3  ;;  %p7087_p7 = por %p9009_p5, %p75_p0 }
  0xdd   : > { %9008 = sst [smem:[#allocation54_spill]] %s7083_s30  ;;  %p455_p9 = scmp.eq.s32.totalorder %s6905_s3, 1 }
  0xde   : > { %s9010_s2 = scalar_select %p7087_p7, 1, 0 }
  0xdf   : > { %p461_p4 = scmp.eq.s32.totalorder %s8893_s29, 1  ;;  %p5520_p10 = scmp.lt.s32.totalorder %s6741_s24, 2 }
  0xe0   : > { %9011 = sst [smem:[#allocation55_spill]] %s9010_s2  ;;  %s7096_s20 = sand.u32 1, %s6737_s23  }
  0xe1   : > { %p7098_p11 = por %p455_p9, %p69_p3  ;;  %p7102_p12 = por %p461_p4, %p75_p0 }
  0xe2   : > { %p7106_p1 = pnand %p5520_p10, %p71_p2  ;;  %s8905_s28 = sand.u32 1, %s6741_s24  }
  0xe3   : > { %s9012_s0 = scalar_select %p7098_p11, 1, 0 }
  0xe4   : > { %s9014_s26 = scalar_select %p7102_p12, 1, 0 }
  0xe5   : > { %9013 = sst [smem:[#allocation56_spill]] %s9012_s0  ;;  %s8902_s25 = sshll.u32 %s7096_s20, 1 }
  0xe6   : > { %9015 = sst [smem:[#allocation57_spill]] %s9014_s26  ;;  %s8903_s29 = sshll.u32 %s6741_s24, 5 }
  0xe7   : > { %s9016_s21 = scalar_select %p7106_p1, 1, 0 }
  0xe8   : > { %s733_s14 = scalar_lea.vmem [#allocation6], %s8902_s25  ;;  %s9017_s5 = sld [smem:[#allocation71_spill]] }
  0xe9   : > { %s740_s16 = sshll.u32 %s733_s14, 4  ;;  %s7126_s9 = scalar_lea.sflag [#allocation7], %s8905_s28  ;;  %s7122_s16 = int_to_ptr.vmem [resolvable:$true] %s740_s16 }
  0xea   : > { %p7132_p13 = pneg %p7106_p1 }
  0xec   : > { %s9018_s14 = scalar_select %p7132_p13, 1, 0 }
  0xee   : > { %s7120_s7 = scalar_lea.hbm %s9017_s5, %s8903_s29  ;;  %s6238_s25 = scalar_lea.hbm %s9017_s5, 64 }
  0xef   : > { %s6233_s11 = scalar_lea.hbm %s7120_s7, 32  ;;  %p6239_p5 = scmp.lt.u32.totalorder %s7120_s7, %s9017_s5 }
  0xf0   : > { %p6234_p3 = scmp.ne.s32.totalorder %s7120_s7, %s6233_s11  ;;  %p6240_p9 = scmp.lt.u32.totalorder %s6238_s25, %s6233_s11 }
  0xf1   : > { %p6242_p10 = scmp.lt.u32.totalorder %s6233_s11, %s7120_s7 }
  0xf2   : > { %p6236_p0 = pnand %p7132_p13, %p6234_p3  ;;  %p6241_p4 = por %p6240_p9, %p6239_p5 }
  0xf4   : > { %p6237_p2 = pneg %p6236_p0  ;;  %p6243_p12 = por %p6242_p10, %p6241_p4 }
  0xf6   : > { %p6244_p11 = pnand %p6243_p12, %p6237_p2 }
  0xf8   : > { %6247 = shalt.err (!%p6244_p11)
}
  0xf9   : > { %s6248_s28 = scalar_lea.vmem %s7122_s16, 32  ;;  %s6755_s18 = smov [#allocation6]  }
  0xfa   : > { %p6249_p3 = scmp.ne.s32.totalorder %s7122_s16, %s6248_s28  ;;  %s6253_s19 = sshll.u32 %s6755_s18, 4  ;;  %s6254_s19 = int_to_ptr.vmem [resolvable:$false] %s6253_s19 }
  0xfb   : > { %s6255_s13 = scalar_lea.vmem %s6254_s19, 64  ;;  %p6256_p6 = scmp.lt.s32.totalorder %s7122_s16, %s6254_s19 }
  0xfc   : > { %p6251_p0 = pnand %p6249_p3, %p7132_p13  ;;  %p6257_p8 = scmp.lt.s32.totalorder %s6255_s13, %s6248_s28 }
  0xfe   : > { %p6252_p7 = pneg %p6251_p0  ;;  %p6258_p5 = por %p6257_p8, %p6256_p6 }
 0x100   : > { %p6259_p9 = pnand %p6258_p5, %p6252_p7 }
 0x102   : > { %6262 = shalt.err (!%p6259_p9)
}
 0x103   : > { %s8921_s11 = smov 1   ;;  %s9019_s29 = smov 16  }
 0x104   : > { %5485 = dma.hbm_to_vmem [thread:$0]  (!%p7106_p1), %s7120_s7, 32, %s7122_s16, %s7126_s9, %s9019_s29, %s9019_s29, %s8921_s11  }
 0x105   : > { %s9020_s25 = sshll.u32 %s6741_s24, 5  ;;  %s9021_s19 = sld [smem:[#allocation72_spill]] }
 0x106   : > { %s9022_s5 = sshll.u32 %s7096_s20, 1  ;;  %s4806_s23 = sshll.u32 %s7096_s20, 3 }
 0x107   : > { %s754_s15 = scalar_lea.vmem [#allocation8], %s9022_s5  ;;  %s5072_s17 = sshll.u32 %s6741_s24, 7 }
 0x108   : > { %s761_s30 = sshll.u32 %s754_s15, 4  ;;  %s9023_s0 = sld [smem:[#allocation73_spill]]  ;;  %s7168_s30 = int_to_ptr.vmem [resolvable:$true] %s761_s30 }
 0x109   : > { %s775_s7 = scalar_lea.vmem [#allocation9], %s4806_s23  ;;  %s9024_s15 = sand.u32 1, %s6741_s24  }
 0x10a   : > { %s782_s16 = sshll.u32 %s775_s7, 4  ;;  %s7183_s28 = scalar_lea.sflag [#allocation10], %s9024_s15  ;;  %s7177_s16 = int_to_ptr.vmem [resolvable:$true] %s782_s16 }
 0x10b   : > { %s7164_s13 = scalar_lea.hbm %s9021_s19, %s9020_s25  ;;  %s6757_s25 = smov [#allocation14]  }
 0x10c   : > { %s7179_s5 = sshll.u32 %s6757_s25, 4  ;;  %9025 = sst [smem:[#allocation58_spill]] %s7183_s28  ;;  %s572_s5 = int_to_ptr.vmem [resolvable:$true] %s7179_s5 }
 0x10e   : > { %s7175_s3 = scalar_lea.hbm %s9023_s0, %s5072_s17  ;;  %s6268_s26 = scalar_lea.hbm %s9023_s0, 256 }
 0x10f   : > { %s6263_s18 = scalar_lea.hbm %s7175_s3, 128  ;;  %p6269_p11 = scmp.lt.u32.totalorder %s7175_s3, %s9023_s0 }
 0x110   : > { %p6264_p6 = scmp.ne.s32.totalorder %s7175_s3, %s6263_s18  ;;  %p6270_p12 = scmp.lt.u32.totalorder %s6268_s26, %s6263_s18 }
 0x111   : > { %p6272_p4 = scmp.lt.u32.totalorder %s6263_s18, %s7175_s3 }
 0x112   : > { %p6266_p8 = pnand %p6264_p6, %p7132_p13  ;;  %p6271_p2 = por %p6270_p12, %p6269_p11 }
 0x114   : > { %p6267_p7 = pneg %p6266_p8  ;;  %p6273_p10 = por %p6272_p4, %p6271_p2 }
 0x116   : > { %p6274_p3 = pnand %p6273_p10, %p6267_p7 }
 0x118   : > { %6277 = shalt.err (!%p6274_p3)
}
 0x119   : > { %s6278_s7 = scalar_lea.vmem %s7177_s16, 128  ;;  %s6758_s25 = smov [#allocation9]  }
 0x11a   : > { %p6279_p0 = scmp.ne.s32.totalorder %s7177_s16, %s6278_s7  ;;  %s6283_s15 = sshll.u32 %s6758_s25, 4  ;;  %s6284_s15 = int_to_ptr.vmem [resolvable:$false] %s6283_s15 }
 0x11b   : > { %s6285_s11 = scalar_lea.vmem %s6284_s15, 256  ;;  %p6286_p6 = scmp.lt.s32.totalorder %s7177_s16, %s6284_s15 }
 0x11c   : > { %p6281_p5 = pnand %p6279_p0, %p7132_p13  ;;  %p6287_p8 = scmp.lt.s32.totalorder %s6285_s11, %s6278_s7 }
 0x11e   : > { %p6282_p9 = pneg %p6281_p5  ;;  %p6288_p11 = por %p6287_p8, %p6286_p6 }
 0x120   : > { %p6289_p12 = pnand %p6288_p11, %p6282_p9 }
 0x122   : > { %6292 = shalt.err (!%p6289_p12)
}
 0x123   : > { %s9026_s18 = smov 4   ;;  %s9027_s1 = smov 64  }
 0x124   : > { %5491 = dma.hbm_to_vmem [thread:$0]  (!%p7106_p1), %s7175_s3, 128, %s7177_s16, %s7183_s28, %s9027_s1, %s9027_s1, %s9026_s18  }
 0x125   : > { %s9028_s6 = sld [smem:[#allocation76_spill]]  ;;  %p9029_p2 = scmp.ne.s32.totalorder %s9001_s27, 0 }
 0x12b   : > { %s6293_s23 = scalar_lea.hbm %s9028_s6, 4096 }
 0x12c   : > { %p6294_p7 = scmp.ne.s32.totalorder %s9028_s6, %s6293_s23  ;;  %p6300_p3 = scmp.lt.u32.totalorder %s6293_s23, %s9028_s6 }
 0x12e   : > { %p6296_p4 = pnand %p6294_p7, %p9029_p2 }
 0x130   : > { %p6297_p10 = pneg %p6296_p4 }
 0x132   : > { %p6302_p0 = pnand %p6300_p3, %p6297_p10 }
 0x134   : > { %6305 = shalt.err (!%p6302_p0)
}
 0x135   : > { %s6306_s0 = scalar_lea.vmem %s572_s5, 4096  ;;  %p6314_p8 = scmp.lt.s32.totalorder %s572_s5, %s572_s5 }
 0x136   : > { %p6307_p5 = scmp.ne.s32.totalorder %s572_s5, %s6306_s0  ;;  %p6315_p11 = scmp.lt.s32.totalorder %s6306_s0, %s6306_s0 }
 0x138   : > { %p6309_p9 = pnand %p6307_p5, %p9029_p2  ;;  %p6316_p12 = por %p6315_p11, %p6314_p8 }
 0x13a   : > { %p6310_p6 = pneg %p6309_p9 }
 0x13c   : > { %p6317_p1 = pnand %p6316_p12, %p6310_p6 }
 0x13e   : > { %6320 = shalt.err (!%p6317_p1)
}
 0x13f   : > { %p9030_p7 = scmp.ne.s32.totalorder %s8999_s4, 0  ;;  %s9031_s3 = smov 256  }
 0x140   : > { %s6759_s26 = smov [#allocation17]   ;;  %s6760_s7 = smov [#allocation20]  }
 0x141   : > { %5448 = dma.hbm_to_vmem [thread:$0]  (!%p9030_p7), %s9028_s6, 4096, %s572_s5, [#allocation13], %s9031_s3, %s9031_s3, %s9019_s29  }
 0x142   : > { %s595_s23 = sshll.u32 %s6759_s26, 4  ;;  %s619_s25 = sshll.u32 %s6760_s7, 4  ;;  %s596_s23 = int_to_ptr.vmem [resolvable:$true] %s595_s23  ;;  %s620_s25 = int_to_ptr.vmem [resolvable:$true] %s619_s25 }
 0x143   : > { %s9032_s8 = sld [smem:[#allocation78_spill]] }
 0x149   : > { %s6321_s11 = scalar_lea.hbm %s9032_s8, 512 }
 0x14a   : > { %p6322_p1 = scmp.ne.s32.totalorder %s9032_s8, %s6321_s11  ;;  %p6328_p3 = scmp.lt.u32.totalorder %s6321_s11, %s9032_s8 }
 0x14c   : > { %p6324_p4 = pnand %p6322_p1, %p9029_p2 }
 0x14e   : > { %p6325_p10 = pneg %p6324_p4 }
 0x150   : > { %p6330_p0 = pnand %p6328_p3, %p6325_p10 }
 0x152   : > { %6333 = shalt.err (!%p6330_p0)
}
 0x153   : > { %s6334_s5 = scalar_lea.vmem %s596_s23, 512  ;;  %p6342_p8 = scmp.lt.s32.totalorder %s596_s23, %s596_s23 }
 0x154   : > { %p6335_p5 = scmp.ne.s32.totalorder %s596_s23, %s6334_s5  ;;  %p6343_p11 = scmp.lt.s32.totalorder %s6334_s5, %s6334_s5 }
 0x156   : > { %p6337_p9 = pnand %p6335_p5, %p9029_p2  ;;  %p6344_p12 = por %p6343_p11, %p6342_p8 }
 0x158   : > { %p6338_p6 = pneg %p6337_p9 }
 0x15a   : > { %p6345_p13 = pnand %p6344_p12, %p6338_p6 }
 0x15c   : > { %6348 = shalt.err (!%p6345_p13)
}
 0x15d   : > { %s9033_s22 = smov 8   ;;  %s9034_s2 = smov 128  }
 0x15e   : > { %5454 = dma.hbm_to_vmem [thread:$0]  (!%p9030_p7), %s9032_s8, 512, %s596_s23, [#allocation16], %s9034_s2, %s9034_s2, %s9033_s22  }
 0x15f   : > { %s6349_s7 = scalar_lea.hbm %s8865_s10, 1024 }
 0x160   : > { %p6350_p1 = scmp.ne.s32.totalorder %s8865_s10, %s6349_s7  ;;  %p6356_p10 = scmp.lt.u32.totalorder %s6349_s7, %s8865_s10 }
 0x162   : > { %p6352_p13 = pnand %p6350_p1, %p9029_p2 }
 0x164   : > { %p6353_p4 = pneg %p6352_p13 }
 0x166   : > { %p6358_p3 = pnand %p6356_p10, %p6353_p4 }
 0x168   : > { %6361 = shalt.err (!%p6358_p3)
}
 0x169   : > { %s6362_s5 = scalar_lea.vmem %s620_s25, 1024  ;;  %p6370_p6 = scmp.lt.s32.totalorder %s620_s25, %s620_s25 }
 0x16a   : > { %p6363_p0 = scmp.ne.s32.totalorder %s620_s25, %s6362_s5  ;;  %p6371_p8 = scmp.lt.s32.totalorder %s6362_s5, %s6362_s5 }
 0x16c   : > { %p6365_p5 = pnand %p6363_p0, %p9029_p2  ;;  %p6372_p11 = por %p6371_p8, %p6370_p6 }
 0x16e   : > { %p6366_p9 = pneg %p6365_p5 }
 0x170   : > { %p6373_p12 = pnand %p6372_p11, %p6366_p9 }
 0x172   : > { %6376 = shalt.err (!%p6373_p12)
}
 0x173   : > { %5460 = dma.hbm_to_vmem [thread:$0]  (!%p9030_p7), %s8865_s10, 1024, %s620_s25, [#allocation19], %s9027_s1, %s9027_s1, %s9026_s18  }
 0x174   : > { %s6761_s3 = smov [#allocation23]   ;;  %s6762_s26 = smov [#allocation26]  }
 0x175   : > { %s645_s17 = sshll.u32 %s6761_s3, 4  ;;  %s672_s7 = sshll.u32 %s6762_s26, 4  ;;  %s646_s17 = int_to_ptr.vmem [resolvable:$true] %s645_s17  ;;  %s673_s7 = int_to_ptr.vmem [resolvable:$true] %s672_s7 }
 0x176   : > { %s6377_s11 = scalar_lea.hbm %s8867_s12, 512 }
 0x177   : > { %p6378_p1 = scmp.ne.s32.totalorder %s8867_s12, %s6377_s11  ;;  %p6384_p10 = scmp.lt.u32.totalorder %s6377_s11, %s8867_s12 }
 0x179   : > { %p6380_p13 = pnand %p6378_p1, %p9029_p2 }
 0x17b   : > { %p6381_p4 = pneg %p6380_p13 }
 0x17d   : > { %p6386_p3 = pnand %p6384_p10, %p6381_p4 }
 0x17f   : > { %6389 = shalt.err (!%p6386_p3)
}
 0x180   : > { %s6390_s25 = scalar_lea.vmem %s646_s17, 512  ;;  %p6398_p6 = scmp.lt.s32.totalorder %s646_s17, %s646_s17 }
 0x181   : > { %p6391_p0 = scmp.ne.s32.totalorder %s646_s17, %s6390_s25  ;;  %p6399_p8 = scmp.lt.s32.totalorder %s6390_s25, %s6390_s25 }
 0x183   : > { %p6393_p5 = pnand %p6391_p0, %p9029_p2  ;;  %p6400_p11 = por %p6399_p8, %p6398_p6 }
 0x185   : > { %p6394_p9 = pneg %p6393_p5 }
 0x187   : > { %p6401_p12 = pnand %p6400_p11, %p6394_p9 }
 0x189   : > { %6404 = shalt.err (!%p6401_p12)
}
 0x18a   : > { %5466 = dma.hbm_to_vmem [thread:$0]  (!%p9030_p7), %s8867_s12, 512, %s646_s17, [#allocation22], %s9034_s2, %s9034_s2, %s9033_s22  }
 0x18b   : > { %s9035_s15 = sld [smem:[#allocation82_spill]] }
 0x191   : > { %s6405_s0 = scalar_lea.hbm %s9035_s15, 32 }
 0x192   : > { %p6406_p1 = scmp.ne.s32.totalorder %s9035_s15, %s6405_s0  ;;  %p6412_p10 = scmp.lt.u32.totalorder %s6405_s0, %s9035_s15 }
 0x194   : > { %p6408_p13 = pnand %p6406_p1, %p9029_p2 }
 0x196   : > { %p6409_p4 = pneg %p6408_p13 }
 0x198   : > { %p6414_p3 = pnand %p6412_p10, %p6409_p4 }
 0x19a   : > { %6417 = shalt.err (!%p6414_p3)
}
 0x19b   : > { %s6418_s25 = scalar_lea.vmem %s673_s7, 32  ;;  %p6426_p6 = scmp.lt.s32.totalorder %s673_s7, %s673_s7 }
 0x19c   : > { %p6419_p0 = scmp.ne.s32.totalorder %s673_s7, %s6418_s25  ;;  %p6427_p8 = scmp.lt.s32.totalorder %s6418_s25, %s6418_s25 }
 0x19e   : > { %p6421_p5 = pnand %p6419_p0, %p9029_p2  ;;  %p6428_p11 = por %p6427_p8, %p6426_p6 }
 0x1a0   : > { %p6422_p9 = pneg %p6421_p5 }
 0x1a2   : > { %p6429_p12 = pnand %p6428_p11, %p6422_p9 }
 0x1a4   : > { %6432 = shalt.err (!%p6429_p12)
}
 0x1a5   : > { %5472 = dma.hbm_to_vmem [thread:$0]  (!%p9030_p7), %s9035_s15, 32, %s673_s7, [#allocation25]  }
 0x1a6   : > { %s6763_s28 = smov [#allocation29]   ;;  %s4796_s26 = sshll.u32 %s7096_s20, 7 }
 0x1a7   : > { %s696_s3 = sshll.u32 %s6763_s28, 4  ;;  %s9036_s16 = sld [smem:[#allocation84_spill]]  ;;  %s697_s3 = int_to_ptr.vmem [resolvable:$true] %s696_s3 }
 0x1ad   : > { %s6433_s5 = scalar_lea.hbm %s9036_s16, 16 }
 0x1ae   : > { %p6434_p1 = scmp.ne.s32.totalorder %s9036_s16, %s6433_s5  ;;  %p6440_p10 = scmp.lt.u32.totalorder %s6433_s5, %s9036_s16 }
 0x1b0   : > { %p6436_p13 = pnand %p6434_p1, %p9029_p2 }
 0x1b2   : > { %p6437_p4 = pneg %p6436_p13 }
 0x1b4   : > { %p6442_p3 = pnand %p6440_p10, %p6437_p4 }
 0x1b6   : > { %6445 = shalt.err (!%p6442_p3)
}
 0x1b7   : > { %s6446_s7 = scalar_lea.vmem %s697_s3, 16  ;;  %s6453_s6 = scalar_lea.vmem %s697_s3, 32 }
 0x1b8   : > { %p6447_p0 = scmp.ne.s32.totalorder %s697_s3, %s6446_s7  ;;  %p6454_p6 = scmp.lt.s32.totalorder %s697_s3, %s697_s3 }
 0x1b9   : > { %p6455_p8 = scmp.lt.s32.totalorder %s6453_s6, %s6446_s7 }
 0x1ba   : > { %p6449_p5 = pnand %p6447_p0, %p9029_p2 }
 0x1bb   : > { %p6456_p11 = por %p6455_p8, %p6454_p6 }
 0x1bc   : > { %p6450_p9 = pneg %p6449_p5 }
 0x1be   : > { %p6457_p12 = pnand %p6456_p11, %p6450_p9 }
 0x1c0   : > { %6460 = shalt.err (!%p6457_p12)
}
 0x1c1   : > { %5478 = dma.hbm_to_vmem [thread:$0]  (!%p9030_p7), %s9036_s16, 16, %s697_s3, [#allocation28]  }
 0x1c2   : > { %s5069_s8 = sshll.u32 %s6741_s24, 11  ;;  %s9037_s5 = sld [smem:[#allocation70_spill]] }
 0x1c3   : > { %s711_s25 = scalar_lea.vmem [#allocation3], %s4796_s26  ;;  %s4809_s17 = sshll.u32 %s7096_s20, 4 }
 0x1c4   : > { %s719_s4 = sshll.u32 %s711_s25, 4  ;;  %s708_s7 = scalar_lea.sflag [#allocation4], %s7096_s20  ;;  %s7338_s4 = int_to_ptr.vmem [resolvable:$true] %s719_s4 }
 0x1c5   : > { %p9038_p1 = scmp.ne.s32.totalorder %s9018_s14, 0 }
 0x1c8   : > { %s7336_s23 = scalar_lea.hbm %s9037_s5, %s5069_s8  ;;  %s6466_s0 = scalar_lea.hbm %s9037_s5, 4096 }
 0x1c9   : > { %s6461_s6 = scalar_lea.hbm %s7336_s23, 2048  ;;  %p6467_p4 = scmp.lt.u32.totalorder %s7336_s23, %s9037_s5 }
 0x1ca   : > { %p6462_p2 = scmp.ne.s32.totalorder %s7336_s23, %s6461_s6  ;;  %p6468_p10 = scmp.lt.u32.totalorder %s6466_s0, %s6461_s6 }
 0x1cb   : > { %p6470_p0 = scmp.lt.u32.totalorder %s6461_s6, %s7336_s23 }
 0x1cc   : > { %p6464_p7 = pnand %p6462_p2, %p9038_p1  ;;  %p6469_p3 = por %p6468_p10, %p6467_p4 }
 0x1ce   : > { %p6465_p13 = pneg %p6464_p7  ;;  %p6471_p5 = por %p6470_p0, %p6469_p3 }
 0x1d0   : > { %p6472_p9 = pnand %p6471_p5, %p6465_p13 }
 0x1d2   : > { %6475 = shalt.err (!%p6472_p9)
}
 0x1d3   : > { %s6476_s26 = scalar_lea.vmem %s7338_s4, 2048  ;;  %s6764_s11 = smov [#allocation3]  }
 0x1d4   : > { %p6477_p6 = scmp.ne.s32.totalorder %s7338_s4, %s6476_s26  ;;  %s6481_s25 = sshll.u32 %s6764_s11, 4  ;;  %s6482_s25 = int_to_ptr.vmem [resolvable:$false] %s6481_s25 }
 0x1d5   : > { %s6483_s3 = scalar_lea.vmem %s6482_s25, 4096  ;;  %p6484_p12 = scmp.lt.s32.totalorder %s7338_s4, %s6482_s25 }
 0x1d6   : > { %p6479_p8 = pnand %p6477_p6, %p9038_p1  ;;  %p6485_p2 = scmp.lt.s32.totalorder %s6483_s3, %s6476_s26 }
 0x1d8   : > { %p6480_p11 = pneg %p6479_p8  ;;  %p6486_p7 = por %p6485_p2, %p6484_p12 }
 0x1da   : > { %p6487_p4 = pnand %p6486_p7, %p6480_p11 }
 0x1dc   : > { %6490 = shalt.err (!%p6487_p4)
}
 0x1dd   : > { %p9039_p13 = scmp.ne.s32.totalorder %s9016_s21, 0  ;;  %s6491_s6 = scalar_lea.hbm %s7164_s13, 32 }
 0x1de   : > { %p6492_p10 = scmp.ne.s32.totalorder %s7164_s13, %s6491_s6  ;;  %s6496_s8 = scalar_lea.hbm %s9021_s19, 64 }
 0x1df   : > { %5482 = dma.hbm_to_vmem [thread:$0]  (!%p9039_p13), %s7336_s23, 2048, %s7338_s4, %s708_s7, %s9027_s1, %s9027_s1, %s9026_s18  }
 0x1e0   : > { %p6494_p3 = pnand %p6492_p10, %p9038_p1  ;;  %p6497_p5 = scmp.lt.u32.totalorder %s7164_s13, %s9021_s19 }
 0x1e1   : > { %p6498_p9 = scmp.lt.u32.totalorder %s6496_s8, %s6491_s6  ;;  %p6500_p8 = scmp.lt.u32.totalorder %s6491_s6, %s7164_s13 }
 0x1e2   : > { %p6495_p0 = pneg %p6494_p3 }
 0x1e3   : > { %p6499_p6 = por %p6498_p9, %p6497_p5 }
 0x1e5   : > { %p6501_p11 = por %p6500_p8, %p6499_p6 }
 0x1e7   : > { %p6502_p12 = pnand %p6501_p11, %p6495_p0 }
 0x1e9   : > { %6505 = shalt.err (!%p6502_p12)
}
 0x1ea   : > { %s6506_s18 = scalar_lea.vmem %s7168_s30, 32  ;;  %s6765_s1 = smov [#allocation8]  }
 0x1eb   : > { %p6507_p2 = scmp.ne.s32.totalorder %s7168_s30, %s6506_s18  ;;  %s6511_s23 = sshll.u32 %s6765_s1, 4  ;;  %s6512_s23 = int_to_ptr.vmem [resolvable:$false] %s6511_s23 }
 0x1ec   : > { %s6513_s4 = scalar_lea.vmem %s6512_s23, 64  ;;  %p6514_p10 = scmp.lt.s32.totalorder %s7168_s30, %s6512_s23 }
 0x1ed   : > { %p6509_p7 = pnand %p6507_p2, %p9038_p1  ;;  %p6515_p3 = scmp.lt.s32.totalorder %s6513_s4, %s6506_s18 }
 0x1ef   : > { %p6510_p4 = pneg %p6509_p7  ;;  %p6516_p5 = por %p6515_p3, %p6514_p10 }
 0x1f1   : > { %p6517_p9 = pnand %p6516_p5, %p6510_p4 }
 0x1f3   : > { %6520 = shalt.err (!%p6517_p9)
}
 0x1f4   : > { %s9040_s7 = smov 1   ;;  %s5073_s11 = sshll.u32 %s6741_s24, 8 }
 0x1f5   : > { %5488 = dma.hbm_to_vmem [thread:$0]  (!%p9039_p13), %s7164_s13, 32, %s7168_s30, %s7126_s9, %s9019_s29, %s9019_s29, %s9040_s7  }
 0x1f6   : > { %s9041_s6 = sld [smem:[#allocation74_spill]]  ;;  %s796_s0 = scalar_lea.vmem [#allocation11], %s4809_s17 }
 0x1f7   : > { %s803_s8 = sshll.u32 %s796_s0, 4  ;;  %s7401_s8 = int_to_ptr.vmem [resolvable:$true] %s803_s8 }
 0x1fc   : > { %s7397_s28 = scalar_lea.hbm %s9041_s6, %s5073_s11  ;;  %s6526_s29 = scalar_lea.hbm %s9041_s6, 512 }
 0x1fd   : > { %s6521_s27 = scalar_lea.hbm %s7397_s28, 256  ;;  %p6527_p11 = scmp.lt.u32.totalorder %s7397_s28, %s9041_s6 }
 0x1fe   : > { %p6522_p0 = scmp.ne.s32.totalorder %s7397_s28, %s6521_s27  ;;  %p6528_p12 = scmp.lt.u32.totalorder %s6526_s29, %s6521_s27 }
 0x1ff   : > { %p6530_p7 = scmp.lt.u32.totalorder %s6521_s27, %s7397_s28 }
 0x200   : > { %p6524_p6 = pnand %p6522_p0, %p9038_p1  ;;  %p6529_p2 = por %p6528_p12, %p6527_p11 }
 0x202   : > { %p6525_p8 = pneg %p6524_p6  ;;  %p6531_p4 = por %p6530_p7, %p6529_p2 }
 0x204   : > { %p6532_p10 = pnand %p6531_p4, %p6525_p8 }
 0x206   : > { %6535 = shalt.err (!%p6532_p10)
}
 0x207   : > { %s6536_s20 = scalar_lea.vmem %s7401_s8, 256  ;;  %s6766_s17 = smov [#allocation11]  }
 0x208   : > { %p6537_p3 = scmp.ne.s32.totalorder %s7401_s8, %s6536_s20  ;;  %s6541_s18 = sshll.u32 %s6766_s17, 4  ;;  %s6542_s18 = int_to_ptr.vmem [resolvable:$false] %s6541_s18 }
 0x209   : > { %s6543_s1 = scalar_lea.vmem %s6542_s18, 512  ;;  %p6544_p0 = scmp.lt.s32.totalorder %s7401_s8, %s6542_s18 }
 0x20a   : > { %p6539_p5 = pnand %p6537_p3, %p9038_p1  ;;  %p6545_p6 = scmp.lt.s32.totalorder %s6543_s1, %s6536_s20 }
 0x20c   : > { %p6540_p9 = pneg %p6539_p5  ;;  %p6546_p11 = por %p6545_p6, %p6544_p0 }
 0x20e   : > { %p6547_p12 = pnand %p6546_p11, %p6540_p9 }
 0x210   : > { %6550 = shalt.err (!%p6547_p12)
}
 0x211   : > { %s9042_s23 = sld [smem:[#allocation58_spill]]  ;;  %s9043_s14 = sld [smem:[#allocation52_spill]] }
 0x217   : > { %5494 = dma.hbm_to_vmem [thread:$0]  (!%p9039_p13), %s7397_s28, 256, %s7401_s8, %s9042_s23, %s9034_s2, %s9034_s2, %s9033_s22  }
 0x218   : > { %p9044_p1 = scmp.ne.s32.totalorder %s9043_s14, 0 }
 0x21a   : > { %815 = sbr.rel (%p9044_p1) target bundleno = 5175 (0x1437), region = 88 }
 0x221   : > { %s9045_s4 = sld [smem:[#allocation49_spill]]  ;;  %s9046_s7 = sld [smem:[#allocation55_spill]] }
 0x227   : > { %s7431_s11 = sand.u32 1, %s9045_s4   ;;  %p9047_p8 = scmp.ne.s32.totalorder %s9046_s7, 0 }
 0x228   : > { %s4813_s25 = sshll.u32 %s7431_s11, 7  ;;  %s818_s3 = scalar_lea.sflag [#allocation4], %s7431_s11 }
 0x229   : > { %s7435_s0 = scalar_lea.vmem [#allocation3], %s4813_s25 }
 0x22a   : > { %6680 = dma.done.wait (%p9047_p8), %s818_s3, 2048  }
 0x22b   : > { %6682 = vsyncadd (%p9047_p8), %s818_s3, 4294965248  ;;  %s9048_s21 = sld [smem:[#allocation51_spill]]  ;;  %s7445_s2 = sshll.u32 %s7431_s11, 1 }
 0x22c   : > { %s7449_s8 = scalar_lea.vmem [#allocation6], %s7445_s2 }
 0x231   : > { %s7442_s22 = sand.u32 1, %s9048_s21  }
 0x232   : > { %s827_s28 = scalar_lea.sflag [#allocation7], %s7442_s22 }
 0x233   : > { %6684 = dma.done.wait (%p9047_p8), %s827_s28, 64  }
 0x234   : > { %6686 = vsyncadd (%p9047_p8), %s827_s28, 4294967232  ;;  %s4816_s27 = sshll.u32 %s7431_s11, 3  ;;  %s839_s9 = scalar_lea.vmem [#allocation8], %s7445_s2 }
 0x235   : > { %s845_s30 = scalar_lea.sflag [#allocation10], %s7442_s22  ;;  %s7458_s29 = scalar_lea.vmem [#allocation9], %s4816_s27 }
 0x236   : > { %6688 = dma.done.wait (%p9047_p8), %s845_s30, 384  }
 0x237   : > { %6690 = vsyncadd (%p9047_p8), %s845_s30, 4294966912  ;;  %s7465_s13 = sshll.u32 %s7431_s11, 4  ;;  %p9049_p13 = scmp.eq.s32.totalorder %s9048_s21, 0 }
 0x238   : > { %s857_s26 = scalar_lea.vmem [#allocation11], %s7465_s13 }
 0x239   : > { %6692 = dma.done.wait (%p9049_p13), [#allocation13], 4608   ;;  %p9050_p2 = pmov %p9049_p13 }
 0x23b   : > { %6694 = vsyncadd (%p9050_p2), [#allocation13], 4294962688  ;;  %p9051_p7 = pmov %p9050_p2 }
 0x23c   : > { %p9052_p4 = pmov %p9050_p2 }
 0x23d   : > { %6696 = dma.done.wait (%p9051_p7), [#allocation16], 576  }
 0x23e   : > { %6698 = vsyncadd (%p9052_p4), [#allocation16], 4294966720  ;;  %p9053_p10 = pmov %p9050_p2 }
 0x23f   : > { %p9054_p3 = pmov %p9050_p2 }
 0x240   : > { %6700 = dma.done.wait (%p9053_p10), [#allocation19], 1056  }
 0x241   : > { %6702 = vsyncadd (%p9054_p3), [#allocation19], 4294966240  ;;  %p9055_p5 = pmov %p9050_p2 }
 0x242   : > { %p9056_p9 = pmov %p9050_p2 }
 0x243   : > { %6704 = dma.done.wait (%p9055_p5), [#allocation22], 2560  }
 0x244   : > { %6706 = vsyncadd (%p9056_p9), [#allocation22], 4294964736  ;;  %p9057_p0 = pmov %p9050_p2 }
 0x246   : > { %6708 = dma.done.wait (%p9057_p0), [#allocation25], 288   ;;  %p9058_p6 = pmov %p9057_p0 }
 0x247   : > { %p9059_p11 = pmov %p9057_p0 }
 0x248   : > { %6710 = vsyncadd (%p9058_p6), [#allocation25], 4294967008 }
 0x249   : > { %6712 = dma.done.wait (%p9059_p11), [#allocation28], 1040   ;;  %p9060_p12 = pmov %p9057_p0 }
 0x24a   : > { %v8931_v0 = vmov 0.0   ;;  %vm1045_vm0 = vcmask 1040384   ;;  %v1040_v1 = vld [vmem:[%s7449_s8 + $0x1] sm:$0x1]  ;;  %v7496_v2 = vld [vmem:[%s7449_s8] sm:$0x1] }
 0x24b   : > { %6714 = vsyncadd (%p9060_p12), [#allocation28], 4294966256  ;;  %5188 = vmatprep.subr.bf16.mxu1 %v8931_v0  ;;  %5168 = vmatprep.subr.bf16.mxu0 %v8931_v0  ;;  %v1049_v3 = vsel %vm1045_vm0, %v1040_v1, 0.0  ;;  %v5595_v4 = vld [vmem:[%s7435_s0 + $0x40] sm:$0xff]   ;;  %v1046_v6 = vsel %vm1045_vm0, %v7496_v2, 0.0  ;;  %v5597_v7 = vld [vmem:[%s7435_s0 + $0x48] sm:$0xff]  }
 0x24c   : > { %v5596_v5 = vld [vmem:[%s7435_s0] sm:$0xff]   ;;  %1050 = vadd.xlane.f32.xlu0 %v1049_v3  ;;  %5189 = vmatpush3.bf16.msra.mxu1 %v5595_v4  ;;  %v5598_v8 = vld [vmem:[%s7435_s0 + $0x8] sm:$0xff]   ;;  %v5599_v9 = vld [vmem:[%s7435_s0 + $0x50] sm:$0xff]   ;;  %vm6768_vm1 = vmmov 0   ;;  %v8933_v35 = vmov 0   ;;  %vm1380_vm2 = vcmask 130048  }
 0x24d   : > { %5169 = vmatpush3.bf16.msra.mxu0 %v5596_v5  ;;  %5190 = vmatprep.subr.bf16.mxu1 %v8931_v0  ;;  %v5600_v10 = vld [vmem:[%s7435_s0 + $0x10] sm:$0xff]   ;;  %v5601_v11 = vld [vmem:[%s7435_s0 + $0x58] sm:$0xff]   ;;  %v5603_v13 = vld [vmem:[%s7435_s0 + $0x60] sm:$0xff]   ;;  %vm1259_vm3 = vcmask 1041409   ;;  %vm1282_vm4 = vcmask 261120   ;;  %vm2653_vm13 = vcmask 1042434  }
 0x24e   : > { %5170 = vmatprep.subr.bf16.mxu0 %v8931_v0  ;;  %v5602_v12 = vld [vmem:[%s7435_s0 + $0x18] sm:$0xff]   ;;  %v5604_v14 = vld [vmem:[%s7435_s0 + $0x20] sm:$0xff]   ;;  %v5605_v15 = vld [vmem:[%s7435_s0 + $0x68] sm:$0xff]   ;;  %5204 = vmatprep.mubr.msk.bf16.mxu1 %vm6768_vm1, %v8931_v0  ;;  %vm1836_vm5 = vsmask.f32 256  ;;  %s8437_s20 = scalar_lea.vmem [#allocation34], %s7445_s2 }
 0x24f   : > { %v5606_v16 = vld [vmem:[%s7435_s0 + $0x28] sm:$0xff]   ;;  %v5607_v17 = vld [vmem:[%s7435_s0 + $0x70] sm:$0xff]   ;;  %v5609_v19 = vld [vmem:[%s7435_s0 + $0x78] sm:$0xff]   ;;  %5184 = vmatprep.mubr.msk.bf16.mxu0 %vm6768_vm1, %v8931_v0  ;;  %5593 = vset.pattern.permute.xlu1 %v8933_v35  ;;  %vm2044_vm7 = vsmask.f32 7938  ;;  %s8449_s17 = scalar_lea.vmem [#allocation33], %s7445_s2 }
 0x250   : > { %1047 = vadd.xlane.f32.xlu0 %v1046_v6  ;;  %5191 = vmatpush3.bf16.msra.mxu1 %v5597_v7  ;;  %v5608_v18 = vld [vmem:[%s7435_s0 + $0x30] sm:$0xff]   ;;  %v5610_v20 = vld [vmem:[%s7435_s0 + $0x38] sm:$0xff]   ;;  %v5613_v31 = vld [vmem:[#allocation17 + $0x4] ss:$8 sps:$4 sm:$0xff]   ;;  %vm2247_vm9 = vsmask.f32 1280 }
 0x251   : > { %5171 = vmatpush3.bf16.msra.mxu0 %v5598_v8  ;;  %5192 = vmatprep.subr.bf16.mxu1 %v8931_v0  ;;  %v5611_v32 = vld [vmem:[#allocation17] ss:$8 sps:$4 sm:$0xff]   ;;  %v5616_v33 = vld [vmem:[#allocation17 + $0x14] ss:$8 sps:$4 sm:$0xff]   ;;  %v5614_v34 = vld [vmem:[#allocation17 + $0x10] ss:$8 sps:$4 sm:$0xff]  }
 0x252   : > { %5172 = vmatprep.subr.bf16.mxu0 %v8931_v0  ;;  %v1044_v36 = vld [vmem:[%s857_s26 + $0x8] sm:$0xff]  ;;  %v1043_v37 = vld [vmem:[%s857_s26] sm:$0xff]  ;;  %5594 = vset.pattern.permute.xlu0 %v8933_v35  ;;  %vm1837_vm6 = vmand %vm1045_vm0, %vm1836_vm5  ;;  %vm2450_vm11 = vsmask.f32 7942  ;;  %vm2654_vm14 = vsmask.f32 2304 }
 0x253   : > { %v5617_v38 = vld [vmem:[#allocation12] ss:$16 sps:$4 sm:$0xff]   ;;  %1828 = vperm.xlu1 %5593, %v1044_v36   ;;  %v1845_v39 = vsub.f32 1.0, %v1044_v36  ;;  %v5619_v40 = vld [vmem:[#allocation12 + $0x4] ss:$16 sps:$4 sm:$0xff]   ;;  %v1844_v44 = vsub.f32 1.0, %v1043_v37  ;;  %vm2045_vm8 = vmand %vm1045_vm0, %vm2044_vm7 }
 0x254   : > { %5193 = vmatpush3.bf16.msra.mxu1 %v5599_v9  ;;  %v5622_v41 = vld [vmem:[#allocation12 + $0xc] ss:$16 sps:$4 sm:$0xff]   ;;  %v7544_v42 = vld [vmem:[#allocation14 + $0x4] ss:$16 sps:$4 sm:$0xff]   ;;  %v7549_v45 = vld [vmem:[#allocation14] ss:$16 sps:$4 sm:$0xff]  }
 0x255   : > { %5173 = vmatpush3.bf16.msra.mxu0 %v5600_v10  ;;  %5194 = vmatprep.subr.bf16.mxu1 %v8931_v0  ;;  %9061 = vst [vmem:[#allocation59_spill] sm:$0xff] %v7544_v42  ;;  %v5623_v43 = vld [vmem:[%s7458_s29] sm:$0xff]   ;;  %vm2248_vm10 = vmand %vm1259_vm3, %vm2247_vm9  ;;  %vm2857_vm0 = vsmask.f32 7946  ;;  %vm3061_vm7 = vsmask.f32 3328 }
 0x256   : > { %5174 = vmatprep.subr.bf16.mxu0 %v8931_v0  ;;  %v7552_v46 = vld [vmem:[#allocation14 + $0x24] ss:$16 sps:$4 sm:$0xff]   ;;  %v7555_v47 = vld [vmem:[#allocation14 + $0x20] ss:$16 sps:$4 sm:$0xff]   ;;  %v5620_v3 = vld [vmem:[#allocation12 + $0x8] ss:$16 sps:$4 sm:$0xff]  }
 0x257   : > { %1853 = vperm.xlu1 %5593, %v1845_v39   ;;  %v7558_v48 = vld [vmem:[#allocation14 + $0x44] ss:$16 sps:$4 sm:$0xff]   ;;  %v7561_v49 = vld [vmem:[#allocation14 + $0x40] ss:$16 sps:$4 sm:$0xff]   ;;  %v7572_v5 = vld [vmem:[#allocation14 + $0xc] ss:$16 sps:$4 sm:$0xff]  }
 0x258   : > { %5195 = vmatpush3.bf16.msra.mxu1 %v5601_v11  ;;  %v7564_v50 = vld [vmem:[#allocation14 + $0x64] ss:$16 sps:$4 sm:$0xff]   ;;  %v7567_v51 = vld [vmem:[#allocation14 + $0x60] ss:$16 sps:$4 sm:$0xff]   ;;  %9062 = vst [vmem:[#allocation60_spill] sm:$0xff] %v7572_v5  ;;  %vm2451_vm12 = vmand %vm1259_vm3, %vm2450_vm11  ;;  %s8518_s18 = scalar_lea.vmem [#allocation31], %s7465_s13 }
 0x259   : > { %5196 = vmatprep.subr.bf16.mxu1 %v8931_v0  ;;  %5175 = vmatpush3.bf16.msra.mxu0 %v5602_v12  ;;  %v7577_v6 = vld [vmem:[#allocation14 + $0x8] ss:$16 sps:$4 sm:$0xff]   ;;  %v7579_v7 = vld [vmem:[#allocation14 + $0x2c] ss:$16 sps:$4 sm:$0xff]   ;;  %vm2655_vm15 = vmand %vm2653_vm13, %vm2654_vm14  ;;  %s9113_s1 = sld [smem:[#allocation56_spill]]  ;;  %s5074_s23 = sshll.u32 %s9048_s21, 8 }
 0x25a   : > { %5176 = vmatprep.subr.bf16.mxu0 %v8931_v0  ;;  %v7583_v8 = vld [vmem:[#allocation14 + $0x28] ss:$16 sps:$4 sm:$0xff]   ;;  %v7587_v9 = vld [vmem:[#allocation14 + $0x4c] ss:$16 sps:$4 sm:$0xff]   ;;  %vm2858_vm5 = vmand %vm2653_vm13, %vm2857_vm0  ;;  %s4383_s14 = sshll.u32 %s8518_s18, 4  ;;  %s9114_s25 = sld [smem:[#allocation86_spill]]  ;;  %s8691_s14 = int_to_ptr.vmem [resolvable:$true] %s4383_s14 }
 0x25b   : > { %1848 = vperm.xlu1 %5593, %v1844_v44   ;;  %v7590_v10 = vld [vmem:[#allocation14 + $0x48] ss:$16 sps:$4 sm:$0xff]   ;;  %v7593_v11 = vld [vmem:[#allocation14 + $0x6c] ss:$16 sps:$4 sm:$0xff]   ;;  %s6551_s2 = scalar_lea.vmem %s8691_s14, 256  ;;  %s6771_s28 = smov [#allocation31]  }
 0x25c   : > { %5197 = vmatpush3.bf16.msra.mxu1 %v5603_v13  ;;  %v7596_v12 = vld [vmem:[#allocation14 + $0x68] ss:$16 sps:$4 sm:$0xff]   ;;  %v7600_v13 = vld [vmem:[#allocation14 + $0x84] ss:$16 sps:$4 sm:$0xff]   ;;  %p6552_p1 = scmp.ne.s32.totalorder %s8691_s14, %s6551_s2 }
 0x25d   : > { %5198 = vmatprep.subr.bf16.mxu1 %v8931_v0  ;;  %5177 = vmatpush3.bf16.msra.mxu0 %v5604_v14  ;;  %v7602_v14 = vld [vmem:[#allocation14 + $0x8c] ss:$16 sps:$4 sm:$0xff]  }
 0x25e   : > { %5178 = vmatprep.subr.bf16.mxu0 %v8931_v0 }
 0x25f   : > { %p9115_p8 = scmp.ne.s32.totalorder %s9113_s1, 0 }
 0x260   : > { %5199 = vmatpush3.bf16.msra.mxu1 %v5605_v15  ;;  %v7604_v15 = vld [vmem:[#allocation14 + $0x80] ss:$16 sps:$4 sm:$0xff]   ;;  %s8689_s3 = scalar_lea.hbm %s9114_s25, %s5074_s23 }
 0x261   : > { %5200 = vmatprep.subr.bf16.mxu1 %v8931_v0  ;;  %5179 = vmatpush3.bf16.msra.mxu0 %v5606_v16  ;;  %v7606_v16 = vld [vmem:[#allocation14 + $0x88] ss:$16 sps:$4 sm:$0xff]   ;;  %p6553_p13 = pnand %p6552_p1, %p9115_p8 }
 0x262   : > { %5180 = vmatprep.subr.bf16.mxu0 %v8931_v0 }
 0x263   : > { %p6554_p2 = pneg %p6553_p13 }
 0x264   : > { %5201 = vmatpush3.bf16.msra.mxu1 %v5607_v17  ;;  %v7612_v17 = vld [vmem:[#allocation14 + $0xa4] ss:$16 sps:$4 sm:$0xff]  }
 0x265   : > { %5202 = vmatprep.subr.bf16.mxu1 %v8931_v0  ;;  %5181 = vmatpush3.bf16.msra.mxu0 %v5608_v18  ;;  %v7614_v18 = vld [vmem:[#allocation14 + $0xac] ss:$16 sps:$4 sm:$0xff]  }
 0x266   : > { %5182 = vmatprep.subr.bf16.mxu0 %v8931_v0  ;;  %1823 = vperm.xlu0 %5594, %v1043_v37   ;;  %v7659_v37 = vld [vmem:[#allocation18] sm:$0x3] }
 0x268   : > { %5203 = vmatpush3.bf16.msra.mxu1 %v5609_v19  ;;  %v7616_v19 = vld [vmem:[#allocation14 + $0xa0] ss:$16 sps:$4 sm:$0xff]  }
 0x269   : > { %5183 = vmatpush3.bf16.msra.mxu0 %v5610_v20  ;;  %1384 = vmatprep.subr.bf16.mxu1 %v5619_v40  ;;  %v7618_v20 = vld [vmem:[#allocation14 + $0xa8] ss:$16 sps:$4 sm:$0xff]  }
 0x26a   : > { %1286 = vmatprep.subr.bf16.mxu0 %v5613_v31 }
 0x2d9   : > { %v1051_v21 = vpop.xlane.xlu0 %1050 }
 0x2da   : > { %v1053_v22 = vmax.f32 %v1051_v21, 1.0  ;;  %v7622_v21 = vld [vmem:[#allocation14 + $0xc4] ss:$16 sps:$4 sm:$0xff]  }
 0x2dc   : > { %5722 = vrcp.f32 %v1053_v22  ;;  %v7624_v22 = vld [vmem:[#allocation14 + $0xcc] ss:$16 sps:$4 sm:$0xff]  }
 0x2dd   : > { %v1048_v23 = vpop.xlane.xlu0 %1047 }
 0x2de   : > { %v1052_v24 = vmax.f32 %v1048_v23, 1.0  ;;  %v7628_v23 = vld [vmem:[#allocation14 + $0xc0] ss:$16 sps:$4 sm:$0xff]  }
 0x2e0   : > { %5724 = vrcp.f32 %v1052_v24  ;;  %v7630_v24 = vld [vmem:[#allocation14 + $0xc8] ss:$16 sps:$4 sm:$0xff]  }
 0x2e6   : > { %v5723_v25 = vpop.eup %5722 }
 0x2e7   : > { %v1057_v26 = vmul.f32 %v5723_v25, %v1040_v1  ;;  %v7634_v25 = vld [vmem:[#allocation14 + $0xe4] ss:$16 sps:$4 sm:$0xff]  }
 0x2e9   : > { %v1059_v27 = vpack.c.bf16 %v1057_v26, %v1057_v26  ;;  %v7636_v26 = vld [vmem:[#allocation14 + $0xec] ss:$16 sps:$4 sm:$0xff]  }
 0x2ea   : > { %v5725_v28 = vpop.eup %5724  ;;  %9063 = vst [vmem:[#allocation61_spill] sm:$0xff] %v7636_v26 }
 0x2eb   : > { %5205 = vmatmul.mubr.bf16.vlgmr.msra.gmra.mrb[0].mxu1 %v1059_v27  ;;  %v1055_v29 = vmul.f32 %v5725_v28, %v7496_v2  ;;  %v7640_v27 = vld [vmem:[#allocation14 + $0xe0] ss:$16 sps:$4 sm:$0xff]   ;;  %v7642_v28 = vld [vmem:[#allocation14 + $0xe8] ss:$16 sps:$4 sm:$0xff]  }
 0x2ec   : > { %1416 = vmatprep.mubr.bf16.mxu1 %v8933_v35  ;;  %1385 = vmatpush1.bf16.msra.mxu1 %v5617_v38  ;;  %9064 = vst [vmem:[#allocation62_spill] sm:$0xff] %v7640_v27  ;;  %9065 = vst [vmem:[#allocation63_spill] sm:$0xff] %v7642_v28 }
 0x2ed   : > { %v1058_v30 = vpack.c.bf16 %v1055_v29, %v1055_v29  ;;  %1663 = vmatprep.subr.bf16.mxu1 %v7544_v42 }
 0x2ef   : > { %5185 = vmatmul.mubr.bf16.vlgmr.msra.gmra.mrb[0].mxu0 %v1058_v30 }
 0x2f0   : > { %1287 = vmatpush1.bf16.msra.mxu0 %v5611_v32  ;;  %1318 = vmatprep.mubr.bf16.mxu0 %v8933_v35 }
 0x2f1   : > { %1288 = vmatprep.subr.bf16.mxu0 %v5616_v33  ;;  %v1244_v33 = vlaneseq }
 0x2f3   : > { %4860 = vmatmul.mubr.msk.bf16.vlgmr.msra.gmra.mrb[4].mxu1 %vm1380_vm2, %v5623_v43 }
 0x2f4   : > { %1289 = vmatpush1.bf16.msra.mxu0 %v5614_v34  ;;  %1695 = vmatprep.mubr.bf16.mxu1 %v8933_v35  ;;  %v7654_v34 = vshrl.u32 %v1244_v33, 7 }
 0x2f5   : > { %1427 = vmatprep.subr.bf16.mxu0 %v5622_v41  ;;  %1664 = vmatpush1.bf16.msra.mxu1 %v7549_v45 }
 0x2f6   : > { %1665 = vmatprep.subr.bf16.mxu1 %v7552_v46  ;;  %9066 = vst [vmem:[#allocation64_spill] sm:$0xff] %v7654_v34  ;;  %v7657_v36 = vsub.s32 0, %v7654_v34  ;;  %v1345_v33 = vsub.s32 2, %v7654_v34 }
 0x2f8   : > { %9067 = vst [vmem:[#allocation65_spill] sm:$0xff] %v7657_v36  ;;  %v1247_v38 = vrot.slane %v7659_v37, %v7657_v36 }
 0x2f9   : > { %1666 = vmatpush1.bf16.msra.mxu1 %v7555_v47 }
 0x2fa   : > { %1667 = vmatprep.subr.bf16.mxu1 %v7558_v48 }
 0x2fd   : > { %1668 = vmatpush1.bf16.msra.mxu1 %v7561_v49 }
 0x2fe   : > { %1669 = vmatprep.subr.bf16.mxu1 %v7564_v50 }
 0x301   : > { %1670 = vmatpush1.bf16.msra.mxu1 %v7567_v51 }
 0x302   : > { %1671 = vmatprep.subr.bf16.mxu1 %v7600_v13 }
 0x305   : > { %1672 = vmatpush1.bf16.msra.mxu1 %v7604_v15 }
 0x306   : > { %1673 = vmatprep.subr.bf16.mxu1 %v7612_v17 }
 0x309   : > { %1674 = vmatpush1.bf16.msra.mxu1 %v7616_v19 }
 0x30a   : > { %1675 = vmatprep.subr.bf16.mxu1 %v7622_v21 }
 0x30d   : > { %1676 = vmatpush1.bf16.msra.mxu1 %v7628_v23 }
 0x30e   : > { %1677 = vmatprep.subr.bf16.mxu1 %v7634_v25 }
 0x311   : > { %1678 = vmatpush1.bf16.msra.mxu1 %v7640_v27 }
 0x312   : > { %1880 = vmatprep.subr.bf16.mxu1 %v7544_v42 }
 0x3be   : > { %v1230_v52 = vpop.f32.mrb[0].mxu1 }
 0x3bf   : > { %v1237_v53 = vpack.c.bf16 %v1230_v52, %v1230_v52  ;;  %v5206_v54 = vpop.f32.mrb[1].mxu1 }
 0x3c0   : > { %v1233_v55 = vpop.f32.mrb[2].mxu1 }
 0x3c1   : > { %v1257_v56 = vunpack.c.l.b16 %v1237_v53  ;;  %v5207_v57 = vpop.f32.mrb[3].mxu1 }
 0x3c2   : > { %v1142_v58 = vpop.f32.mrb[0].mxu0 }
 0x3c3   : > { %v1236_v59 = vpack.c.bf16 %v1142_v58, %v1142_v58  ;;  %v5186_v60 = vpop.f32.mrb[1].mxu0  ;;  %v1258_v62 = vrot.slane %v1257_v56, 7  ;;  %v1333_v58 = vld [vmem:[#allocation15] sm:$0xf] }
 0x3c4   : > { %v1145_v61 = vpop.f32.mrb[2].mxu0  ;;  %v1338_v60 = vrot.slane %v1333_v58, %v7657_v36 }
 0x3c5   : > { %v1256_v63 = vunpack.c.l.b16 %v1236_v59  ;;  %v5187_v1 = vpop.f32.mrb[3].mxu0  ;;  %v7712_v59 = vsub.s32 1, %v7654_v34 }
 0x3c6   : > { %v1418_v29 = vpop.f32.mrb[4].mxu1 }
 0x3c7   : > { %v1260_v2 = vsel %vm1259_vm3, %v1258_v62, %v1256_v63  ;;  %v1420_v30 = vpop.f32.mrb[5].mxu1  ;;  %9068 = vst [vmem:[#allocation66_spill] sm:$0xff] %v7712_v59  ;;  %v1342_v61 = vrot.slane %v1333_v58, %v7712_v59  ;;  %v1349_v62 = vsub.s32 3, %v7654_v34  ;;  %v7717_v63 = vadd.f32 %v1418_v29, %v1338_v60 }
 0x3c8   : > { %v1261_v4 = vpack.c.b16 %v1260_v2, %v1260_v2  ;;  %v7650_v31 = vpop.f32.mrb[6].mxu1 }
 0x3c9   : > { %v7652_v32 = vpop.f32.mrb[7].mxu1  ;;  %9069 = vst [vmem:[#allocation67_spill] sm:$0xff] %v7717_v63  ;;  %v7719_v1 = vadd.f32 %v1420_v30, %v1342_v61 }
 0x3ca   : > { %4854 = vmatmul.mubr.msk.bf16.vlgmr.msra.gmra.mrb[4].mxu0 %vm1282_vm4, %v1261_v4  ;;  %v7722_v4 = vadd.f32 %v7650_v31, %v1338_v60 }
 0x3cb   : > { %1428 = vmatpush1.bf16.msra.mxu0 %v5620_v3  ;;  %1459 = vmatprep.mubr.bf16.mxu0 %v8933_v35 }
 0x3cc   : > { %1704 = vmatprep.subr.bf16.mxu0 %v7572_v5 }
 0x3d2   : > { %4861 = vmatmul.mubr.msk.bf16.vlgmr.msra.gmra.mrb[8].mxu0 %vm1380_vm2, %v5623_v43 }
 0x3d3   : > { %1705 = vmatpush1.bf16.msra.mxu0 %v7577_v6  ;;  %1736 = vmatprep.mubr.bf16.mxu0 %v8933_v35 }
 0x3d4   : > { %1706 = vmatprep.subr.bf16.mxu0 %v7579_v7 }
 0x3d7   : > { %1707 = vmatpush1.bf16.msra.mxu0 %v7583_v8 }
 0x3d8   : > { %1708 = vmatprep.subr.bf16.mxu0 %v7587_v9 }
 0x3db   : > { %1709 = vmatpush1.bf16.msra.mxu0 %v7590_v10 }
 0x3dc   : > { %1710 = vmatprep.subr.bf16.mxu0 %v7593_v11 }
 0x3df   : > { %1711 = vmatpush1.bf16.msra.mxu0 %v7596_v12 }
 0x3e0   : > { %1712 = vmatprep.subr.bf16.mxu0 %v7602_v14 }
 0x3e3   : > { %1713 = vmatpush1.bf16.msra.mxu0 %v7606_v16 }
 0x3e4   : > { %1714 = vmatprep.subr.bf16.mxu0 %v7614_v18 }
 0x3e7   : > { %1715 = vmatpush1.bf16.msra.mxu0 %v7618_v20 }
 0x3e8   : > { %1716 = vmatprep.subr.bf16.mxu0 %v7624_v22 }
 0x3eb   : > { %1717 = vmatpush1.bf16.msra.mxu0 %v7630_v24 }
 0x3ec   : > { %1718 = vmatprep.subr.bf16.mxu0 %v7636_v26 }
 0x3ef   : > { %1719 = vmatpush1.bf16.msra.mxu0 %v7642_v28 }
 0x3f0   : > { %1921 = vmatprep.subr.bf16.mxu0 %v7572_v5 }
 0x49d   : > { %v1320_v39 = vpop.f32.mrb[4].mxu0 }
 0x49e   : > { %v1321_v40 = vadd.f32 %v1320_v39, %v1247_v38  ;;  %v7663_v41 = vpop.f32.mrb[5].mxu0 }
 0x49f   : > { %v1324_v43 = vpop.f32.mrb[6].mxu0 }
 0x4a0   : > { %5726 = vtanh.f32 %v1321_v40  ;;  %v1325_v44 = vpop.f32.mrb[7].mxu0 }
 0x4a1   : > { %v7727_v44 = vadd.f32 %v7652_v32, %v1342_v61  ;;  %v1251_v32 = vrot.slane %v7659_v37, %v7712_v59 }
 0x4a5   : > { %v7665_v52 = vpop.f32.mrb[8].mxu0 }
 0x4a6   : > { %v7667_v53 = vpop.f32.mrb[9].mxu0 }
 0x4a7   : > { %v7669_v54 = vpop.f32.mrb[10].mxu0 }
 0x4a8   : > { %v7671_v55 = vpop.f32.mrb[11].mxu0 }
 0x4aa   : > { %v7673_v56 = vpop.eup %5726 }
 0x4ab   : > { %v1502_v57 = vpack.c.bf16 %v7673_v56, %v7673_v56 }
 0x4ad   : > { %1696 = vmatmul.mubr.bf16.vlgmr.msra.gmra.mrb[8].mxu1 %v1502_v57  ;;  %1737 = vmatmul.mubr.bf16.vlgmr.msra.gmra.mrb[12].mxu0 %v1502_v57  ;;  %v1350_v57 = vrot.slane %v1333_v58, %v1349_v62 }
 0x4ae   : > { %1881 = vmatpush1.bf16.msra.mxu1 %v7549_v45  ;;  %1922 = vmatpush1.bf16.msra.mxu0 %v7577_v6 }
 0x4af   : > { %1882 = vmatprep.subr.bf16.mxu1 %v7552_v46  ;;  %1923 = vmatprep.subr.bf16.mxu0 %v7579_v7  ;;  %v7735_v61 = vadd.f32 %v7667_v53, %v1350_v57 }
 0x4b0   : > { %1912 = vmatprep.mubr.bf16.mxu1 %v8933_v35  ;;  %1953 = vmatprep.mubr.bf16.mxu0 %v8933_v35 }
 0x4b2   : > { %1883 = vmatpush1.bf16.msra.mxu1 %v7555_v47  ;;  %1924 = vmatpush1.bf16.msra.mxu0 %v7583_v8 }
 0x4b3   : > { %1884 = vmatprep.subr.bf16.mxu1 %v7558_v48  ;;  %1925 = vmatprep.subr.bf16.mxu0 %v7587_v9 }
 0x4b6   : > { %1885 = vmatpush1.bf16.msra.mxu1 %v7561_v49  ;;  %1926 = vmatpush1.bf16.msra.mxu0 %v7590_v10 }
 0x4b7   : > { %1886 = vmatprep.subr.bf16.mxu1 %v7564_v50  ;;  %1927 = vmatprep.subr.bf16.mxu0 %v7593_v11 }
 0x4ba   : > { %1887 = vmatpush1.bf16.msra.mxu1 %v7567_v51  ;;  %1928 = vmatpush1.bf16.msra.mxu0 %v7596_v12 }
 0x4bb   : > { %1888 = vmatprep.subr.bf16.mxu1 %v7600_v13  ;;  %1929 = vmatprep.subr.bf16.mxu0 %v7602_v14 }
 0x4be   : > { %1889 = vmatpush1.bf16.msra.mxu1 %v7604_v15  ;;  %1930 = vmatpush1.bf16.msra.mxu0 %v7606_v16 }
 0x4bf   : > { %1890 = vmatprep.subr.bf16.mxu1 %v7612_v17  ;;  %1931 = vmatprep.subr.bf16.mxu0 %v7614_v18 }
 0x4c2   : > { %1891 = vmatpush1.bf16.msra.mxu1 %v7616_v19  ;;  %1932 = vmatpush1.bf16.msra.mxu0 %v7618_v20 }
 0x4c3   : > { %1892 = vmatprep.subr.bf16.mxu1 %v7622_v21  ;;  %1933 = vmatprep.subr.bf16.mxu0 %v7624_v22 }
 0x4c6   : > { %1893 = vmatpush1.bf16.msra.mxu1 %v7628_v23  ;;  %1934 = vmatpush1.bf16.msra.mxu0 %v7630_v24 }
 0x4c7   : > { %1894 = vmatprep.subr.bf16.mxu1 %v7634_v25  ;;  %1935 = vmatprep.subr.bf16.mxu0 %v7636_v26 }
 0x4ca   : > { %1895 = vmatpush1.bf16.msra.mxu1 %v7640_v27  ;;  %1936 = vmatpush1.bf16.msra.mxu0 %v7642_v28 }
 0x4cb   : > { %2078 = vmatprep.subr.bf16.mxu1 %v7544_v42  ;;  %2119 = vmatprep.subr.bf16.mxu0 %v7572_v5 }
 0x580   : > { %v1697_v2 = vpop.f32.mrb[8].mxu1  ;;  %v1738_v3 = vpop.f32.mrb[12].mxu0 }
 0x581   : > { %v1749_v38 = vrot.slane %v1697_v2, 1  ;;  %v1761_v39 = vadd.f32 %v1697_v2, %v7717_v63  ;;  %v1699_v40 = vpop.f32.mrb[9].mxu1  ;;  %v1740_v43 = vpop.f32.mrb[13].mxu0  ;;  %v1346_v2 = vrot.slane %v1333_v58, %v1345_v33  ;;  %v1323_v58 = vadd.f32 %v7663_v41, %v1251_v32 }
 0x582   : > { %v1750_v29 = vrot.slane %v1699_v40, 1  ;;  %v1762_v30 = vadd.f32 %v1699_v40, %v7719_v1  ;;  %v1701_v0 = vpop.f32.mrb[10].mxu1  ;;  %v1742_v35 = vpop.f32.mrb[14].mxu0  ;;  %v1752_v28 = vrot.slane %v1740_v43, 1  ;;  %v1751_v37 = vrot.slane %v1738_v3, 1 }
 0x583   : > { %v1765_v36 = vadd.f32 %v1749_v38, %v7722_v4  ;;  %v4894_v31 = vmul.f32 -1.442695, %v1761_v39  ;;  %v1702_v60 = vpop.f32.mrb[11].mxu1  ;;  %v1743_v5 = vpop.f32.mrb[15].mxu0  ;;  %v7738_v35 = vadd.f32 %v7671_v55, %v1350_v57  ;;  %v7742_v62 = vadd.f32 %v7665_v52, %v1346_v2 }
 0x584   : > { %v1766_v34 = vadd.f32 %v1750_v29, %v7727_v44  ;;  %v4896_v42 = vmul.f32 -1.442695, %v1762_v30  ;;  %v1764_v5 = vadd.f32 %v1740_v43, %v7735_v61 }
 0x585   : > { %5728 = vpow2.f32 %v4894_v31  ;;  %v4895_v63 = vmul.f32 -1.442695, %v1765_v36  ;;  %v1768_v36 = vadd.f32 %v1752_v28, %v7738_v35  ;;  %v1763_v53 = vadd.f32 %v1738_v3, %v7742_v62 }
 0x586   : > { %v4897_v0 = vmul.f32 -1.442695, %v1766_v34  ;;  %v4898_v33 = vmul.f32 -1.442695, %v1764_v5  ;;  %v7748_v34 = vadd.f32 %v7669_v54, %v1346_v2 }
 0x587   : > { %5730 = vpow2.f32 %v4895_v63  ;;  %v4899_v55 = vmul.f32 -1.442695, %v1768_v36 }
 0x588   : > { %5732 = vpow2.f32 %v4896_v42  ;;  %v1767_v63 = vadd.f32 %v1751_v37, %v7748_v34 }
 0x589   : > { %5734 = vpow2.f32 %v4897_v0 }
 0x58a   : > { %5736 = vtanh.f32 %v1323_v58 }
 0x58b   : > { %5738 = vtanh.f32 %v1763_v53 }
 0x58c   : > { %5740 = vpow2.f32 %v4898_v33 }
 0x58d   : > { %5742 = vpow2.f32 %v4899_v55  ;;  %v7757_v55 = vpop.permute.xlu1 %1828 }
 0x58f   : > { %v5729_v42 = vpop.eup %5728 }
 0x590   : > { %v1775_v52 = vadd.f32 1.0, %v5729_v42 }
 0x591   : > { %v5731_v38 = vpop.eup %5730 }
 0x592   : > { %v5733_v28 = vpop.eup %5732  ;;  %v1776_v39 = vadd.f32 1.0, %v5731_v38  ;;  %5744 = vrcp.f32 %v1775_v52  ;;  %v7765_v52 = vpop.permute.xlu1 %1853 }
 0x593   : > { %v5735_v41 = vpop.eup %5734  ;;  %5746 = vtanh.f32 %v1767_v63  ;;  %v1787_v3 = vadd.f32 1.0, %v5733_v28 }
 0x594   : > { %5748 = vrcp.f32 %v1776_v39  ;;  %v1788_v40 = vadd.f32 1.0, %v5735_v41  ;;  %v7751_v54 = vpop.eup %5736 }
 0x595   : > { %5750 = vrcp.f32 %v1787_v3  ;;  %v5739_v43 = vpop.eup %5738  ;;  %v8947_v36 = vrot.slane %v7751_v54, 1  ;;  %v1857_v3 = vrot.slane %v7673_v56, 1 }
 0x596   : > { %5752 = vrcp.f32 %v1788_v40  ;;  %v5741_v57 = vpop.eup %5740  ;;  %v7767_v41 = vpop.permute.xlu1 %1848 }
 0x597   : > { %v5743_v29 = vpop.eup %5742  ;;  %v1801_v32 = vadd.f32 1.0, %v5741_v57 }
 0x598   : > { %v1802_v58 = vadd.f32 1.0, %v5743_v29  ;;  %v7770_v29 = vpop.permute.xlu0 %1823 }
 0x599   : > { %5754 = vrcp.f32 %v1801_v32  ;;  %v1861_v32 = vmul.f32 %v1857_v3, %v7765_v52 }
 0x59a   : > { %5756 = vrcp.f32 %v1802_v58 }
 0x59c   : > { %v5745_v30 = vpop.eup %5744 }
 0x59d   : > { %v5747_v31 = vpop.eup %5746  ;;  %v1813_v60 = vmul.f32 %v5745_v30, %v5739_v43 }
 0x59e   : > { %v5749_v2 = vpop.eup %5748 }
 0x59f   : > { %v5751_v0 = vpop.eup %5750  ;;  %v1814_v5 = vmul.f32 %v5749_v2, %v5747_v31  ;;  %v1860_v31 = vmul.f32 %v7673_v56, %v7767_v41  ;;  %v1838_v2 = vld [vmem:[#allocation2] sm:$0x1] }
 0x5a0   : > { %v5753_v37 = vpop.eup %5752  ;;  %v1811_v53 = vmul.f32 %v5751_v0, %v7751_v54 }
 0x5a1   : > { %v1812_v33 = vmul.f32 %v5753_v37, %v8947_v36 }
 0x5a2   : > { %v7759_v42 = vadd.f32 %v1813_v60, %v1811_v53 }
 0x5a3   : > { %v7761_v63 = vadd.f32 %v1814_v5, %v1812_v33  ;;  %v5755_v38 = vpop.eup %5754  ;;  %v1841_v5 = vld [vmem:[#allocation2 + $0x4] sm:$0x1] }
 0x5a4   : > { %5758 = vtanh.f32 %v7759_v42  ;;  %v5757_v28 = vpop.eup %5756 }
 0x5a5   : > { %5760 = vtanh.f32 %v7761_v63 }
 0x5ae   : > { %v5759_v39 = vpop.eup %5758 }
 0x5af   : > { %v5761_v40 = vpop.eup %5760  ;;  %v1819_v43 = vmul.f32 %v5759_v39, %v5755_v38 }
 0x5b0   : > { %v1820_v57 = vmul.f32 %v5761_v40, %v5757_v28 }
 0x5b1   : > { %v1831_v30 = vmul.f32 %v7770_v29, %v1819_v43 }
 0x5b2   : > { %v1832_v60 = vmul.f32 %v7757_v55, %v1820_v57 }
 0x5b3   : > { %v1833_v0 = vpack.c.bf16 %v1831_v30, %v1831_v30  ;;  %v7778_v58 = vadd.f32 %v1860_v31, %v1831_v30  ;;  %v9070_v30 = vmov 0   ;;  %v9071_v31 = vld [vmem:[#allocation63_spill] sm:$0xff] }
 0x5b4   : > { %v1834_v37 = vpack.c.bf16 %v1832_v60, %v1832_v60  ;;  %v7780_v53 = vadd.f32 %v1861_v32, %v1832_v60  ;;  %v9072_v60 = vld [vmem:[#allocation59_spill] sm:$0xff] }
 0x5b5   : > { %v1839_v33 = vsel %vm1837_vm6, %v1833_v0, %v1838_v2  ;;  %v1870_v56 = vpack.c.bf16 %v7778_v58, %v7778_v58  ;;  %v9073_v2 = vld [vmem:[#allocation60_spill] sm:$0xff] }
 0x5b6   : > { %1840 = vst [vmem:[#allocation2] sm:$0x1] %v1839_v33  ;;  %v1842_v38 = vsel %vm1837_vm6, %v1834_v37, %v1841_v5  ;;  %v1871_v28 = vpack.c.bf16 %v7780_v53, %v7780_v53  ;;  %vm3060_vm6 = vcmask 1043459  }
 0x5b7   : > { %1843 = vst [vmem:[#allocation2 + $0x4] sm:$0x1] %v1842_v38  ;;  %v1874_v40 = vunpack.c.l.b16 %v1870_v56 }
 0x5b8   : > { %v1875_v39 = vunpack.c.l.b16 %v1871_v28 }
 0x5ba   : > { %v1876_v3 = vrot.slane %v1875_v39, 7 }
 0x5bc   : > { %v1877_v43 = vsel %vm1259_vm3, %v1876_v3, %v1874_v40  ;;  %v9074_v3 = vld [vmem:[#allocation67_spill] sm:$0xff] }
 0x5bd   : > { %v1878_v57 = vpack.c.b16 %v1877_v43, %v1877_v43 }
 0x5bf   : > { %1913 = vmatmul.mubr.bf16.vlgmr.msra.gmra.mrb[12].mxu1 %v1878_v57  ;;  %1954 = vmatmul.mubr.bf16.vlgmr.msra.gmra.mrb[16].mxu0 %v1878_v57 }
 0x5c0   : > { %2079 = vmatpush1.bf16.msra.mxu1 %v7549_v45  ;;  %2120 = vmatpush1.bf16.msra.mxu0 %v7577_v6 }
 0x5c1   : > { %2080 = vmatprep.subr.bf16.mxu1 %v7552_v46  ;;  %2121 = vmatprep.subr.bf16.mxu0 %v7579_v7 }
 0x5c2   : > { %2110 = vmatprep.mubr.bf16.mxu1 %v9070_v30  ;;  %2151 = vmatprep.mubr.bf16.mxu0 %v9070_v30 }
 0x5c4   : > { %2081 = vmatpush1.bf16.msra.mxu1 %v7555_v47  ;;  %2122 = vmatpush1.bf16.msra.mxu0 %v7583_v8 }
 0x5c5   : > { %2082 = vmatprep.subr.bf16.mxu1 %v7558_v48  ;;  %2123 = vmatprep.subr.bf16.mxu0 %v7587_v9 }
 0x5c8   : > { %2083 = vmatpush1.bf16.msra.mxu1 %v7561_v49  ;;  %2124 = vmatpush1.bf16.msra.mxu0 %v7590_v10 }
 0x5c9   : > { %2084 = vmatprep.subr.bf16.mxu1 %v7564_v50  ;;  %2125 = vmatprep.subr.bf16.mxu0 %v7593_v11 }
 0x5cc   : > { %2085 = vmatpush1.bf16.msra.mxu1 %v7567_v51  ;;  %2126 = vmatpush1.bf16.msra.mxu0 %v7596_v12 }
 0x5cd   : > { %2086 = vmatprep.subr.bf16.mxu1 %v7600_v13  ;;  %2127 = vmatprep.subr.bf16.mxu0 %v7602_v14 }
 0x5d0   : > { %2087 = vmatpush1.bf16.msra.mxu1 %v7604_v15  ;;  %2128 = vmatpush1.bf16.msra.mxu0 %v7606_v16 }
 0x5d1   : > { %2088 = vmatprep.subr.bf16.mxu1 %v7612_v17  ;;  %2129 = vmatprep.subr.bf16.mxu0 %v7614_v18 }
 0x5d4   : > { %2089 = vmatpush1.bf16.msra.mxu1 %v7616_v19  ;;  %2130 = vmatpush1.bf16.msra.mxu0 %v7618_v20 }
 0x5d5   : > { %2090 = vmatprep.subr.bf16.mxu1 %v7622_v21  ;;  %2131 = vmatprep.subr.bf16.mxu0 %v7624_v22 }
 0x5d8   : > { %2091 = vmatpush1.bf16.msra.mxu1 %v7628_v23  ;;  %2132 = vmatpush1.bf16.msra.mxu0 %v7630_v24 }
 0x5d9   : > { %2092 = vmatprep.subr.bf16.mxu1 %v7634_v25  ;;  %2133 = vmatprep.subr.bf16.mxu0 %v7636_v26 }
 0x5dc   : > { %2093 = vmatpush1.bf16.msra.mxu1 %v7640_v27  ;;  %2134 = vmatpush1.bf16.msra.mxu0 %v9071_v31 }
 0x5dd   : > { %2282 = vmatprep.subr.bf16.mxu1 %v9072_v60  ;;  %2323 = vmatprep.subr.bf16.mxu0 %v9073_v2 }
 0x692   : > { %v1914_v32 = vpop.f32.mrb[12].mxu1  ;;  %v1955_v0 = vpop.f32.mrb[16].mxu0 }
 0x693   : > { %v1966_v5 = vrot.slane %v1914_v32, 7  ;;  %v1982_v37 = vadd.f32 %v1914_v32, %v7722_v4  ;;  %v1916_v33 = vpop.f32.mrb[13].mxu1  ;;  %v1957_v38 = vpop.f32.mrb[17].mxu0 }
 0x694   : > { %v1967_v56 = vrot.slane %v1916_v33, 7  ;;  %v1983_v28 = vadd.f32 %v1916_v33, %v7727_v44  ;;  %v1918_v39 = vpop.f32.mrb[14].mxu1  ;;  %v1959_v40 = vpop.f32.mrb[18].mxu0  ;;  %v1969_v2 = vrot.slane %v1957_v38, 7  ;;  %v1985_v33 = vadd.f32 %v1957_v38, %v7738_v35 }
 0x695   : > { %v1978_v43 = vadd.f32 %v1966_v5, %v9074_v3  ;;  %v4901_v57 = vmul.f32 -1.442695, %v1982_v37  ;;  %v1919_v36 = vpop.f32.mrb[15].mxu1  ;;  %v1960_v59 = vpop.f32.mrb[19].mxu0  ;;  %v1968_v39 = vrot.slane %v1955_v0, 7  ;;  %v1984_v5 = vadd.f32 %v1955_v0, %v7748_v34 }
 0x696   : > { %v1979_v60 = vadd.f32 %v1967_v56, %v7719_v1  ;;  %v4903_v27 = vmul.f32 -1.442695, %v1983_v28  ;;  %v1981_v32 = vadd.f32 %v1969_v2, %v7735_v61  ;;  %v4905_v36 = vmul.f32 -1.442695, %v1985_v33 }
 0x697   : > { %v4900_v31 = vmul.f32 -1.442695, %v1978_v43  ;;  %5762 = vpow2.f32 %v4901_v57  ;;  %v1980_v56 = vadd.f32 %v1968_v39, %v7742_v62  ;;  %v1864_v0 = vmul.f32 %v7770_v29, %v7759_v42 }
 0x698   : > { %v4902_v26 = vmul.f32 -1.442695, %v1979_v60  ;;  %v4904_v37 = vmul.f32 -1.442695, %v1981_v32  ;;  %v1865_v38 = vmul.f32 %v7757_v55, %v7761_v63  ;;  %v1866_v43 = vmul.f32 %v7751_v54, %v7767_v41 }
 0x699   : > { %5764 = vpow2.f32 %v4900_v31  ;;  %v9075_v32 = vrot.slane %v7751_v54, 1 }
 0x69a   : > { %5766 = vpow2.f32 %v4902_v26 }
 0x69b   : > { %5768 = vpow2.f32 %v4903_v27  ;;  %v1867_v33 = vmul.f32 %v7765_v52, %v9075_v32 }
 0x69c   : > { %5770 = vtanh.f32 %v1984_v5  ;;  %v7838_v5 = vadd.f32 %v1866_v43, %v1864_v0 }
 0x69d   : > { %5772 = vpow2.f32 %v4904_v37 }
 0x69e   : > { %5774 = vpow2.f32 %v4905_v36  ;;  %v7840_v36 = vadd.f32 %v1867_v33, %v1865_v38  ;;  %v2026_v63 = vrot.slane %v7838_v5, 7  ;;  %v2054_v33 = vrot.slane %v7778_v58, 7 }
 0x6a1   : > { %v5763_v59 = vpop.eup %5762 }
 0x6a2   : > { %v1993_v40 = vadd.f32 1.0, %v5763_v59 }
 0x6a3   : > { %v5765_v28 = vpop.eup %5764 }
 0x6a4   : > { %v5767_v31 = vpop.eup %5766  ;;  %v1992_v26 = vadd.f32 1.0, %v5765_v28  ;;  %5776 = vrcp.f32 %v1993_v40 }
 0x6a5   : > { %v5769_v60 = vpop.eup %5768  ;;  %5778 = vtanh.f32 %v1980_v56  ;;  %v2004_v27 = vadd.f32 1.0, %v5767_v31 }
 0x6a6   : > { %5780 = vrcp.f32 %v1992_v26  ;;  %v2005_v2 = vadd.f32 1.0, %v5769_v60  ;;  %v5771_v57 = vpop.eup %5770  ;;  %v2027_v60 = vrot.slane %v7840_v36, 7 }
 0x6a7   : > { %5782 = vrcp.f32 %v2004_v27  ;;  %v5773_v39 = vpop.eup %5772 }
 0x6a8   : > { %5784 = vrcp.f32 %v2005_v2  ;;  %v5775_v37 = vpop.eup %5774  ;;  %v2018_v28 = vadd.f32 1.0, %v5773_v39 }
 0x6a9   : > { %v2019_v54 = vadd.f32 1.0, %v5775_v37  ;;  %v2055_v37 = vrot.slane %v7780_v53, 7 }
 0x6aa   : > { %5786 = vrcp.f32 %v2018_v28 }
 0x6ab   : > { %5788 = vrcp.f32 %v2019_v54 }
 0x6ae   : > { %v5777_v59 = vpop.eup %5776 }
 0x6af   : > { %v5779_v42 = vpop.eup %5778  ;;  %v2033_v56 = vmul.f32 %v5777_v59, %v5771_v57 }
 0x6b0   : > { %v5781_v40 = vpop.eup %5780 }
 0x6b1   : > { %v5783_v31 = vpop.eup %5782  ;;  %v2032_v26 = vmul.f32 %v5781_v40, %v5779_v42 }
 0x6b2   : > { %v5785_v27 = vpop.eup %5784  ;;  %v2030_v2 = vmul.f32 %v5783_v31, %v2026_v63 }
 0x6b3   : > { %v2031_v0 = vmul.f32 %v5785_v27, %v2027_v60 }
 0x6b4   : > { %v7848_v38 = vadd.f32 %v2032_v26, %v2030_v2  ;;  %v5787_v57 = vpop.eup %5786  ;;  %v2059_v26 = vmul.f32 %v2055_v37, %v7765_v52  ;;  %v2046_v2 = vld [vmem:[#allocation2] sm:$0x1] }
 0x6b5   : > { %v7850_v43 = vadd.f32 %v2033_v56, %v2031_v0  ;;  %v5789_v32 = vpop.eup %5788  ;;  %v2058_v56 = vmul.f32 %v2054_v33, %v7767_v41 }
 0x6b6   : > { %5790 = vtanh.f32 %v7848_v38 }
 0x6b7   : > { %5792 = vtanh.f32 %v7850_v43 }
 0x6c0   : > { %v5791_v39 = vpop.eup %5790 }
 0x6c1   : > { %v5793_v59 = vpop.eup %5792  ;;  %v2038_v42 = vmul.f32 %v5791_v39, %v5787_v57  ;;  %v2049_v57 = vld [vmem:[#allocation2 + $0x4] sm:$0x1] }
 0x6c2   : > { %v2039_v40 = vmul.f32 %v5793_v59, %v5789_v32 }
 0x6c3   : > { %v2040_v28 = vmul.f32 %v2038_v42, %v7770_v29 }
 0x6c4   : > { %v2041_v31 = vmul.f32 %v2039_v40, %v7757_v55 }
 0x6c5   : > { %v2042_v54 = vpack.c.bf16 %v2040_v28, %v2040_v28  ;;  %v7861_v27 = vadd.f32 %v2058_v56, %v2040_v28 }
 0x6c6   : > { %v2043_v58 = vpack.c.bf16 %v2041_v31, %v2041_v31  ;;  %v7863_v53 = vadd.f32 %v2059_v26, %v2041_v31 }
 0x6c7   : > { %v2047_v0 = vsel %vm2045_vm8, %v2042_v54, %v2046_v2  ;;  %v2068_v32 = vpack.c.bf16 %v7861_v27, %v7861_v27 }
 0x6c8   : > { %2048 = vst [vmem:[#allocation2] sm:$0x1] %v2047_v0  ;;  %v2050_v33 = vsel %vm2045_vm8, %v2043_v58, %v2049_v57  ;;  %v2069_v39 = vpack.c.bf16 %v7863_v53, %v7863_v53  ;;  %vm3062_vm8 = vmand %vm3060_vm6, %vm3061_vm7 }
 0x6c9   : > { %2051 = vst [vmem:[#allocation2 + $0x4] sm:$0x1] %v2050_v33  ;;  %v2072_v37 = vunpack.c.l.b16 %v2068_v32 }
 0x6ca   : > { %v2073_v59 = vunpack.c.l.b16 %v2069_v39 }
 0x6cb   : > { %v2074_v42 = vrot.slane %v2072_v37, 1 }
 0x6cd   : > { %v2075_v40 = vsel %vm1259_vm3, %v2073_v59, %v2074_v42 }
 0x6ce   : > { %v2076_v28 = vpack.c.b16 %v2075_v40, %v2075_v40 }
 0x6d0   : > { %2111 = vmatmul.mubr.bf16.vlgmr.msra.gmra.mrb[16].mxu1 %v2076_v28  ;;  %2152 = vmatmul.mubr.bf16.vlgmr.msra.gmra.mrb[20].mxu0 %v2076_v28 }
 0x6d1   : > { %2283 = vmatpush1.bf16.msra.mxu1 %v7549_v45  ;;  %2324 = vmatpush1.bf16.msra.mxu0 %v7577_v6  ;;  %v9076_v45 = vld [vmem:[#allocation61_spill] sm:$0xff] }
 0x6d2   : > { %2284 = vmatprep.subr.bf16.mxu1 %v7552_v46  ;;  %2325 = vmatprep.subr.bf16.mxu0 %v7579_v7  ;;  %v9077_v46 = vld [vmem:[#allocation62_spill] sm:$0xff] }
 0x6d3   : > { %2314 = vmatprep.mubr.bf16.mxu1 %v9070_v30  ;;  %2355 = vmatprep.mubr.bf16.mxu0 %v9070_v30 }
 0x6d5   : > { %2285 = vmatpush1.bf16.msra.mxu1 %v7555_v47  ;;  %2326 = vmatpush1.bf16.msra.mxu0 %v7583_v8  ;;  %v9078_v47 = vld [vmem:[#allocation63_spill] sm:$0xff] }
 0x6d6   : > { %2286 = vmatprep.subr.bf16.mxu1 %v7558_v48  ;;  %2327 = vmatprep.subr.bf16.mxu0 %v7587_v9  ;;  %v9079_v48 = vld [vmem:[#allocation59_spill] sm:$0xff] }
 0x6d9   : > { %2287 = vmatpush1.bf16.msra.mxu1 %v7561_v49  ;;  %2328 = vmatpush1.bf16.msra.mxu0 %v7590_v10  ;;  %v9080_v49 = vld [vmem:[#allocation60_spill] sm:$0xff] }
 0x6da   : > { %2288 = vmatprep.subr.bf16.mxu1 %v7564_v50  ;;  %2329 = vmatprep.subr.bf16.mxu0 %v7593_v11 }
 0x6dd   : > { %2289 = vmatpush1.bf16.msra.mxu1 %v7567_v51  ;;  %2330 = vmatpush1.bf16.msra.mxu0 %v7596_v12 }
 0x6de   : > { %2290 = vmatprep.subr.bf16.mxu1 %v7600_v13  ;;  %2331 = vmatprep.subr.bf16.mxu0 %v7602_v14 }
 0x6e1   : > { %2291 = vmatpush1.bf16.msra.mxu1 %v7604_v15  ;;  %2332 = vmatpush1.bf16.msra.mxu0 %v7606_v16 }
 0x6e2   : > { %2292 = vmatprep.subr.bf16.mxu1 %v7612_v17  ;;  %2333 = vmatprep.subr.bf16.mxu0 %v7614_v18 }
 0x6e5   : > { %2293 = vmatpush1.bf16.msra.mxu1 %v7616_v19  ;;  %2334 = vmatpush1.bf16.msra.mxu0 %v7618_v20 }
 0x6e6   : > { %2294 = vmatprep.subr.bf16.mxu1 %v7622_v21  ;;  %2335 = vmatprep.subr.bf16.mxu0 %v7624_v22 }
 0x6e9   : > { %2295 = vmatpush1.bf16.msra.mxu1 %v7628_v23  ;;  %2336 = vmatpush1.bf16.msra.mxu0 %v7630_v24 }
 0x6ea   : > { %2296 = vmatprep.subr.bf16.mxu1 %v7634_v25  ;;  %2337 = vmatprep.subr.bf16.mxu0 %v9076_v45 }
 0x6ed   : > { %2297 = vmatpush1.bf16.msra.mxu1 %v9077_v46  ;;  %2338 = vmatpush1.bf16.msra.mxu0 %v9078_v47 }
 0x6ee   : > { %2485 = vmatprep.subr.bf16.mxu1 %v9079_v48  ;;  %2526 = vmatprep.subr.bf16.mxu0 %v9080_v49 }
 0x7a3   : > { %v2112_v50 = vpop.f32.mrb[16].mxu1  ;;  %v2153_v51 = vpop.f32.mrb[20].mxu0 }
 0x7a4   : > { %v2164_v6 = vrot.slane %v2112_v50, 6  ;;  %v2168_v7 = vrot.slane %v2112_v50, 7  ;;  %v2114_v8 = vpop.f32.mrb[17].mxu1  ;;  %v2155_v9 = vpop.f32.mrb[21].mxu0  ;;  %v2166_v2 = vrot.slane %v2153_v51, 6  ;;  %v2170_v0 = vrot.slane %v2153_v51, 7 }
 0x7a5   : > { %v2165_v10 = vrot.slane %v2114_v8, 6  ;;  %v2169_v11 = vrot.slane %v2114_v8, 7  ;;  %v2116_v12 = vpop.f32.mrb[18].mxu1  ;;  %v2157_v13 = vpop.f32.mrb[22].mxu0  ;;  %v2167_v54 = vrot.slane %v2155_v9, 6  ;;  %v2171_v58 = vrot.slane %v2155_v9, 7 }
 0x7a6   : > { %v2180_v14 = vadd.f32 %v2164_v6, %v9074_v3  ;;  %v2184_v15 = vadd.f32 %v2168_v7, %v7722_v4  ;;  %v2117_v16 = vpop.f32.mrb[19].mxu1  ;;  %v2158_v17 = vpop.f32.mrb[23].mxu0  ;;  %v2182_v33 = vadd.f32 %v2166_v2, %v7742_v62  ;;  %v2186_v39 = vadd.f32 %v2170_v0, %v7748_v34 }
 0x7a7   : > { %v2181_v18 = vadd.f32 %v2165_v10, %v7719_v1  ;;  %v2185_v19 = vadd.f32 %v2169_v11, %v7727_v44  ;;  %v2183_v57 = vadd.f32 %v2167_v54, %v7735_v61  ;;  %v2187_v32 = vadd.f32 %v2171_v58, %v7738_v35 }
 0x7a8   : > { %v4906_v20 = vmul.f32 -1.442695, %v2180_v14  ;;  %v4907_v56 = vmul.f32 -1.442695, %v2184_v15  ;;  %v2062_v7 = vmul.f32 %v7848_v38, %v7770_v29  ;;  %v2063_v8 = vmul.f32 %v7850_v43, %v7757_v55 }
 0x7a9   : > { %v4908_v31 = vmul.f32 -1.442695, %v2181_v18  ;;  %v4909_v26 = vmul.f32 -1.442695, %v2185_v19  ;;  %v4910_v37 = vmul.f32 -1.442695, %v2183_v57  ;;  %v2064_v9 = vmul.f32 %v2026_v63, %v7767_v41 }
 0x7aa   : > { %5794 = vpow2.f32 %v4906_v20  ;;  %v4911_v59 = vmul.f32 -1.442695, %v2187_v32  ;;  %v2065_v11 = vmul.f32 %v2027_v60, %v7765_v52  ;;  %v2257_v0 = vrot.slane %v7861_v27, 7  ;;  %v2252_v27 = vld [vmem:[#allocation2 + $0x4] sm:$0x2] }
 0x7ab   : > { %5796 = vpow2.f32 %v4907_v56  ;;  %v7922_v13 = vadd.f32 %v2064_v9, %v2062_v7  ;;  %v2258_v32 = vrot.slane %v7863_v53, 7 }
 0x7ac   : > { %5798 = vpow2.f32 %v4908_v31  ;;  %v7924_v15 = vadd.f32 %v2065_v11, %v2063_v8 }
 0x7ad   : > { %5800 = vpow2.f32 %v4909_v26  ;;  %v8954_v43 = vrot.slane %v7922_v13, 7 }
 0x7ae   : > { %5802 = vtanh.f32 %v2182_v33  ;;  %v8953_v20 = vrot.slane %v7924_v15, 7 }
 0x7af   : > { %5804 = vtanh.f32 %v2186_v39 }
 0x7b0   : > { %5806 = vpow2.f32 %v4910_v37 }
 0x7b1   : > { %5808 = vpow2.f32 %v4911_v59 }
 0x7b4   : > { %v5795_v42 = vpop.eup %5794 }
 0x7b5   : > { %v5797_v40 = vpop.eup %5796  ;;  %v2194_v28 = vadd.f32 1.0, %v5795_v42  ;;  %v2261_v42 = vmul.f32 %v2257_v0, %v7767_v41  ;;  %v7989_v0 = vld [vmem:[#allocation14 + $0x6c] ss:$16 sps:$4 sm:$0xff]  }
 0x7b6   : > { %v5799_v48 = vpop.eup %5798  ;;  %v2195_v49 = vadd.f32 1.0, %v5797_v40 }
 0x7b7   : > { %v5801_v50 = vpop.eup %5800  ;;  %5810 = vrcp.f32 %v2194_v28  ;;  %v2206_v51 = vadd.f32 1.0, %v5799_v48  ;;  %v2249_v28 = vld [vmem:[#allocation2] sm:$0x2]  ;;  %v2262_v48 = vmul.f32 %v2258_v32, %v7765_v52  ;;  %v7995_v32 = vld [vmem:[#allocation14 + $0x68] ss:$16 sps:$4 sm:$0xff]  }
 0x7b8   : > { %5812 = vrcp.f32 %v2195_v49  ;;  %v2207_v6 = vadd.f32 1.0, %v5801_v50  ;;  %v5803_v10 = vpop.eup %5802 }
 0x7b9   : > { %5814 = vrcp.f32 %v2206_v51  ;;  %v5805_v12 = vpop.eup %5804 }
 0x7ba   : > { %5816 = vrcp.f32 %v2207_v6  ;;  %v5807_v14 = vpop.eup %5806 }
 0x7bb   : > { %v5809_v38 = vpop.eup %5808  ;;  %v2220_v19 = vadd.f32 1.0, %v5807_v14 }
 0x7bc   : > { %v2221_v56 = vadd.f32 1.0, %v5809_v38 }
 0x7bd   : > { %5818 = vrcp.f32 %v2220_v19  ;;  %v7960_v19 = vld [vmem:[#allocation14 + $0x24] ss:$16 sps:$4 sm:$0xff]  }
 0x7be   : > { %5820 = vrcp.f32 %v2221_v56  ;;  %v7971_v56 = vld [vmem:[#allocation14 + $0x28] ss:$16 sps:$4 sm:$0xff]  }
 0x7c1   : > { %v5811_v16 = vpop.eup %5810 }
 0x7c2   : > { %v5813_v17 = vpop.eup %5812  ;;  %v2234_v18 = vmul.f32 %v5811_v16, %v5803_v10 }
 0x7c3   : > { %v5815_v5 = vpop.eup %5814  ;;  %v2235_v63 = vmul.f32 %v5813_v17, %v5805_v12  ;;  %v7954_v17 = vld [vmem:[#allocation14] ss:$16 sps:$4 sm:$0xff]  }
 0x7c4   : > { %v5817_v36 = vpop.eup %5816  ;;  %v2232_v60 = vmul.f32 %v5815_v5, %v8954_v43  ;;  %v7963_v5 = vld [vmem:[#allocation14 + $0x2c] ss:$16 sps:$4 sm:$0xff]  }
 0x7c5   : > { %v2233_v31 = vmul.f32 %v5817_v36, %v8953_v20  ;;  %v7974_v36 = vld [vmem:[#allocation14 + $0x44] ss:$16 sps:$4 sm:$0xff]  }
 0x7c6   : > { %v7932_v26 = vadd.f32 %v2234_v18, %v2232_v60  ;;  %v7957_v18 = vld [vmem:[#allocation14 + $0x8] ss:$16 sps:$4 sm:$0xff]   ;;  %v7977_v60 = vld [vmem:[#allocation14 + $0x4c] ss:$16 sps:$4 sm:$0xff]  }
 0x7c7   : > { %v7934_v54 = vadd.f32 %v2235_v63, %v2233_v31  ;;  %v5819_v58 = vpop.eup %5818  ;;  %v7968_v63 = vld [vmem:[#allocation14 + $0x20] ss:$16 sps:$4 sm:$0xff]  }
 0x7c8   : > { %5822 = vtanh.f32 %v7932_v26  ;;  %v5821_v2 = vpop.eup %5820  ;;  %v7980_v31 = vld [vmem:[#allocation14 + $0x40] ss:$16 sps:$4 sm:$0xff]  }
 0x7c9   : > { %5824 = vtanh.f32 %v7934_v54 }
 0x7d2   : > { %v5823_v57 = vpop.eup %5822 }
 0x7d3   : > { %v5825_v33 = vpop.eup %5824  ;;  %v2240_v39 = vmul.f32 %v5823_v57, %v5819_v58  ;;  %v7983_v58 = vld [vmem:[#allocation14 + $0x48] ss:$16 sps:$4 sm:$0xff]   ;;  %v7992_v57 = vld [vmem:[#allocation14 + $0x60] ss:$16 sps:$4 sm:$0xff]  }
 0x7d4   : > { %v2241_v37 = vmul.f32 %v5825_v33, %v5821_v2  ;;  %v7986_v2 = vld [vmem:[#allocation14 + $0x64] ss:$16 sps:$4 sm:$0xff]  }
 0x7d5   : > { %v2242_v59 = vmul.f32 %v2240_v39, %v7770_v29  ;;  %v7998_v33 = vld [vmem:[#allocation14 + $0x84] ss:$16 sps:$4 sm:$0xff]   ;;  %v8001_v39 = vld [vmem:[#allocation14 + $0x8c] ss:$16 sps:$4 sm:$0xff]  }
 0x7d6   : > { %v2243_v40 = vmul.f32 %v2241_v37, %v7757_v55  ;;  %v8004_v37 = vld [vmem:[#allocation14 + $0x80] ss:$16 sps:$4 sm:$0xff]  }
 0x7d7   : > { %v2244_v49 = vpack.c.bf16 %v2242_v59, %v2242_v59  ;;  %v7945_v50 = vadd.f32 %v2261_v42, %v2242_v59  ;;  %v8007_v59 = vld [vmem:[#allocation14 + $0x88] ss:$16 sps:$4 sm:$0xff]   ;;  %v8010_v42 = vld [vmem:[#allocation14 + $0xa4] ss:$16 sps:$4 sm:$0xff]  }
 0x7d8   : > { %v2245_v53 = vpack.c.bf16 %v2243_v40, %v2243_v40  ;;  %v7947_v51 = vadd.f32 %v2262_v48, %v2243_v40  ;;  %v8013_v40 = vld [vmem:[#allocation14 + $0xac] ss:$16 sps:$4 sm:$0xff]   ;;  %v8019_v48 = vld [vmem:[#allocation14 + $0xa8] ss:$16 sps:$4 sm:$0xff]  }
 0x7d9   : > { %v2250_v6 = vsel %vm2248_vm10, %v2244_v49, %v2249_v28  ;;  %v2271_v7 = vpack.c.bf16 %v7945_v50, %v7945_v50  ;;  %v8016_v28 = vld [vmem:[#allocation14 + $0xa0] ss:$16 sps:$4 sm:$0xff]   ;;  %v8030_v49 = vld [vmem:[#allocation14 + $0x4] ss:$16 sps:$4 sm:$0xff]  }
 0x7da   : > { %2251 = vst [vmem:[#allocation2] sm:$0x2] %v2250_v6  ;;  %v2253_v8 = vsel %vm2248_vm10, %v2245_v53, %v2252_v27  ;;  %v2272_v9 = vpack.c.bf16 %v7947_v51, %v7947_v51  ;;  %9081 = vst [vmem:[#allocation67_spill] sm:$0xff] %v8030_v49  ;;  %v8033_v27 = vld [vmem:[#allocation14 + $0xc] ss:$16 sps:$4 sm:$0xff]  }
 0x7db   : > { %2254 = vst [vmem:[#allocation2 + $0x4] sm:$0x2] %v2253_v8  ;;  %v2275_v10 = vunpack.c.l.b16 %v2271_v7  ;;  %9082 = vst [vmem:[#allocation61_spill] sm:$0xff] %v8033_v27 }
 0x7dc   : > { %v2276_v11 = vunpack.c.l.b16 %v2272_v9 }
 0x7dd   : > { %v2277_v12 = vrot.slane %v2275_v10, 2 }
 0x7de   : > { %v2278_v14 = vrot.slane %v2276_v11, 1 }
 0x7e0   : > { %v2279_v38 = vsel %vm1259_vm3, %v2278_v14, %v2277_v12 }
 0x7e1   : > { %v2280_v16 = vpack.c.b16 %v2279_v38, %v2279_v38 }
 0x7e3   : > { %2315 = vmatmul.mubr.bf16.vlgmr.msra.gmra.mrb[20].mxu1 %v2280_v16  ;;  %2356 = vmatmul.mubr.bf16.vlgmr.msra.gmra.mrb[24].mxu0 %v2280_v16 }
 0x7e4   : > { %2486 = vmatpush1.bf16.msra.mxu1 %v7954_v17  ;;  %2527 = vmatpush1.bf16.msra.mxu0 %v7957_v18 }
 0x7e5   : > { %2487 = vmatprep.subr.bf16.mxu1 %v7960_v19  ;;  %2528 = vmatprep.subr.bf16.mxu0 %v7963_v5 }
 0x7e6   : > { %2517 = vmatprep.mubr.bf16.mxu1 %v9070_v30  ;;  %2558 = vmatprep.mubr.bf16.mxu0 %v9070_v30 }
 0x7e8   : > { %2488 = vmatpush1.bf16.msra.mxu1 %v7968_v63  ;;  %2529 = vmatpush1.bf16.msra.mxu0 %v7971_v56 }
 0x7e9   : > { %2489 = vmatprep.subr.bf16.mxu1 %v7974_v36  ;;  %2530 = vmatprep.subr.bf16.mxu0 %v7977_v60 }
 0x7ec   : > { %2490 = vmatpush1.bf16.msra.mxu1 %v7980_v31  ;;  %2531 = vmatpush1.bf16.msra.mxu0 %v7983_v58 }
 0x7ed   : > { %2491 = vmatprep.subr.bf16.mxu1 %v7986_v2  ;;  %2532 = vmatprep.subr.bf16.mxu0 %v7989_v0 }
 0x7f0   : > { %2492 = vmatpush1.bf16.msra.mxu1 %v7992_v57  ;;  %2533 = vmatpush1.bf16.msra.mxu0 %v7995_v32 }
 0x7f1   : > { %2493 = vmatprep.subr.bf16.mxu1 %v7998_v33  ;;  %2534 = vmatprep.subr.bf16.mxu0 %v8001_v39 }
 0x7f4   : > { %2494 = vmatpush1.bf16.msra.mxu1 %v8004_v37  ;;  %2535 = vmatpush1.bf16.msra.mxu0 %v8007_v59 }
 0x7f5   : > { %2495 = vmatprep.subr.bf16.mxu1 %v8010_v42  ;;  %2536 = vmatprep.subr.bf16.mxu0 %v8013_v40 }
 0x7f8   : > { %2496 = vmatpush1.bf16.msra.mxu1 %v8016_v28  ;;  %2537 = vmatpush1.bf16.msra.mxu0 %v8019_v48 }
 0x7f9   : > { %2497 = vmatprep.subr.bf16.mxu1 %v7622_v21  ;;  %2538 = vmatprep.subr.bf16.mxu0 %v7624_v22 }
 0x7fc   : > { %2498 = vmatpush1.bf16.msra.mxu1 %v7628_v23  ;;  %2539 = vmatpush1.bf16.msra.mxu0 %v7630_v24 }
 0x7fd   : > { %2499 = vmatprep.subr.bf16.mxu1 %v7634_v25  ;;  %2540 = vmatprep.subr.bf16.mxu0 %v9076_v45 }
 0x800   : > { %2500 = vmatpush1.bf16.msra.mxu1 %v9077_v46  ;;  %2541 = vmatpush1.bf16.msra.mxu0 %v9078_v47 }
 0x801   : > { %2689 = vmatprep.subr.bf16.mxu1 %v8030_v49  ;;  %2730 = vmatprep.subr.bf16.mxu0 %v8033_v27 }
 0x8b6   : > { %v2316_v21 = vpop.f32.mrb[20].mxu1  ;;  %v2357_v22 = vpop.f32.mrb[24].mxu0 }
 0x8b7   : > { %v2368_v23 = vrot.slane %v2316_v21, 5  ;;  %v2372_v24 = vrot.slane %v2316_v21, 6  ;;  %v2318_v53 = vpop.f32.mrb[21].mxu1  ;;  %v2359_v25 = vpop.f32.mrb[25].mxu0 }
 0x8b8   : > { %v2369_v6 = vrot.slane %v2318_v53, 5  ;;  %v2373_v45 = vrot.slane %v2318_v53, 6  ;;  %v2320_v7 = vpop.f32.mrb[22].mxu1  ;;  %v2361_v46 = vpop.f32.mrb[26].mxu0  ;;  %v2371_v20 = vrot.slane %v2359_v25, 5  ;;  %v2375_v43 = vrot.slane %v2359_v25, 6 }
 0x8b9   : > { %v2384_v47 = vadd.f32 %v2368_v23, %v9074_v3  ;;  %v2388_v8 = vadd.f32 %v2372_v24, %v7722_v4  ;;  %v2321_v9 = vpop.f32.mrb[23].mxu1  ;;  %v2362_v10 = vpop.f32.mrb[27].mxu0  ;;  %v2370_v53 = vrot.slane %v2357_v22, 5  ;;  %v2374_v7 = vrot.slane %v2357_v22, 6 }
 0x8ba   : > { %v2385_v11 = vadd.f32 %v2369_v6, %v7719_v1  ;;  %v2389_v12 = vadd.f32 %v2373_v45, %v7727_v44  ;;  %v2387_v23 = vadd.f32 %v2371_v20, %v7735_v61  ;;  %v2391_v24 = vadd.f32 %v2375_v43, %v7738_v35 }
 0x8bb   : > { %v4912_v14 = vmul.f32 -1.442695, %v2384_v47  ;;  %v4913_v38 = vmul.f32 -1.442695, %v2388_v8  ;;  %v2386_v6 = vadd.f32 %v2370_v53, %v7742_v62  ;;  %v2390_v45 = vadd.f32 %v2374_v7, %v7748_v34 }
 0x8bc   : > { %v4914_v16 = vmul.f32 -1.442695, %v2385_v11  ;;  %v4915_v21 = vmul.f32 -1.442695, %v2389_v12  ;;  %v4916_v46 = vmul.f32 -1.442695, %v2387_v23  ;;  %v2265_v12 = vmul.f32 %v7932_v26, %v7770_v29 }
 0x8bd   : > { %5826 = vpow2.f32 %v4912_v14  ;;  %v4917_v47 = vmul.f32 -1.442695, %v2391_v24  ;;  %v2266_v14 = vmul.f32 %v7934_v54, %v7757_v55  ;;  %v9084_v53 = vrot.slane %v7924_v15, 7 }
 0x8be   : > { %5828 = vpow2.f32 %v4913_v38  ;;  %v9083_v38 = vrot.slane %v7922_v13, 7 }
 0x8bf   : > { %5830 = vpow2.f32 %v4914_v16  ;;  %v2268_v7 = vmul.f32 %v9084_v53, %v7765_v52  ;;  %v2461_v53 = vrot.slane %v7947_v51, 7 }
 0x8c0   : > { %5832 = vpow2.f32 %v4915_v21  ;;  %v2267_v16 = vmul.f32 %v9083_v38, %v7767_v41 }
 0x8c1   : > { %5834 = vtanh.f32 %v2386_v6 }
 0x8c2   : > { %5836 = vtanh.f32 %v2390_v45  ;;  %v8054_v24 = vadd.f32 %v2267_v16, %v2265_v12  ;;  %v8056_v45 = vadd.f32 %v2268_v7, %v2266_v14  ;;  %v2460_v16 = vrot.slane %v7945_v50, 7 }
 0x8c3   : > { %5838 = vpow2.f32 %v4916_v46 }
 0x8c4   : > { %5840 = vpow2.f32 %v4917_v47  ;;  %v8956_v54 = vrot.slane %v8054_v24, 7 }
 0x8c7   : > { %v5827_v8 = vpop.eup %5826 }
 0x8c8   : > { %v5829_v9 = vpop.eup %5828  ;;  %v2398_v25 = vadd.f32 1.0, %v5827_v8 }
 0x8c9   : > { %v5831_v10 = vpop.eup %5830  ;;  %v2399_v22 = vadd.f32 1.0, %v5829_v9 }
 0x8ca   : > { %v5833_v11 = vpop.eup %5832  ;;  %5842 = vrcp.f32 %v2398_v25  ;;  %v2410_v20 = vadd.f32 1.0, %v5831_v10  ;;  %v8955_v10 = vrot.slane %v8056_v45, 7 }
 0x8cb   : > { %5844 = vrcp.f32 %v2399_v22  ;;  %v2411_v43 = vadd.f32 1.0, %v5833_v11  ;;  %v5835_v21 = vpop.eup %5834 }
 0x8cc   : > { %5846 = vrcp.f32 %v2410_v20  ;;  %v5837_v23 = vpop.eup %5836 }
 0x8cd   : > { %5848 = vrcp.f32 %v2411_v43  ;;  %v5839_v6 = vpop.eup %5838 }
 0x8ce   : > { %v5841_v26 = vpop.eup %5840  ;;  %v2424_v9 = vadd.f32 1.0, %v5839_v6 }
 0x8cf   : > { %v2425_v22 = vadd.f32 1.0, %v5841_v26 }
 0x8d0   : > { %5850 = vrcp.f32 %v2424_v9 }
 0x8d1   : > { %5852 = vrcp.f32 %v2425_v22 }
 0x8d4   : > { %v5843_v46 = vpop.eup %5842 }
 0x8d5   : > { %v5845_v47 = vpop.eup %5844  ;;  %v2438_v8 = vmul.f32 %v5843_v46, %v5835_v21  ;;  %v2464_v46 = vmul.f32 %v2460_v16, %v7767_v41 }
 0x8d6   : > { %v5847_v13 = vpop.eup %5846  ;;  %v2439_v25 = vmul.f32 %v5845_v47, %v5837_v23 }
 0x8d7   : > { %v5849_v15 = vpop.eup %5848  ;;  %v2436_v11 = vmul.f32 %v5847_v13, %v8956_v54 }
 0x8d8   : > { %v2437_v20 = vmul.f32 %v5849_v15, %v8955_v10  ;;  %v2455_v15 = vld [vmem:[#allocation2 + $0x4] sm:$0x2] }
 0x8d9   : > { %v8064_v43 = vadd.f32 %v2438_v8, %v2436_v11  ;;  %v2465_v8 = vmul.f32 %v2461_v53, %v7765_v52 }
 0x8da   : > { %v8066_v12 = vadd.f32 %v2439_v25, %v2437_v20  ;;  %v5851_v14 = vpop.eup %5850  ;;  %v2452_v25 = vld [vmem:[#allocation2] sm:$0x2] }
 0x8db   : > { %5854 = vtanh.f32 %v8064_v43  ;;  %v5853_v38 = vpop.eup %5852 }
 0x8dc   : > { %5856 = vtanh.f32 %v8066_v12 }
 0x8e5   : > { %v5855_v21 = vpop.eup %5854 }
 0x8e6   : > { %v5857_v7 = vpop.eup %5856  ;;  %v2444_v23 = vmul.f32 %v5855_v21, %v5851_v14 }
 0x8e7   : > { %v2445_v6 = vmul.f32 %v5857_v7, %v5853_v38 }
 0x8e8   : > { %v2446_v26 = vmul.f32 %v2444_v23, %v7770_v29 }
 0x8e9   : > { %v2447_v47 = vmul.f32 %v2445_v6, %v7757_v55  ;;  %v8110_v6 = vld [vmem:[#allocation14 + $0xc4] ss:$16 sps:$4 sm:$0xff]  }
 0x8ea   : > { %v2448_v9 = vpack.c.bf16 %v2446_v26, %v2446_v26  ;;  %v8077_v13 = vadd.f32 %v2464_v46, %v2446_v26  ;;  %v8113_v26 = vld [vmem:[#allocation14 + $0xcc] ss:$16 sps:$4 sm:$0xff]   ;;  %v8116_v46 = vld [vmem:[#allocation14 + $0xc0] ss:$16 sps:$4 sm:$0xff]  }
 0x8eb   : > { %v2449_v50 = vpack.c.bf16 %v2447_v47, %v2447_v47  ;;  %v8079_v51 = vadd.f32 %v2465_v8, %v2447_v47  ;;  %9085 = vst [vmem:[#allocation62_spill] sm:$0xff] %v8116_v46  ;;  %v8119_v47 = vld [vmem:[#allocation14 + $0xc8] ss:$16 sps:$4 sm:$0xff]   ;;  %v8122_v8 = vld [vmem:[#allocation14 + $0xe4] ss:$16 sps:$4 sm:$0xff]  }
 0x8ec   : > { %v2453_v22 = vsel %vm2451_vm12, %v2448_v9, %v2452_v25  ;;  %v2474_v11 = vpack.c.bf16 %v8077_v13, %v8077_v13  ;;  %9086 = vst [vmem:[#allocation63_spill] sm:$0xff] %v8119_v47  ;;  %9087 = vst [vmem:[#allocation59_spill] sm:$0xff] %v8122_v8  ;;  %v8125_v9 = vld [vmem:[#allocation14 + $0xec] ss:$16 sps:$4 sm:$0xff]   ;;  %v8131_v25 = vld [vmem:[#allocation14 + $0xe8] ss:$16 sps:$4 sm:$0xff]  }
 0x8ed   : > { %2454 = vst [vmem:[#allocation2] sm:$0x2] %v2453_v22  ;;  %v2456_v20 = vsel %vm2451_vm12, %v2449_v50, %v2455_v15  ;;  %v2475_v14 = vpack.c.bf16 %v8079_v51, %v8079_v51  ;;  %9088 = vst [vmem:[#allocation60_spill] sm:$0xff] %v8125_v9  ;;  %v8128_v50 = vld [vmem:[#allocation14 + $0xe0] ss:$16 sps:$4 sm:$0xff]  }
 0x8ee   : > { %2457 = vst [vmem:[#allocation2 + $0x4] sm:$0x2] %v2456_v20  ;;  %v2478_v38 = vunpack.c.l.b16 %v2474_v11  ;;  %9089 = vst [vmem:[#allocation68_spill] sm:$0xff] %v8128_v50 }
 0x8ef   : > { %v2479_v16 = vunpack.c.l.b16 %v2475_v14  ;;  %9090 = vst [vmem:[#allocation69_spill] sm:$0xff] %v8131_v25 }
 0x8f0   : > { %v2480_v21 = vrot.slane %v2478_v38, 3 }
 0x8f1   : > { %v2481_v53 = vrot.slane %v2479_v16, 2 }
 0x8f3   : > { %v2482_v7 = vsel %vm1259_vm3, %v2481_v53, %v2480_v21 }
 0x8f4   : > { %v2483_v23 = vpack.c.b16 %v2482_v7, %v2482_v7 }
 0x8f6   : > { %2518 = vmatmul.mubr.bf16.vlgmr.msra.gmra.mrb[24].mxu1 %v2483_v23  ;;  %2559 = vmatmul.mubr.bf16.vlgmr.msra.gmra.mrb[28].mxu0 %v2483_v23 }
 0x8f7   : > { %2690 = vmatpush1.bf16.msra.mxu1 %v7954_v17  ;;  %2731 = vmatpush1.bf16.msra.mxu0 %v7957_v18 }
 0x8f8   : > { %2691 = vmatprep.subr.bf16.mxu1 %v7960_v19  ;;  %2732 = vmatprep.subr.bf16.mxu0 %v7963_v5 }
 0x8f9   : > { %2721 = vmatprep.mubr.bf16.mxu1 %v9070_v30  ;;  %2762 = vmatprep.mubr.bf16.mxu0 %v9070_v30 }
 0x8fb   : > { %2692 = vmatpush1.bf16.msra.mxu1 %v7968_v63  ;;  %2733 = vmatpush1.bf16.msra.mxu0 %v7971_v56 }
 0x8fc   : > { %2693 = vmatprep.subr.bf16.mxu1 %v7974_v36  ;;  %2734 = vmatprep.subr.bf16.mxu0 %v7977_v60 }
 0x8ff   : > { %2694 = vmatpush1.bf16.msra.mxu1 %v7980_v31  ;;  %2735 = vmatpush1.bf16.msra.mxu0 %v7983_v58 }
 0x900   : > { %2695 = vmatprep.subr.bf16.mxu1 %v7986_v2  ;;  %2736 = vmatprep.subr.bf16.mxu0 %v7989_v0 }
 0x903   : > { %2696 = vmatpush1.bf16.msra.mxu1 %v7992_v57  ;;  %2737 = vmatpush1.bf16.msra.mxu0 %v7995_v32 }
 0x904   : > { %2697 = vmatprep.subr.bf16.mxu1 %v7998_v33  ;;  %2738 = vmatprep.subr.bf16.mxu0 %v8001_v39 }
 0x907   : > { %2698 = vmatpush1.bf16.msra.mxu1 %v8004_v37  ;;  %2739 = vmatpush1.bf16.msra.mxu0 %v8007_v59 }
 0x908   : > { %2699 = vmatprep.subr.bf16.mxu1 %v8010_v42  ;;  %2740 = vmatprep.subr.bf16.mxu0 %v8013_v40 }
 0x90b   : > { %2700 = vmatpush1.bf16.msra.mxu1 %v8016_v28  ;;  %2741 = vmatpush1.bf16.msra.mxu0 %v8019_v48 }
 0x90c   : > { %2701 = vmatprep.subr.bf16.mxu1 %v8110_v6  ;;  %2742 = vmatprep.subr.bf16.mxu0 %v8113_v26 }
 0x90f   : > { %2702 = vmatpush1.bf16.msra.mxu1 %v8116_v46  ;;  %2743 = vmatpush1.bf16.msra.mxu0 %v8119_v47 }
 0x910   : > { %2703 = vmatprep.subr.bf16.mxu1 %v8122_v8  ;;  %2744 = vmatprep.subr.bf16.mxu0 %v8125_v9 }
 0x913   : > { %2704 = vmatpush1.bf16.msra.mxu1 %v8128_v50  ;;  %2745 = vmatpush1.bf16.msra.mxu0 %v8131_v25 }
 0x914   : > { %2892 = vmatprep.subr.bf16.mxu1 %v8030_v49  ;;  %2933 = vmatprep.subr.bf16.mxu0 %v8033_v27 }
 0x9c9   : > { %v2519_v22 = vpop.f32.mrb[24].mxu1  ;;  %v2560_v15 = vpop.f32.mrb[28].mxu0 }
 0x9ca   : > { %v2571_v11 = vrot.slane %v2519_v22, 4  ;;  %v2575_v20 = vrot.slane %v2519_v22, 5  ;;  %v2521_v14 = vpop.f32.mrb[25].mxu1  ;;  %v2562_v38 = vpop.f32.mrb[29].mxu0 }
 0x9cb   : > { %v2572_v16 = vrot.slane %v2521_v14, 4  ;;  %v2576_v21 = vrot.slane %v2521_v14, 5  ;;  %v2523_v53 = vpop.f32.mrb[26].mxu1  ;;  %v2564_v7 = vpop.f32.mrb[30].mxu0  ;;  %v2574_v47 = vrot.slane %v2562_v38, 4  ;;  %v2578_v46 = vrot.slane %v2562_v38, 5 }
 0x9cc   : > { %v2587_v23 = vadd.f32 %v2571_v11, %v9074_v3  ;;  %v2591_v10 = vadd.f32 %v2575_v20, %v7722_v4  ;;  %v2524_v54 = vpop.f32.mrb[27].mxu1  ;;  %v2565_v25 = vpop.f32.mrb[31].mxu0  ;;  %v2573_v14 = vrot.slane %v2560_v15, 4  ;;  %v2577_v53 = vrot.slane %v2560_v15, 5 }
 0x9cd   : > { %v2588_v49 = vadd.f32 %v2572_v16, %v7719_v1  ;;  %v2592_v27 = vadd.f32 %v2576_v21, %v7727_v44  ;;  %v2590_v11 = vadd.f32 %v2574_v47, %v7735_v61  ;;  %v2594_v54 = vadd.f32 %v2578_v46, %v7738_v35 }
 0x9ce   : > { %v4918_v50 = vmul.f32 -1.442695, %v2587_v23  ;;  %v4919_v9 = vmul.f32 -1.442695, %v2591_v10  ;;  %v2589_v25 = vadd.f32 %v2573_v14, %v7742_v62  ;;  %v2593_v20 = vadd.f32 %v2577_v53, %v7748_v34 }
 0x9cf   : > { %v4920_v8 = vmul.f32 -1.442695, %v2588_v49  ;;  %v4921_v22 = vmul.f32 -1.442695, %v2592_v27  ;;  %v4922_v16 = vmul.f32 -1.442695, %v2590_v11  ;;  %v2468_v38 = vmul.f32 %v8064_v43, %v7770_v29 }
 0x9d0   : > { %5858 = vpow2.f32 %v4918_v50  ;;  %v4923_v10 = vmul.f32 -1.442695, %v2594_v54  ;;  %v2469_v21 = vmul.f32 %v8066_v12, %v7757_v55  ;;  %v9091_v7 = vrot.slane %v8054_v24, 7 }
 0x9d1   : > { %5860 = vpow2.f32 %v4919_v9  ;;  %v9092_v14 = vrot.slane %v8056_v45, 7 }
 0x9d2   : > { %5862 = vpow2.f32 %v4920_v8  ;;  %v2470_v23 = vmul.f32 %v9091_v7, %v7767_v41 }
 0x9d3   : > { %5864 = vpow2.f32 %v4921_v22  ;;  %v2471_v53 = vmul.f32 %v9092_v14, %v7765_v52  ;;  %v2665_v14 = vrot.slane %v8079_v51, 7 }
 0x9d4   : > { %5866 = vtanh.f32 %v2589_v25  ;;  %v8154_v54 = vadd.f32 %v2470_v23, %v2468_v38  ;;  %v2664_v23 = vrot.slane %v8077_v13, 7 }
 0x9d5   : > { %5868 = vtanh.f32 %v2593_v20  ;;  %v8156_v20 = vadd.f32 %v2471_v53, %v2469_v21 }
 0x9d6   : > { %5870 = vpow2.f32 %v4922_v16  ;;  %v8972_v12 = vrot.slane %v8154_v54, 7 }
 0x9d7   : > { %5872 = vpow2.f32 %v4923_v10 }
 0x9da   : > { %v5859_v49 = vpop.eup %5858 }
 0x9db   : > { %v5861_v27 = vpop.eup %5860  ;;  %v2601_v50 = vadd.f32 1.0, %v5859_v49 }
 0x9dc   : > { %v5863_v9 = vpop.eup %5862  ;;  %v2602_v15 = vadd.f32 1.0, %v5861_v27 }
 0x9dd   : > { %v5865_v8 = vpop.eup %5864  ;;  %5874 = vrcp.f32 %v2601_v50  ;;  %v2613_v47 = vadd.f32 1.0, %v5863_v9  ;;  %v8971_v9 = vrot.slane %v8156_v20, 7 }
 0x9de   : > { %5876 = vrcp.f32 %v2602_v15  ;;  %v2614_v46 = vadd.f32 1.0, %v5865_v8  ;;  %v5867_v22 = vpop.eup %5866 }
 0x9df   : > { %5878 = vrcp.f32 %v2613_v47  ;;  %v5869_v11 = vpop.eup %5868 }
 0x9e0   : > { %5880 = vrcp.f32 %v2614_v46  ;;  %v5871_v25 = vpop.eup %5870 }
 0x9e1   : > { %v5873_v43 = vpop.eup %5872  ;;  %v2627_v27 = vadd.f32 1.0, %v5871_v25 }
 0x9e2   : > { %v2628_v15 = vadd.f32 1.0, %v5873_v43 }
 0x9e3   : > { %5882 = vrcp.f32 %v2627_v27  ;;  %v2669_v27 = vmul.f32 %v2665_v14, %v7765_v52 }
 0x9e4   : > { %5884 = vrcp.f32 %v2628_v15 }
 0x9e7   : > { %v5875_v16 = vpop.eup %5874 }
 0x9e8   : > { %v5877_v10 = vpop.eup %5876  ;;  %v2641_v49 = vmul.f32 %v5875_v16, %v5867_v22  ;;  %v2668_v16 = vmul.f32 %v2664_v23, %v7767_v41 }
 0x9e9   : > { %v5879_v24 = vpop.eup %5878  ;;  %v2642_v50 = vmul.f32 %v5877_v10, %v5869_v11 }
 0x9ea   : > { %v5881_v45 = vpop.eup %5880  ;;  %v2639_v8 = vmul.f32 %v5879_v24, %v8972_v12  ;;  %v2659_v24 = vld [vmem:[#allocation2 + $0x4] sm:$0x4] }
 0x9eb   : > { %v2640_v47 = vmul.f32 %v5881_v45, %v8971_v9 }
 0x9ec   : > { %v8164_v46 = vadd.f32 %v2641_v49, %v2639_v8  ;;  %v2656_v49 = vld [vmem:[#allocation2] sm:$0x4] }
 0x9ed   : > { %v8166_v38 = vadd.f32 %v2642_v50, %v2640_v47  ;;  %v5883_v21 = vpop.eup %5882 }
 0x9ee   : > { %5886 = vtanh.f32 %v8164_v46  ;;  %v5885_v7 = vpop.eup %5884 }
 0x9ef   : > { %5888 = vtanh.f32 %v8166_v38 }
 0x9f8   : > { %v5887_v22 = vpop.eup %5886 }
 0x9f9   : > { %v5889_v53 = vpop.eup %5888  ;;  %v2647_v11 = vmul.f32 %v5887_v22, %v5883_v21 }
 0x9fa   : > { %v2648_v25 = vmul.f32 %v5889_v53, %v5885_v7 }
 0x9fb   : > { %v2649_v43 = vmul.f32 %v2647_v11, %v7770_v29 }
 0x9fc   : > { %v2650_v10 = vmul.f32 %v2648_v25, %v7757_v55  ;;  %v9093_v25 = vld [vmem:[#allocation62_spill] sm:$0xff] }
 0x9fd   : > { %v2651_v13 = vpack.c.bf16 %v2649_v43, %v2649_v43  ;;  %v8177_v50 = vadd.f32 %v2668_v16, %v2649_v43  ;;  %v9094_v43 = vld [vmem:[#allocation63_spill] sm:$0xff] }
 0x9fe   : > { %v2652_v51 = vpack.c.bf16 %v2650_v10, %v2650_v10  ;;  %v8179_v15 = vadd.f32 %v2669_v27, %v2650_v10  ;;  %v9095_v16 = vld [vmem:[#allocation59_spill] sm:$0xff]  ;;  %v9096_v10 = vld [vmem:[#allocation60_spill] sm:$0xff]  ;;  %v9098_v27 = vld [vmem:[#allocation69_spill] sm:$0xff] }
 0x9ff   : > { %v2657_v45 = vsel %vm2655_vm15, %v2651_v13, %v2656_v49  ;;  %v2678_v8 = vpack.c.bf16 %v8177_v50, %v8177_v50  ;;  %v9097_v49 = vld [vmem:[#allocation68_spill] sm:$0xff]  ;;  %v9099_v13 = vld [vmem:[#allocation67_spill] sm:$0xff] }
 0xa00   : > { %2658 = vst [vmem:[#allocation2] sm:$0x4] %v2657_v45  ;;  %v2660_v47 = vsel %vm2655_vm15, %v2652_v51, %v2659_v24  ;;  %v2679_v21 = vpack.c.bf16 %v8179_v15, %v8179_v15  ;;  %v9100_v24 = vld [vmem:[#allocation61_spill] sm:$0xff] }
 0xa01   : > { %2661 = vst [vmem:[#allocation2 + $0x4] sm:$0x4] %v2660_v47  ;;  %v2682_v7 = vunpack.c.l.b16 %v2678_v8 }
 0xa02   : > { %v2683_v23 = vunpack.c.l.b16 %v2679_v21 }
 0xa03   : > { %v2684_v22 = vrot.slane %v2682_v7, 4 }
 0xa04   : > { %v2685_v14 = vrot.slane %v2683_v23, 3 }
 0xa06   : > { %v2686_v53 = vsel %vm1259_vm3, %v2685_v14, %v2684_v22 }
 0xa07   : > { %v2687_v11 = vpack.c.b16 %v2686_v53, %v2686_v53 }
 0xa09   : > { %2722 = vmatmul.mubr.bf16.vlgmr.msra.gmra.mrb[28].mxu1 %v2687_v11  ;;  %2763 = vmatmul.mubr.bf16.vlgmr.msra.gmra.mrb[32].mxu0 %v2687_v11 }
 0xa0a   : > { %2893 = vmatpush1.bf16.msra.mxu1 %v7954_v17  ;;  %2934 = vmatpush1.bf16.msra.mxu0 %v7957_v18 }
 0xa0b   : > { %2894 = vmatprep.subr.bf16.mxu1 %v7960_v19  ;;  %2935 = vmatprep.subr.bf16.mxu0 %v7963_v5 }
 0xa0c   : > { %2924 = vmatprep.mubr.bf16.mxu1 %v9070_v30  ;;  %2965 = vmatprep.mubr.bf16.mxu0 %v9070_v30 }
 0xa0e   : > { %2895 = vmatpush1.bf16.msra.mxu1 %v7968_v63  ;;  %2936 = vmatpush1.bf16.msra.mxu0 %v7971_v56 }
 0xa0f   : > { %2896 = vmatprep.subr.bf16.mxu1 %v7974_v36  ;;  %2937 = vmatprep.subr.bf16.mxu0 %v7977_v60 }
 0xa12   : > { %2897 = vmatpush1.bf16.msra.mxu1 %v7980_v31  ;;  %2938 = vmatpush1.bf16.msra.mxu0 %v7983_v58 }
 0xa13   : > { %2898 = vmatprep.subr.bf16.mxu1 %v7986_v2  ;;  %2939 = vmatprep.subr.bf16.mxu0 %v7989_v0 }
 0xa16   : > { %2899 = vmatpush1.bf16.msra.mxu1 %v7992_v57  ;;  %2940 = vmatpush1.bf16.msra.mxu0 %v7995_v32 }
 0xa17   : > { %2900 = vmatprep.subr.bf16.mxu1 %v7998_v33  ;;  %2941 = vmatprep.subr.bf16.mxu0 %v8001_v39 }
 0xa1a   : > { %2901 = vmatpush1.bf16.msra.mxu1 %v8004_v37  ;;  %2942 = vmatpush1.bf16.msra.mxu0 %v8007_v59 }
 0xa1b   : > { %2902 = vmatprep.subr.bf16.mxu1 %v8010_v42  ;;  %2943 = vmatprep.subr.bf16.mxu0 %v8013_v40 }
 0xa1e   : > { %2903 = vmatpush1.bf16.msra.mxu1 %v8016_v28  ;;  %2944 = vmatpush1.bf16.msra.mxu0 %v8019_v48 }
 0xa1f   : > { %2904 = vmatprep.subr.bf16.mxu1 %v8110_v6  ;;  %2945 = vmatprep.subr.bf16.mxu0 %v8113_v26 }
 0xa22   : > { %2905 = vmatpush1.bf16.msra.mxu1 %v9093_v25  ;;  %2946 = vmatpush1.bf16.msra.mxu0 %v9094_v43 }
 0xa23   : > { %2906 = vmatprep.subr.bf16.mxu1 %v9095_v16  ;;  %2947 = vmatprep.subr.bf16.mxu0 %v9096_v10 }
 0xa26   : > { %2907 = vmatpush1.bf16.msra.mxu1 %v9097_v49  ;;  %2948 = vmatpush1.bf16.msra.mxu0 %v9098_v27 }
 0xa27   : > { %3096 = vmatprep.subr.bf16.mxu1 %v9099_v13  ;;  %3137 = vmatprep.subr.bf16.mxu0 %v9100_v24 }
 0xadc   : > { %v2723_v51 = vpop.f32.mrb[28].mxu1  ;;  %v2764_v45 = vpop.f32.mrb[32].mxu0 }
 0xadd   : > { %v2775_v8 = vrot.slane %v2723_v51, 3  ;;  %v2779_v47 = vrot.slane %v2723_v51, 4  ;;  %v2725_v21 = vpop.f32.mrb[29].mxu1  ;;  %v2766_v7 = vpop.f32.mrb[33].mxu0 }
 0xade   : > { %v2776_v23 = vrot.slane %v2725_v21, 3  ;;  %v2780_v22 = vrot.slane %v2725_v21, 4  ;;  %v2727_v14 = vpop.f32.mrb[30].mxu1  ;;  %v2768_v53 = vpop.f32.mrb[34].mxu0  ;;  %v2778_v43 = vrot.slane %v2766_v7, 3  ;;  %v2782_v25 = vrot.slane %v2766_v7, 4 }
 0xadf   : > { %v2791_v11 = vadd.f32 %v2775_v8, %v9074_v3  ;;  %v2795_v9 = vadd.f32 %v2779_v47, %v7722_v4  ;;  %v2728_v12 = vpop.f32.mrb[31].mxu1  ;;  %v2769_v27 = vpop.f32.mrb[35].mxu0  ;;  %v2777_v21 = vrot.slane %v2764_v45, 3  ;;  %v2781_v14 = vrot.slane %v2764_v45, 4 }
 0xae0   : > { %v2792_v13 = vadd.f32 %v2776_v23, %v7719_v1  ;;  %v2796_v24 = vadd.f32 %v2780_v22, %v7727_v44  ;;  %v2794_v8 = vadd.f32 %v2778_v43, %v7735_v61  ;;  %v2798_v12 = vadd.f32 %v2782_v25, %v7738_v35 }
 0xae1   : > { %v4924_v49 = vmul.f32 -1.442695, %v2791_v11  ;;  %v4925_v10 = vmul.f32 -1.442695, %v2795_v9  ;;  %v2793_v27 = vadd.f32 %v2777_v21, %v7742_v62  ;;  %v2797_v47 = vadd.f32 %v2781_v14, %v7748_v34 }
 0xae2   : > { %v4926_v16 = vmul.f32 -1.442695, %v2792_v13  ;;  %v4927_v51 = vmul.f32 -1.442695, %v2796_v24  ;;  %v4928_v23 = vmul.f32 -1.442695, %v2794_v8  ;;  %v2672_v53 = vmul.f32 %v8164_v46, %v7770_v29 }
 0xae3   : > { %5890 = vpow2.f32 %v4924_v49  ;;  %v4929_v9 = vmul.f32 -1.442695, %v2798_v12  ;;  %v2673_v11 = vmul.f32 %v8166_v38, %v7757_v55  ;;  %v9101_v13 = vrot.slane %v8154_v54, 7 }
 0xae4   : > { %5892 = vpow2.f32 %v4925_v10  ;;  %v9102_v21 = vrot.slane %v8156_v20, 7 }
 0xae5   : > { %5894 = vpow2.f32 %v4926_v16  ;;  %v2674_v24 = vmul.f32 %v9101_v13, %v7767_v41 }
 0xae6   : > { %5896 = vpow2.f32 %v4927_v51  ;;  %v2675_v14 = vmul.f32 %v9102_v21, %v7765_v52  ;;  %v2868_v21 = vrot.slane %v8179_v15, 7 }
 0xae7   : > { %5898 = vtanh.f32 %v2793_v27  ;;  %v8238_v12 = vadd.f32 %v2674_v24, %v2672_v53  ;;  %v2867_v24 = vrot.slane %v8177_v50, 7 }
 0xae8   : > { %5900 = vtanh.f32 %v2797_v47  ;;  %v8240_v47 = vadd.f32 %v2675_v14, %v2673_v11 }
 0xae9   : > { %5902 = vpow2.f32 %v4928_v23  ;;  %v2839_v38 = vrot.slane %v8238_v12, 7 }
 0xaea   : > { %5904 = vpow2.f32 %v4929_v9 }
 0xaed   : > { %v5891_v22 = vpop.eup %5890 }
 0xaee   : > { %v5893_v49 = vpop.eup %5892  ;;  %v2805_v7 = vadd.f32 1.0, %v5891_v22 }
 0xaef   : > { %v5895_v10 = vpop.eup %5894  ;;  %v2806_v45 = vadd.f32 1.0, %v5893_v49 }
 0xaf0   : > { %v5897_v16 = vpop.eup %5896  ;;  %5906 = vrcp.f32 %v2805_v7  ;;  %v2817_v43 = vadd.f32 1.0, %v5895_v10  ;;  %v2840_v10 = vrot.slane %v8240_v47, 7 }
 0xaf1   : > { %5908 = vrcp.f32 %v2806_v45  ;;  %v2818_v25 = vadd.f32 1.0, %v5897_v16  ;;  %v5899_v51 = vpop.eup %5898 }
 0xaf2   : > { %5910 = vrcp.f32 %v2817_v43  ;;  %v5901_v8 = vpop.eup %5900 }
 0xaf3   : > { %5912 = vrcp.f32 %v2818_v25  ;;  %v5903_v27 = vpop.eup %5902 }
 0xaf4   : > { %v5905_v46 = vpop.eup %5904  ;;  %v2831_v49 = vadd.f32 1.0, %v5903_v27 }
 0xaf5   : > { %v2832_v45 = vadd.f32 1.0, %v5905_v46 }
 0xaf6   : > { %5914 = vrcp.f32 %v2831_v49 }
 0xaf7   : > { %5916 = vrcp.f32 %v2832_v45 }
 0xafa   : > { %v5907_v23 = vpop.eup %5906 }
 0xafb   : > { %v5909_v9 = vpop.eup %5908  ;;  %v2845_v22 = vmul.f32 %v5907_v23, %v5899_v51  ;;  %v2871_v23 = vmul.f32 %v2867_v24, %v7767_v41 }
 0xafc   : > { %v5911_v54 = vpop.eup %5910  ;;  %v2846_v7 = vmul.f32 %v5909_v9, %v5901_v8 }
 0xafd   : > { %v5913_v20 = vpop.eup %5912  ;;  %v2843_v16 = vmul.f32 %v5911_v54, %v2839_v38 }
 0xafe   : > { %v2844_v43 = vmul.f32 %v5913_v20, %v2840_v10  ;;  %v2862_v20 = vld [vmem:[#allocation2 + $0x4] sm:$0x4] }
 0xaff   : > { %v8248_v25 = vadd.f32 %v2845_v22, %v2843_v16  ;;  %v2872_v22 = vmul.f32 %v2868_v21, %v7765_v52 }
 0xb00   : > { %v8250_v53 = vadd.f32 %v2846_v7, %v2844_v43  ;;  %v5915_v11 = vpop.eup %5914  ;;  %v2859_v7 = vld [vmem:[#allocation2] sm:$0x4] }
 0xb01   : > { %5918 = vtanh.f32 %v8248_v25  ;;  %v5917_v13 = vpop.eup %5916 }
 0xb02   : > { %5920 = vtanh.f32 %v8250_v53 }
 0xb0b   : > { %v5919_v51 = vpop.eup %5918 }
 0xb0c   : > { %v5921_v14 = vpop.eup %5920  ;;  %v2851_v8 = vmul.f32 %v5919_v51, %v5915_v11 }
 0xb0d   : > { %v2852_v27 = vmul.f32 %v5921_v14, %v5917_v13 }
 0xb0e   : > { %v2853_v46 = vmul.f32 %v2851_v8, %v7770_v29 }
 0xb0f   : > { %v2854_v9 = vmul.f32 %v2852_v27, %v7757_v55 }
 0xb10   : > { %v2855_v49 = vpack.c.bf16 %v2853_v46, %v2853_v46  ;;  %v8261_v54 = vadd.f32 %v2871_v23, %v2853_v46 }
 0xb11   : > { %v2856_v50 = vpack.c.bf16 %v2854_v9, %v2854_v9  ;;  %v8263_v15 = vadd.f32 %v2872_v22, %v2854_v9 }
 0xb12   : > { %v2860_v45 = vsel %vm2858_vm5, %v2855_v49, %v2859_v7  ;;  %v2881_v16 = vpack.c.bf16 %v8261_v54, %v8261_v54 }
 0xb13   : > { %2861 = vst [vmem:[#allocation2] sm:$0x4] %v2860_v45  ;;  %v2863_v43 = vsel %vm2858_vm5, %v2856_v50, %v2862_v20  ;;  %v2882_v11 = vpack.c.bf16 %v8263_v15, %v8263_v15 }
 0xb14   : > { %2864 = vst [vmem:[#allocation2 + $0x4] sm:$0x4] %v2863_v43  ;;  %v2885_v13 = vunpack.c.l.b16 %v2881_v16 }
 0xb15   : > { %v2886_v24 = vunpack.c.l.b16 %v2882_v11 }
 0xb16   : > { %v2887_v51 = vrot.slane %v2885_v13, 5 }
 0xb17   : > { %v2888_v21 = vrot.slane %v2886_v24, 4 }
 0xb19   : > { %v2889_v14 = vsel %vm1259_vm3, %v2888_v21, %v2887_v51 }
 0xb1a   : > { %v2890_v8 = vpack.c.b16 %v2889_v14, %v2889_v14 }
 0xb1c   : > { %2925 = vmatmul.mubr.bf16.vlgmr.msra.gmra.mrb[32].mxu1 %v2890_v8  ;;  %2966 = vmatmul.mubr.bf16.vlgmr.msra.gmra.mrb[36].mxu0 %v2890_v8 }
 0xb1d   : > { %3097 = vmatpush1.bf16.msra.mxu1 %v7954_v17  ;;  %3138 = vmatpush1.bf16.msra.mxu0 %v7957_v18  ;;  %v9103_v17 = vld [vmem:[#allocation62_spill] sm:$0xff]  ;;  %v9104_v18 = vld [vmem:[#allocation63_spill] sm:$0xff] }
 0xb1e   : > { %3098 = vmatprep.subr.bf16.mxu1 %v7960_v19  ;;  %3139 = vmatprep.subr.bf16.mxu0 %v7963_v5  ;;  %v9105_v19 = vld [vmem:[#allocation59_spill] sm:$0xff]  ;;  %v9106_v5 = vld [vmem:[#allocation60_spill] sm:$0xff] }
 0xb1f   : > { %3128 = vmatprep.mubr.bf16.mxu1 %v9070_v30  ;;  %3169 = vmatprep.mubr.bf16.mxu0 %v9070_v30 }
 0xb21   : > { %3099 = vmatpush1.bf16.msra.mxu1 %v7968_v63  ;;  %3140 = vmatpush1.bf16.msra.mxu0 %v7971_v56  ;;  %v9107_v63 = vld [vmem:[#allocation68_spill] sm:$0xff]  ;;  %v9108_v56 = vld [vmem:[#allocation69_spill] sm:$0xff] }
 0xb22   : > { %3100 = vmatprep.subr.bf16.mxu1 %v7974_v36  ;;  %3141 = vmatprep.subr.bf16.mxu0 %v7977_v60  ;;  %v9109_v36 = vmov 0.0  }
 0xb25   : > { %3101 = vmatpush1.bf16.msra.mxu1 %v7980_v31  ;;  %3142 = vmatpush1.bf16.msra.mxu0 %v7983_v58 }
 0xb26   : > { %3102 = vmatprep.subr.bf16.mxu1 %v7986_v2  ;;  %3143 = vmatprep.subr.bf16.mxu0 %v7989_v0 }
 0xb29   : > { %3103 = vmatpush1.bf16.msra.mxu1 %v7992_v57  ;;  %3144 = vmatpush1.bf16.msra.mxu0 %v7995_v32 }
 0xb2a   : > { %3104 = vmatprep.subr.bf16.mxu1 %v7998_v33  ;;  %3145 = vmatprep.subr.bf16.mxu0 %v8001_v39 }
 0xb2d   : > { %3105 = vmatpush1.bf16.msra.mxu1 %v8004_v37  ;;  %3146 = vmatpush1.bf16.msra.mxu0 %v8007_v59 }
 0xb2e   : > { %3106 = vmatprep.subr.bf16.mxu1 %v8010_v42  ;;  %3147 = vmatprep.subr.bf16.mxu0 %v8013_v40 }
 0xb31   : > { %3107 = vmatpush1.bf16.msra.mxu1 %v8016_v28  ;;  %3148 = vmatpush1.bf16.msra.mxu0 %v8019_v48 }
 0xb32   : > { %3108 = vmatprep.subr.bf16.mxu1 %v8110_v6  ;;  %3149 = vmatprep.subr.bf16.mxu0 %v8113_v26 }
 0xb35   : > { %3109 = vmatpush1.bf16.msra.mxu1 %v9103_v17  ;;  %3150 = vmatpush1.bf16.msra.mxu0 %v9104_v18 }
 0xb36   : > { %3110 = vmatprep.subr.bf16.mxu1 %v9105_v19  ;;  %3151 = vmatprep.subr.bf16.mxu0 %v9106_v5  ;;  %v2875_v19 = vmul.f32 %v8248_v25, %v7770_v29  ;;  %v2876_v5 = vmul.f32 %v8250_v53, %v7757_v55 }
 0xb39   : > { %3111 = vmatpush1.bf16.msra.mxu1 %v9107_v63  ;;  %3152 = vmatpush1.bf16.msra.mxu0 %v9108_v56  ;;  %v2877_v63 = vmul.f32 %v2839_v38, %v7767_v41 }
 0xb3a   : > { %5208 = vmatprep.subr.bf16.mxu1 %v9109_v36  ;;  %5228 = vmatprep.subr.bf16.mxu0 %v9109_v36 }
 0xbef   : > { %v2926_v60 = vpop.f32.mrb[32].mxu1  ;;  %v2967_v31 = vpop.f32.mrb[36].mxu0 }
 0xbf0   : > { %v2978_v58 = vrot.slane %v2926_v60, 2  ;;  %v2982_v2 = vrot.slane %v2926_v60, 3  ;;  %v2928_v0 = vpop.f32.mrb[33].mxu1  ;;  %v2969_v57 = vpop.f32.mrb[37].mxu0  ;;  %v2980_v49 = vrot.slane %v2967_v31, 2  ;;  %v2984_v50 = vrot.slane %v2967_v31, 3 }
 0xbf1   : > { %v2979_v32 = vrot.slane %v2928_v0, 2  ;;  %v2983_v33 = vrot.slane %v2928_v0, 3  ;;  %v2930_v39 = vpop.f32.mrb[34].mxu1  ;;  %v2971_v37 = vpop.f32.mrb[38].mxu0  ;;  %v2981_v9 = vrot.slane %v2969_v57, 2  ;;  %v2985_v22 = vrot.slane %v2969_v57, 3 }
 0xbf2   : > { %v2994_v59 = vadd.f32 %v2978_v58, %v9074_v3  ;;  %v2998_v42 = vadd.f32 %v2982_v2, %v7722_v4  ;;  %v2931_v40 = vpop.f32.mrb[35].mxu1  ;;  %v2972_v28 = vpop.f32.mrb[39].mxu0  ;;  %v2996_v20 = vadd.f32 %v2980_v49, %v7742_v62  ;;  %v3000_v16 = vadd.f32 %v2984_v50, %v7748_v34 }
 0xbf3   : > { %v2995_v48 = vadd.f32 %v2979_v32, %v7719_v1  ;;  %v2999_v6 = vadd.f32 %v2983_v33, %v7727_v44  ;;  %v2997_v7 = vadd.f32 %v2981_v9, %v7735_v61  ;;  %v3001_v45 = vadd.f32 %v2985_v22, %v7738_v35 }
 0xbf4   : > { %v4930_v26 = vmul.f32 -1.442695, %v2994_v59  ;;  %v4931_v27 = vmul.f32 -1.442695, %v2998_v42  ;;  %v2878_v60 = vmul.f32 %v2840_v10, %v7765_v52  ;;  %v8322_v58 = vadd.f32 %v2877_v63, %v2875_v19  ;;  %v5672_v63 = vld [vmem:[#allocation20] sm:$0xff]  }
 0xbf5   : > { %v4932_v46 = vmul.f32 -1.442695, %v2995_v48  ;;  %v4933_v23 = vmul.f32 -1.442695, %v2999_v6  ;;  %v4934_v43 = vmul.f32 -1.442695, %v2997_v7 }
 0xbf6   : > { %5922 = vpow2.f32 %v4930_v26  ;;  %v4935_v11 = vmul.f32 -1.442695, %v3001_v45  ;;  %v8324_v0 = vadd.f32 %v2878_v60, %v2876_v5  ;;  %v3042_v53 = vrot.slane %v8322_v58, 7  ;;  %v3063_v45 = vld [vmem:[#allocation2] sm:$0x8]  ;;  %v5674_v60 = vld [vmem:[#allocation20 + $0x10] sm:$0xff]  }
 0xbf7   : > { %5924 = vpow2.f32 %v4931_v27  ;;  %v3071_v26 = vrot.slane %v8261_v54, 7 }
 0xbf8   : > { %5926 = vpow2.f32 %v4932_v46  ;;  %v3043_v37 = vrot.slane %v8324_v0, 7  ;;  %v3072_v46 = vrot.slane %v8263_v15, 7 }
 0xbf9   : > { %5928 = vpow2.f32 %v4933_v23  ;;  %v3075_v50 = vmul.f32 %v3071_v26, %v7767_v41  ;;  %v8397_v26 = vld [vmem:[%s7435_s0 + $0x28] sm:$0xff]  }
 0xbfa   : > { %5930 = vtanh.f32 %v2996_v20  ;;  %v3076_v20 = vmul.f32 %v3072_v46, %v7765_v52  ;;  %v8403_v46 = vld [vmem:[%s7435_s0 + $0x30] sm:$0xff]  }
 0xbfb   : > { %5932 = vtanh.f32 %v3000_v16  ;;  %v3066_v16 = vld [vmem:[#allocation2 + $0x4] sm:$0x8] }
 0xbfc   : > { %5934 = vpow2.f32 %v4934_v43 }
 0xbfd   : > { %5936 = vpow2.f32 %v4935_v11 }
 0xc00   : > { %v5923_v13 = vpop.eup %5922 }
 0xc01   : > { %v5925_v24 = vpop.eup %5924  ;;  %v3008_v51 = vadd.f32 1.0, %v5923_v13 }
 0xc02   : > { %v5927_v21 = vpop.eup %5926  ;;  %v3009_v14 = vadd.f32 1.0, %v5925_v24 }
 0xc03   : > { %v5929_v8 = vpop.eup %5928  ;;  %5938 = vrcp.f32 %v3008_v51  ;;  %v3020_v17 = vadd.f32 1.0, %v5927_v21 }
 0xc04   : > { %5940 = vrcp.f32 %v3009_v14  ;;  %v3021_v18 = vadd.f32 1.0, %v5929_v8  ;;  %v5931_v56 = vpop.eup %5930 }
 0xc05   : > { %5942 = vrcp.f32 %v3020_v17  ;;  %v5933_v31 = vpop.eup %5932 }
 0xc06   : > { %5944 = vrcp.f32 %v3021_v18  ;;  %v5935_v2 = vpop.eup %5934 }
 0xc07   : > { %v5937_v25 = vpop.eup %5936  ;;  %v3034_v39 = vadd.f32 1.0, %v5935_v2  ;;  %v5676_v2 = vld [vmem:[#allocation20 + $0x20] sm:$0xff]  }
 0xc08   : > { %v3035_v59 = vadd.f32 1.0, %v5937_v25  ;;  %v5677_v25 = vld [vmem:[#allocation20 + $0x28] sm:$0xff]  }
 0xc09   : > { %5946 = vrcp.f32 %v3034_v39 }
 0xc0a   : > { %5948 = vrcp.f32 %v3035_v59  ;;  %v8379_v59 = vld [vmem:[%s7435_s0 + $0x10] sm:$0xff]  }
 0xc0d   : > { %v5939_v57 = vpop.eup %5938 }
 0xc0e   : > { %v5941_v32 = vpop.eup %5940  ;;  %v3048_v33 = vmul.f32 %v5939_v57, %v5931_v56  ;;  %v5673_v56 = vld [vmem:[#allocation20 + $0x8] sm:$0xff]   ;;  %v5678_v57 = vld [vmem:[#allocation20 + $0x30] sm:$0xff]  }
 0xc0f   : > { %v5943_v12 = vpop.eup %5942  ;;  %v3049_v38 = vmul.f32 %v5941_v32, %v5933_v31  ;;  %v5675_v31 = vld [vmem:[#allocation20 + $0x18] sm:$0xff]  }
 0xc10   : > { %v5945_v47 = vpop.eup %5944  ;;  %v3046_v10 = vmul.f32 %v5943_v12, %v3042_v53  ;;  %v5679_v32 = vld [vmem:[#allocation20 + $0x38] sm:$0xff]   ;;  %v8373_v12 = vld [vmem:[%s7435_s0 + $0x8] sm:$0xff]  }
 0xc11   : > { %v3047_v42 = vmul.f32 %v5945_v47, %v3043_v37  ;;  %v3417_v47 = vsel %vm1282_vm4, %v8379_v59, 0 }
 0xc12   : > { %v8332_v40 = vadd.f32 %v3048_v33, %v3046_v10  ;;  %v8366_v33 = vld [vmem:[%s7435_s0] sm:$0xff]   ;;  %v8385_v10 = vld [vmem:[%s7435_s0 + $0x18] sm:$0xff]  }
 0xc13   : > { %v8334_v28 = vadd.f32 %v3049_v38, %v3047_v42  ;;  %v5947_v48 = vpop.eup %5946  ;;  %v3411_v39 = vsel %vm1282_vm4, %v8366_v33, 0  ;;  %v3414_v38 = vsel %vm1282_vm4, %v8373_v12, 0  ;;  %v3420_v42 = vsel %vm1282_vm4, %v8385_v10, 0 }
 0xc14   : > { %5950 = vtanh.f32 %v8332_v40  ;;  %v5949_v6 = vpop.eup %5948 }
 0xc15   : > { %5952 = vtanh.f32 %v8334_v28 }
 0xc1e   : > { %v5951_v27 = vpop.eup %5950 }
 0xc1f   : > { %v5953_v23 = vpop.eup %5952  ;;  %v3054_v9 = vmul.f32 %v5951_v27, %v5947_v48  ;;  %v8391_v48 = vld [vmem:[%s7435_s0 + $0x20] sm:$0xff]   ;;  %v3426_v27 = vsel %vm1282_vm4, %v8397_v26, 0 }
 0xc20   : > { %v3055_v22 = vmul.f32 %v5953_v23, %v5949_v6  ;;  %v3423_v6 = vsel %vm1282_vm4, %v8391_v48, 0  ;;  %v3429_v23 = vsel %vm1282_vm4, %v8403_v46, 0 }
 0xc21   : > { %v3056_v49 = vmul.f32 %v3054_v9, %v7770_v29  ;;  %v8409_v9 = vld [vmem:[%s7435_s0 + $0x38] sm:$0xff]  }
 0xc22   : > { %v3057_v7 = vmul.f32 %v3055_v22, %v7757_v55  ;;  %v3432_v22 = vsel %vm1282_vm4, %v8409_v9, 0 }
 0xc23   : > { %v3058_v54 = vpack.c.bf16 %v3056_v49, %v3056_v49  ;;  %v8345_v43 = vadd.f32 %v3075_v50, %v3056_v49 }
 0xc24   : > { %v3059_v15 = vpack.c.bf16 %v3057_v7, %v3057_v7  ;;  %v8347_v11 = vadd.f32 %v3076_v20, %v3057_v7 }
 0xc25   : > { %v3064_v13 = vsel %vm3062_vm8, %v3058_v54, %v3063_v45  ;;  %v3085_v24 = vpack.c.bf16 %v8345_v43, %v8345_v43 }
 0xc26   : > { %3065 = vst [vmem:[#allocation2] sm:$0x8] %v3064_v13  ;;  %v3067_v51 = vsel %vm3062_vm8, %v3059_v15, %v3066_v16  ;;  %v3086_v21 = vpack.c.bf16 %v8347_v11, %v8347_v11 }
 0xc27   : > { %3068 = vst [vmem:[#allocation2 + $0x4] sm:$0x8] %v3067_v51  ;;  %v3089_v14 = vunpack.c.l.b16 %v3085_v24 }
 0xc28   : > { %v3090_v8 = vunpack.c.l.b16 %v3086_v21 }
 0xc29   : > { %v3091_v17 = vrot.slane %v3089_v14, 6 }
 0xc2a   : > { %v3092_v18 = vrot.slane %v3090_v8, 5 }
 0xc2c   : > { %v3093_v19 = vsel %vm1259_vm3, %v3092_v18, %v3091_v17  ;;  %vm3264_vm3 = vsmask.f32 7950 }
 0xc2d   : > { %v3094_v5 = vpack.c.b16 %v3093_v19, %v3093_v19  ;;  %vm3265_vm9 = vmand %vm3060_vm6, %vm3264_vm3 }
 0xc2f   : > { %3129 = vmatmul.mubr.bf16.vlgmr.msra.gmra.mrb[36].mxu1 %v3094_v5  ;;  %3170 = vmatmul.mubr.bf16.vlgmr.msra.gmra.mrb[40].mxu0 %v3094_v5 }
 0xc30   : > { %5224 = vmatprep.mubr.msk.bf16.mxu1 %vm6768_vm1, %v9109_v36  ;;  %5244 = vmatprep.mubr.msk.bf16.mxu0 %vm6768_vm1, %v9109_v36 }
 0xc31   : > { %5209 = vmatpush3.bf16.msra.mxu1 %v5672_v63  ;;  %5229 = vmatpush3.bf16.xpose.msra.mxu0 %v3411_v39 }
 0xc32   : > { %5210 = vmatprep.subr.bf16.mxu1 %v9109_v36  ;;  %5230 = vmatprep.subr.bf16.mxu0 %v9109_v36 }
 0xc35   : > { %5211 = vmatpush3.bf16.msra.mxu1 %v5673_v56 }
 0xc36   : > { %5212 = vmatprep.subr.bf16.mxu1 %v9109_v36 }
 0xc39   : > { %5213 = vmatpush3.bf16.msra.mxu1 %v5674_v60  ;;  %5231 = vmatpush3.bf16.xpose.msra.mxu0 %v3414_v38 }
 0xc3a   : > { %5214 = vmatprep.subr.bf16.mxu1 %v9109_v36  ;;  %5232 = vmatprep.subr.bf16.mxu0 %v9109_v36 }
 0xc3d   : > { %5215 = vmatpush3.bf16.msra.mxu1 %v5675_v31 }
 0xc3e   : > { %5216 = vmatprep.subr.bf16.mxu1 %v9109_v36 }
 0xc41   : > { %5217 = vmatpush3.bf16.msra.mxu1 %v5676_v2  ;;  %5233 = vmatpush3.bf16.xpose.msra.mxu0 %v3417_v47 }
 0xc42   : > { %5218 = vmatprep.subr.bf16.mxu1 %v9109_v36  ;;  %5234 = vmatprep.subr.bf16.mxu0 %v9109_v36 }
 0xc45   : > { %5219 = vmatpush3.bf16.msra.mxu1 %v5677_v25 }
 0xc46   : > { %5220 = vmatprep.subr.bf16.mxu1 %v9109_v36 }
 0xc49   : > { %5221 = vmatpush3.bf16.msra.mxu1 %v5678_v57  ;;  %5235 = vmatpush3.bf16.xpose.msra.mxu0 %v3420_v42 }
 0xc4a   : > { %5222 = vmatprep.subr.bf16.mxu1 %v9109_v36  ;;  %5236 = vmatprep.subr.bf16.mxu0 %v9109_v36 }
 0xc4d   : > { %5223 = vmatpush3.bf16.msra.mxu1 %v5679_v32 }
 0xc4e   : > { %5248 = vmatprep.subr.bf16.mxu1 %v9109_v36 }
 0xc51   : > { %5237 = vmatpush3.bf16.xpose.msra.mxu0 %v3423_v6 }
 0xc52   : > { %5238 = vmatprep.subr.bf16.mxu0 %v9109_v36 }
 0xc59   : > { %5239 = vmatpush3.bf16.xpose.msra.mxu0 %v3426_v27 }
 0xc5a   : > { %5240 = vmatprep.subr.bf16.mxu0 %v9109_v36 }
 0xc61   : > { %5241 = vmatpush3.bf16.xpose.msra.mxu0 %v3429_v23  ;;  %v3081_v23 = vmul.f32 %v3042_v53, %v7767_v41 }
 0xc62   : > { %5242 = vmatprep.subr.bf16.mxu0 %v9109_v36 }
 0xc69   : > { %5243 = vmatpush3.bf16.xpose.msra.mxu0 %v3432_v22 }
 0xc6a   : > { %5268 = vmatprep.subr.bf16.mxu0 %v9109_v36 }
 0xd02   : > { %v3130_v49 = vpop.f32.mrb[36].mxu1  ;;  %v3171_v50 = vpop.f32.mrb[40].mxu0 }
 0xd03   : > { %v3182_v7 = vrot.slane %v3130_v49, 1  ;;  %v3186_v45 = vrot.slane %v3130_v49, 2  ;;  %v3132_v20 = vpop.f32.mrb[37].mxu1  ;;  %v3173_v54 = vpop.f32.mrb[41].mxu0  ;;  %v3184_v2 = vrot.slane %v3171_v50, 1  ;;  %v3188_v25 = vrot.slane %v3171_v50, 2 }
 0xd04   : > { %v3183_v16 = vrot.slane %v3132_v20, 1  ;;  %v3187_v15 = vrot.slane %v3132_v20, 2  ;;  %v3134_v13 = vpop.f32.mrb[38].mxu1  ;;  %v3175_v24 = vpop.f32.mrb[42].mxu0  ;;  %v3185_v60 = vrot.slane %v3173_v54, 1  ;;  %v3189_v31 = vrot.slane %v3173_v54, 2 }
 0xd05   : > { %v3198_v51 = vadd.f32 %v3182_v7, %v9074_v3  ;;  %v3202_v21 = vadd.f32 %v3186_v45, %v7722_v4  ;;  %v3135_v14 = vpop.f32.mrb[39].mxu1  ;;  %v3176_v8 = vpop.f32.mrb[43].mxu0  ;;  %v3082_v49 = vmul.f32 %v3043_v37, %v7765_v52 }
 0xd06   : > { %v3199_v17 = vadd.f32 %v3183_v16, %v7719_v1  ;;  %v3203_v18 = vadd.f32 %v3187_v15, %v7727_v44  ;;  %v3201_v4 = vadd.f32 %v3185_v60, %v7735_v61  ;;  %v3205_v3 = vadd.f32 %v3189_v31, %v7738_v35 }
 0xd07   : > { %v4936_v19 = vmul.f32 -1.442695, %v3198_v51  ;;  %v4937_v5 = vmul.f32 -1.442695, %v3202_v21  ;;  %v3200_v1 = vadd.f32 %v3184_v2, %v7742_v62  ;;  %v3204_v44 = vadd.f32 %v3188_v25, %v7748_v34 }
 0xd08   : > { %v4938_v63 = vmul.f32 -1.442695, %v3199_v17  ;;  %v4939_v56 = vmul.f32 -1.442695, %v3203_v18  ;;  %v4940_v57 = vmul.f32 -1.442695, %v3201_v4  ;;  %v3079_v62 = vmul.f32 %v8332_v40, %v7770_v29 }
 0xd09   : > { %5954 = vpow2.f32 %v4936_v19  ;;  %v4941_v32 = vmul.f32 -1.442695, %v3205_v3  ;;  %v3080_v34 = vmul.f32 %v8334_v28, %v7757_v55  ;;  %v3274_v2 = vrot.slane %v8345_v43, 7 }
 0xd0a   : > { %5956 = vpow2.f32 %v4937_v5  ;;  %v3083_v7 = vadd.f32 %v3081_v23, %v3079_v62  ;;  %v3275_v4 = vrot.slane %v8347_v11, 7  ;;  %v3266_v11 = vld [vmem:[#allocation2] sm:$0x8] }
 0xd0b   : > { %5958 = vpow2.f32 %v4938_v63  ;;  %v3084_v20 = vadd.f32 %v3082_v49, %v3080_v34  ;;  %v6056_v34 = vld [vmem:[%s7435_s0 + $0x50] sm:$0xff]  }
 0xd0c   : > { %5960 = vpow2.f32 %v4939_v56  ;;  %v3246_v13 = vrot.slane %v3083_v7, 7  ;;  %v3484_v23 = vsel %vm1282_vm4, %v6056_v34, 0 }
 0xd0d   : > { %5962 = vtanh.f32 %v3200_v1  ;;  %v3247_v21 = vrot.slane %v3084_v20, 7 }
 0xd0e   : > { %5964 = vtanh.f32 %v3204_v44  ;;  %v3284_v18 = vmul.f32 %v3246_v13, %v7767_v41 }
 0xd0f   : > { %5966 = vpow2.f32 %v4940_v57  ;;  %v3285_v5 = vmul.f32 %v3247_v21, %v7765_v52  ;;  %v3278_v57 = vmul.f32 %v3274_v2, %v7767_v41 }
 0xd10   : > { %5968 = vpow2.f32 %v4941_v32 }
 0xd13   : > { %v5955_v39 = vpop.eup %5954 }
 0xd14   : > { %v5957_v38 = vpop.eup %5956  ;;  %v3212_v47 = vadd.f32 1.0, %v5955_v39  ;;  %v3279_v39 = vmul.f32 %v3275_v4, %v7765_v52  ;;  %v6054_v52 = vld [vmem:[%s7435_s0 + $0x40] sm:$0xff]  }
 0xd15   : > { %v5959_v42 = vpop.eup %5958  ;;  %v3213_v6 = vadd.f32 1.0, %v5957_v38 }
 0xd16   : > { %v5961_v27 = vpop.eup %5960  ;;  %5970 = vrcp.f32 %v3212_v47  ;;  %v3224_v61 = vadd.f32 1.0, %v5959_v42 }
 0xd17   : > { %5972 = vrcp.f32 %v3213_v6  ;;  %v3225_v35 = vadd.f32 1.0, %v5961_v27  ;;  %v5963_v22 = vpop.eup %5962 }
 0xd18   : > { %5974 = vrcp.f32 %v3224_v61  ;;  %v5965_v50 = vpop.eup %5964  ;;  %v3269_v61 = vld [vmem:[#allocation2 + $0x4] sm:$0x8] }
 0xd19   : > { %5976 = vrcp.f32 %v3225_v35  ;;  %v5967_v45 = vpop.eup %5966  ;;  %v6055_v35 = vld [vmem:[%s7435_s0 + $0x48] sm:$0xff]  }
 0xd1a   : > { %v5969_v54 = vpop.eup %5968  ;;  %v3238_v24 = vadd.f32 1.0, %v5967_v45  ;;  %v3481_v62 = vsel %vm1282_vm4, %v6055_v35, 0  ;;  %v6059_v45 = vld [vmem:[%s7435_s0 + $0x68] sm:$0xff]  }
 0xd1b   : > { %v3239_v58 = vadd.f32 1.0, %v5969_v54  ;;  %v3493_v20 = vsel %vm1282_vm4, %v6059_v45, 0  ;;  %v6060_v54 = vld [vmem:[%s7435_s0 + $0x70] sm:$0xff]  }
 0xd1c   : > { %5978 = vrcp.f32 %v3238_v24 }
 0xd1d   : > { %5980 = vrcp.f32 %v3239_v58 }
 0xd20   : > { %v5971_v16 = vpop.eup %5970 }
 0xd21   : > { %v5973_v40 = vpop.eup %5972  ;;  %v3252_v15 = vmul.f32 %v5971_v16, %v5963_v22  ;;  %v6057_v22 = vld [vmem:[%s7435_s0 + $0x58] sm:$0xff]   ;;  %v3496_v16 = vsel %vm1282_vm4, %v6060_v54, 0 }
 0xd22   : > { %v5975_v28 = vpop.eup %5974  ;;  %v3253_v51 = vmul.f32 %v5973_v40, %v5965_v50  ;;  %v3487_v49 = vsel %vm1282_vm4, %v6057_v22, 0  ;;  %v6058_v50 = vld [vmem:[%s7435_s0 + $0x60] sm:$0xff]   ;;  %v6061_v40 = vld [vmem:[%s7435_s0 + $0x78] sm:$0xff]   ;;  %s4344_s0 = scalar_lea.sflag [#allocation32], %s7442_s22 }
 0xd23   : > { %v5977_v53 = vpop.eup %5976  ;;  %v3250_v14 = vmul.f32 %v5975_v28, %v3246_v13  ;;  %v3490_v7 = vsel %vm1282_vm4, %v6058_v50, 0 }
 0xd24   : > { %v3251_v8 = vmul.f32 %v5977_v53, %v3247_v21 }
 0xd25   : > { %v3254_v0 = vadd.f32 %v3252_v15, %v3250_v14  ;;  %v3499_v15 = vsel %vm1282_vm4, %v6061_v40, 0 }
 0xd26   : > { %v3255_v37 = vadd.f32 %v3253_v51, %v3251_v8  ;;  %v5979_v60 = vpop.eup %5978 }
 0xd27   : > { %5982 = vtanh.f32 %v3254_v0  ;;  %v3282_v17 = vmul.f32 %v3254_v0, %v7770_v29  ;;  %v5981_v31 = vpop.eup %5980 }
 0xd28   : > { %5984 = vtanh.f32 %v3255_v37  ;;  %v3283_v19 = vmul.f32 %v3255_v37, %v7757_v55 }
 0xd29   : > { %v3286_v63 = vadd.f32 %v3284_v18, %v3282_v17 }
 0xd2a   : > { %v3287_v56 = vadd.f32 %v3285_v5, %v3283_v19 }
 0xd2b   : > { %3290 = vst [vmem:[%s8437_s20 - $0x7] sm:$0x80] %v3286_v63 }
 0xd2c   : > { %3291 = vst [vmem:[%s8437_s20 - $0x6] sm:$0x80] %v3287_v56 }
 0xd31   : > { %v5983_v25 = vpop.eup %5982 }
 0xd32   : > { %v5985_v3 = vpop.eup %5984  ;;  %v3258_v1 = vmul.f32 %v5983_v25, %v5979_v60 }
 0xd33   : > { %v3259_v44 = vmul.f32 %v5985_v3, %v5981_v31 }
 0xd34   : > { %v3260_v32 = vmul.f32 %v3258_v1, %v7770_v29  ;;  %v3478_v29 = vsel %vm1282_vm4, %v6054_v52, 0  ;;  %v5683_v1 = vld [vmem:[#allocation23 + $0x4] ss:$8 sps:$4 sm:$0xff]  }
 0xd35   : > { %v3261_v38 = vmul.f32 %v3259_v44, %v7757_v55 }
 0xd36   : > { %v3262_v43 = vpack.c.bf16 %v3260_v32, %v3260_v32  ;;  %v3280_v47 = vadd.f32 %v3278_v57, %v3260_v32 }
 0xd37   : > { %v3263_v42 = vpack.c.bf16 %v3261_v38, %v3261_v38  ;;  %v3281_v6 = vadd.f32 %v3279_v39, %v3261_v38  ;;  %v5681_v38 = vld [vmem:[#allocation23] ss:$8 sps:$4 sm:$0xff]  }
 0xd38   : > { %v3267_v27 = vsel %vm3265_vm9, %v3262_v43, %v3266_v11  ;;  %3288 = vst [vmem:[%s8449_s17 - $0x7] sm:$0x80] %v3280_v47 }
 0xd39   : > { %3268 = vst [vmem:[#allocation2] sm:$0x8] %v3267_v27  ;;  %v3270_v41 = vsel %vm3265_vm9, %v3263_v42, %v3269_v61  ;;  %3289 = vst [vmem:[%s8449_s17 - $0x6] sm:$0x80] %v3281_v6  ;;  %v5684_v6 = vld [vmem:[#allocation23 + $0x10] ss:$8 sps:$4 sm:$0xff]  }
 0xd3a   : > { %3271 = vst [vmem:[#allocation2 + $0x4] sm:$0x8] %v3270_v41  ;;  %v5686_v27 = vld [vmem:[#allocation23 + $0x14] ss:$8 sps:$4 sm:$0xff]   ;;  %v5689_v61 = vld [vmem:[#allocation21 + $0x4] ss:$8 sps:$4 sm:$0xff]  }
 0xd3b   : > { %v5714_v41 = vld [vmem:[#allocation27] sm:$0xff]  }
 0xd41   : > { %v8453_v55 = vld [vmem:[#allocation2] sm:$0xff]  }
 0xd42   : > { %5225 = vmatmul.mubr.bf16.vlgmr.msra.gmra.mrb[40].mxu1 %v8453_v55 }
 0xd43   : > { %5249 = vmatpush3.bf16.xpose.msra.mxu1 %v3478_v29  ;;  %5264 = vmatprep.mubr.msk.bf16.mxu1 %vm6768_vm1, %v9109_v36  ;;  %v5716_v29 = vld [vmem:[#allocation27 + $0x10] sm:$0xff]  }
 0xd44   : > { %5250 = vmatprep.subr.bf16.mxu1 %v9109_v36 }
 0xd4b   : > { %5251 = vmatpush3.bf16.xpose.msra.mxu1 %v3481_v62 }
 0xd4c   : > { %5252 = vmatprep.subr.bf16.mxu1 %v9109_v36 }
 0xd53   : > { %5253 = vmatpush3.bf16.xpose.msra.mxu1 %v3484_v23  ;;  %v5718_v23 = vld [vmem:[#allocation27 + $0x20] sm:$0xff]  }
 0xd54   : > { %5254 = vmatprep.subr.bf16.mxu1 %v9109_v36 }
 0xd5b   : > { %5255 = vmatpush3.bf16.xpose.msra.mxu1 %v3487_v49 }
 0xd5c   : > { %5256 = vmatprep.subr.bf16.mxu1 %v9109_v36 }
 0xd63   : > { %5257 = vmatpush3.bf16.xpose.msra.mxu1 %v3490_v7  ;;  %v5687_v7 = vld [vmem:[#allocation21] ss:$8 sps:$4 sm:$0xff]  }
 0xd64   : > { %5258 = vmatprep.subr.bf16.mxu1 %v9109_v36 }
 0xd6b   : > { %5259 = vmatpush3.bf16.xpose.msra.mxu1 %v3493_v20 }
 0xd6c   : > { %5260 = vmatprep.subr.bf16.mxu1 %v9109_v36 }
 0xd73   : > { %5261 = vmatpush3.bf16.xpose.msra.mxu1 %v3496_v16 }
 0xd74   : > { %5262 = vmatprep.subr.bf16.mxu1 %v9109_v36 }
 0xd7b   : > { %5263 = vmatpush3.bf16.xpose.msra.mxu1 %v3499_v15  ;;  %v5690_v15 = vld [vmem:[#allocation21 + $0x10] ss:$8 sps:$4 sm:$0xff]  }
 0xd7c   : > { %5288 = vmatprep.subr.bf16.mxu1 %v9109_v36 }
 0xe15   : > { %v3398_v13 = vpop.f32.mrb[40].mxu1 }
 0xe16   : > { %v3405_v24 = vpack.c.bf16 %v3398_v13, %v3398_v13  ;;  %v5226_v28 = vpop.f32.mrb[41].mxu1  ;;  %v5695_v13 = vld [vmem:[#allocation21 + $0x24] ss:$8 sps:$4 sm:$0xff]  }
 0xe17   : > { %v3401_v51 = vpop.f32.mrb[42].mxu1  ;;  %v5698_v28 = vld [vmem:[#allocation21 + $0x34] ss:$8 sps:$4 sm:$0xff]  }
 0xe18   : > { %v3406_v21 = vpack.c.bf16 %v3401_v51, %v3401_v51  ;;  %v5227_v58 = vpop.f32.mrb[43].mxu1  ;;  %5245 = vmatmul.mubr.msk.bf16.vlgmr.msra.gmra.mrb[44].mxu0 %vm1282_vm4, %v3405_v24  ;;  %v5693_v24 = vld [vmem:[#allocation21 + $0x20] ss:$8 sps:$4 sm:$0xff]   ;;  %v5696_v51 = vld [vmem:[#allocation21 + $0x30] ss:$8 sps:$4 sm:$0xff]  }
 0xe19   : > { %5269 = vmatpush3.bf16.msra.mxu0 %v8366_v33  ;;  %5284 = vmatprep.mubr.msk.bf16.mxu0 %vm6768_vm1, %v9109_v36  ;;  %v6062_v33 = vld [vmem:[%s7449_s8] sm:$0x1] }
 0xe1a   : > { %5265 = vmatmul.mubr.msk.bf16.vlgmr.msra.gmra.mrb[44].mxu1 %vm1282_vm4, %v3406_v21  ;;  %5270 = vmatprep.subr.bf16.mxu0 %v9109_v36  ;;  %vm3541_vm10 = vcmp.gt.f32.partialorder %v6062_v33, 0.5  ;;  %v5701_v21 = vld [vmem:[#allocation21 + $0x44] ss:$8 sps:$4 sm:$0xff]   ;;  %v5699_v58 = vld [vmem:[#allocation21 + $0x40] ss:$8 sps:$4 sm:$0xff]  }
 0xe1b   : > { %5289 = vmatpush3.bf16.msra.mxu1 %v6054_v52  ;;  %5304 = vmatprep.mubr.msk.bf16.mxu1 %vm6768_vm1, %v9109_v36  ;;  %v5715_v52 = vld [vmem:[#allocation27 + $0x8] sm:$0xff]  }
 0xe1c   : > { %5290 = vmatprep.subr.bf16.mxu1 %v9109_v36  ;;  %v5704_v33 = vld [vmem:[#allocation21 + $0x54] ss:$8 sps:$4 sm:$0xff]  }
 0xe1d   : > { %5271 = vmatpush3.bf16.msra.mxu0 %v8373_v12  ;;  %v3543_v12 = vsel %vm3541_vm10, 1, %v9070_v30 }
 0xe1e   : > { %5272 = vmatprep.subr.bf16.mxu0 %v9109_v36 }
 0xe1f   : > { %5291 = vmatpush3.bf16.msra.mxu1 %v6055_v35  ;;  %v5717_v35 = vld [vmem:[#allocation27 + $0x18] sm:$0xff]  }
 0xe20   : > { %5292 = vmatprep.subr.bf16.mxu1 %v9109_v36 }
 0xe21   : > { %5273 = vmatpush3.bf16.msra.mxu0 %v8379_v59  ;;  %v6063_v59 = vld [vmem:[%s7449_s8 + $0x1] sm:$0x1]  ;;  %s6555_s8 = sshll.u32 %s6771_s28, 4  ;;  %s6556_s8 = int_to_ptr.vmem [resolvable:$false] %s6555_s8 }
 0xe22   : > { %5274 = vmatprep.subr.bf16.mxu0 %v9109_v36  ;;  %vm3542_vm11 = vcmp.gt.f32.partialorder %v6063_v59, 0.5  ;;  %v5707_v59 = vld [vmem:[#allocation21 + $0x64] ss:$8 sps:$4 sm:$0xff]   ;;  %s6557_s27 = scalar_lea.vmem %s6556_s8, 512  ;;  %p6558_p7 = scmp.lt.s32.totalorder %s8691_s14, %s6556_s8 }
 0xe23   : > { %5293 = vmatpush3.bf16.msra.mxu1 %v6056_v34  ;;  %p6559_p4 = scmp.lt.s32.totalorder %s6557_s27, %s6551_s2 }
 0xe24   : > { %5294 = vmatprep.subr.bf16.mxu1 %v9109_v36 }
 0xe25   : > { %5275 = vmatpush3.bf16.msra.mxu0 %v8385_v10  ;;  %v9110_v10 = vld [vmem:[#allocation65_spill] sm:$0xff]  ;;  %p6560_p10 = por %p6559_p4, %p6558_p7 }
 0xe26   : > { %5276 = vmatprep.subr.bf16.mxu0 %v9109_v36 }
 0xe27   : > { %5295 = vmatpush3.bf16.msra.mxu1 %v6057_v22  ;;  %p6561_p3 = pnand %p6560_p10, %p6554_p2 }
 0xe28   : > { %5296 = vmatprep.subr.bf16.mxu1 %v9109_v36 }
 0xe29   : > { %5277 = vmatpush3.bf16.msra.mxu0 %v8391_v48  ;;  %v3548_v48 = vrot.slane %v3543_v12, %v9110_v10  ;;  %v5702_v12 = vld [vmem:[#allocation21 + $0x50] ss:$8 sps:$4 sm:$0xff]  }
 0xe2a   : > { %5278 = vmatprep.subr.bf16.mxu0 %v9109_v36 }
 0xe2b   : > { %5297 = vmatpush3.bf16.msra.mxu1 %v6058_v50  ;;  %vm3553_vm12 = vcmp.eq.s32.totalorder %v3548_v48, 1  ;;  %v5705_v48 = vld [vmem:[#allocation21 + $0x60] ss:$8 sps:$4 sm:$0xff]  }
 0xe2c   : > { %5298 = vmatprep.subr.bf16.mxu1 %v9109_v36 }
 0xe2d   : > { %5279 = vmatpush3.bf16.msra.mxu0 %v8397_v26  ;;  %v3544_v26 = vsel %vm3542_vm11, 1, %v9070_v30 }
 0xe2e   : > { %5280 = vmatprep.subr.bf16.mxu0 %v9109_v36 }
 0xe2f   : > { %5299 = vmatpush3.bf16.msra.mxu1 %v6059_v45 }
 0xe30   : > { %5300 = vmatprep.subr.bf16.mxu1 %v9109_v36 }
 0xe31   : > { %5281 = vmatpush3.bf16.msra.mxu0 %v8403_v46  ;;  %v3552_v46 = vrot.slane %v3544_v26, %v9110_v10  ;;  %v5710_v26 = vld [vmem:[#allocation21 + $0x74] ss:$8 sps:$4 sm:$0xff]  }
 0xe32   : > { %5282 = vmatprep.subr.bf16.mxu0 %v9109_v36 }
 0xe33   : > { %5301 = vmatpush3.bf16.msra.mxu1 %v6060_v54  ;;  %vm3554_vm13 = vcmp.eq.s32.totalorder %v3552_v46, 1  ;;  %v5692_v54 = vld [vmem:[#allocation21 + $0x14] ss:$8 sps:$4 sm:$0xff]   ;;  %v5708_v46 = vld [vmem:[#allocation21 + $0x70] ss:$8 sps:$4 sm:$0xff]  }
 0xe34   : > { %5302 = vmatprep.subr.bf16.mxu1 %v9109_v36 }
 0xe35   : > { %5283 = vmatpush3.bf16.msra.mxu0 %v8409_v9 }
 0xe36   : > { %3703 = vmatprep.subr.bf16.mxu0 %v5683_v1 }
 0xe37   : > { %5303 = vmatpush3.bf16.msra.mxu1 %v6061_v40 }
 0xe38   : > { %5308 = vmatprep.subr.bf16.mxu1 %v9109_v36 }
 0xeeb   : > { %v3468_v53 = vpop.f32.mrb[44].mxu0 }
 0xeec   : > { %v5246_v14 = vpop.f32.mrb[45].mxu0  ;;  %v3555_v8 = vsel %vm3553_vm12, %v3468_v53, -1e+30  ;;  %v5713_v53 = vld [vmem:[#allocation24 + $0x4] ss:$8 sps:$4 sm:$0xff]  }
 0xeed   : > { %3557 = vmax.xlane.f32.xlu1 %v3555_v8  ;;  %v3471_v9 = vpop.f32.mrb[46].mxu0  ;;  %v3535_v0 = vpop.f32.mrb[44].mxu1  ;;  %v5711_v14 = vld [vmem:[#allocation24] ss:$8 sps:$4 sm:$0xff]  }
 0xeee   : > { %v5247_v37 = vpop.f32.mrb[47].mxu0  ;;  %v5266_v17 = vpop.f32.mrb[45].mxu1  ;;  %v3556_v5 = vsel %vm3554_vm13, %v3535_v0, -1e+30  ;;  %v4988_v0 = vld [vmem:[%s839_s9] ss:$0 sm:$0xff] }
 0xeef   : > { %v3538_v18 = vpop.f32.mrb[46].mxu1  ;;  %v6064_v17 = vld [vmem:[%s7458_s29] sm:$0xff]  }
 0xef0   : > { %v5267_v19 = vpop.f32.mrb[47].mxu1 }
 0xef1   : > { %3559 = vmax.xlane.f32.xlu1 %v3556_v5 }
 0xf7a   : > { %v3558_v63 = vpop.xlane.xlu1 %3557 }
 0xf7b   : > { %v3561_v56 = vsub.f32 %v3555_v8, %v3558_v63  ;;  %v9111_v8 = vld [vmem:[#allocation64_spill] sm:$0xff] }
 0xf7c   : > { %v8542_v9 = vadd.s32 8, %v9111_v8  ;;  %v8549_v37 = vadd.s32 16, %v9111_v8  ;;  %v8563_v18 = vadd.s32 32, %v9111_v8  ;;  %v8566_v19 = vadd.s32 40, %v9111_v8 }
 0xf7d   : > { %v3563_v60 = vmul.f32 1.442695, %v3561_v56  ;;  %v8576_v63 = vadd.s32 56, %v9111_v8  ;;  %v8583_v56 = vadd.s32 64, %v9111_v8  ;;  %v8616_v1 = vadd.s32 120, %v9111_v8 }
 0xf7e   : > { %v3560_v31 = vpop.xlane.xlu1 %3559  ;;  %vm4119_vm14 = vcmp.eq.s32.totalorder %v8542_v9, %v4988_v0  ;;  %vm4120_vm0 = vcmp.eq.s32.totalorder %v8549_v37, %v4988_v0  ;;  %vm4123_vm7 = vcmp.eq.s32.totalorder %v8566_v19, %v4988_v0 }
 0xf7f   : > { %5986 = vpow2.f32 %v3563_v60  ;;  %v3562_v2 = vsub.f32 %v3556_v5, %v3560_v31  ;;  %v8573_v5 = vadd.s32 48, %v9111_v8  ;;  %vm4125_vm9 = vcmp.eq.s32.totalorder %v8576_v63, %v4988_v0 }
 0xf80   : > { %v8586_v60 = vadd.s32 72, %v9111_v8  ;;  %vm4126_vm11 = vcmp.eq.s32.totalorder %v8583_v56, %v4988_v0  ;;  %v8593_v31 = vadd.s32 80, %v9111_v8 }
 0xf81   : > { %v3565_v25 = vmul.f32 1.442695, %v3562_v2  ;;  %vm4124_vm3 = vcmp.eq.s32.totalorder %v8573_v5, %v4988_v0  ;;  %v8596_v2 = vadd.s32 88, %v9111_v8 }
 0xf82   : > { %vm5028_vm10 = vmpackc.low %vm4125_vm9, %vm4124_vm3  ;;  %vm4127_vm12 = vcmp.eq.s32.totalorder %v8586_v60, %v4988_v0 }
 0xf83   : > { %5988 = vpow2.f32 %v3565_v25  ;;  %vm5030_vm13 = vmpackc.low %vm4127_vm12, %vm4126_vm11  ;;  %v8603_v25 = vadd.s32 96, %v9111_v8 }
 0xf89   : > { %v5987_v4 = vpop.eup %5986 }
 0xf8a   : > { %3567 = vadd.xlane.f32.xlu0 %v5987_v4 }
 0xf8d   : > { %v5989_v3 = vpop.eup %5988 }
 0xf8e   : > { %3569 = vadd.xlane.f32.xlu1 %v5989_v3 }
0x1017   : > { %v3568_v44 = vpop.xlane.xlu0 %3567 }
0x1018   : > { %5990 = vrcp.f32 %v3568_v44  ;;  %v5719_v44 = vld [vmem:[#allocation27 + $0x28] sm:$0xff]  }
0x101b   : > { %v3570_v57 = vpop.xlane.xlu1 %3569 }
0x101c   : > { %5992 = vrcp.f32 %v3570_v57  ;;  %v5720_v57 = vld [vmem:[#allocation27 + $0x30] sm:$0xff]  }
0x1022   : > { %v5991_v32 = vpop.eup %5990 }
0x1023   : > { %v3573_v39 = vmul.f32 %v5991_v32, %v5987_v4  ;;  %v8606_v4 = vadd.s32 104, %v9111_v8  ;;  %v5721_v32 = vld [vmem:[#allocation27 + $0x38] sm:$0xff]  }
0x1025   : > { %3575 = vst [vmem:[%s8518_s18] sm:$0xff] %v3573_v39  ;;  %v8521_v43 = vpack.c.bf16 %v3573_v39, %v3573_v39  ;;  %v3928_v39 = vld [vmem:[#allocation26] sm:$0x3] }
0x1026   : > { %v5993_v47 = vpop.eup %5992 }
0x1027   : > { %5285 = vmatmul.mubr.bf16.vlgmr.msra.gmra.mrb[48].mxu0 %v8521_v43  ;;  %v3574_v42 = vmul.f32 %v5993_v47, %v5989_v3  ;;  %v8613_v3 = vadd.s32 112, %v9111_v8  ;;  %v9112_v47 = vld [vmem:[#allocation66_spill] sm:$0xff] }
0x1028   : > { %3704 = vmatpush1.bf16.msra.mxu0 %v5681_v38  ;;  %3735 = vmatprep.mubr.bf16.mxu0 %v9070_v30  ;;  %v3933_v38 = vrot.slane %v3928_v39, %v9110_v10 }
0x1029   : > { %3576 = vst [vmem:[%s8518_s18 + $0x8] sm:$0xff] %v3574_v42  ;;  %v8526_v11 = vpack.c.bf16 %v3574_v42, %v3574_v42  ;;  %3705 = vmatprep.subr.bf16.mxu0 %v5686_v27  ;;  %v3937_v42 = vrot.slane %v3928_v39, %v9112_v47 }
0x102b   : > { %5305 = vmatmul.mubr.bf16.vlgmr.msra.gmra.mrb[48].mxu1 %v8526_v11 }
0x102c   : > { %5324 = vmatprep.mubr.msk.bf16.mxu1 %vm6768_vm1, %v9109_v36  ;;  %3706 = vmatpush1.bf16.msra.mxu0 %v5684_v6 }
0x102d   : > { %3826 = vmatprep.subr.bf16.mxu0 %v5689_v61  ;;  %5309 = vmatpush3.bf16.msra.mxu1 %v5714_v41 }
0x102e   : > { %5310 = vmatprep.subr.bf16.mxu1 %v9109_v36 }
0x1031   : > { %5311 = vmatpush3.bf16.msra.mxu1 %v5715_v52 }
0x1032   : > { %5312 = vmatprep.subr.bf16.mxu1 %v9109_v36 }
0x1035   : > { %5313 = vmatpush3.bf16.msra.mxu1 %v5716_v29 }
0x1036   : > { %5314 = vmatprep.subr.bf16.mxu1 %v9109_v36 }
0x1039   : > { %5315 = vmatpush3.bf16.msra.mxu1 %v5717_v35 }
0x103a   : > { %5316 = vmatprep.subr.bf16.mxu1 %v9109_v36 }
0x103d   : > { %5317 = vmatpush3.bf16.msra.mxu1 %v5718_v23 }
0x103e   : > { %5318 = vmatprep.subr.bf16.mxu1 %v9109_v36 }
0x1041   : > { %5319 = vmatpush3.bf16.msra.mxu1 %v5719_v44 }
0x1042   : > { %5320 = vmatprep.subr.bf16.mxu1 %v9109_v36 }
0x1045   : > { %5321 = vmatpush3.bf16.msra.mxu1 %v5720_v57 }
0x1046   : > { %5322 = vmatprep.subr.bf16.mxu1 %v9109_v36 }
0x1049   : > { %5323 = vmatpush3.bf16.msra.mxu1 %v5721_v32 }
0x104a   : > { %5348 = vmatprep.subr.bf16.mxu1 %v9109_v36 }
0x10fa   : > { %v3613_v62 = vpop.f32.mrb[48].mxu0 }
0x10fb   : > { %v5286_v34 = vpop.f32.mrb[49].mxu0 }
0x10fc   : > { %v3616_v22 = vpop.f32.mrb[50].mxu0  ;;  %v4989_v34 = vld [vmem:[%s839_s9 + $0x1] ss:$0 sm:$0xff] }
0x10fd   : > { %v5287_v49 = vpop.f32.mrb[51].mxu0  ;;  %vm4134_vm3 = vcmp.eq.s32.totalorder %v9111_v8, %v4989_v34  ;;  %vm4135_vm9 = vcmp.eq.s32.totalorder %v8542_v9, %v4989_v34  ;;  %vm4136_vm11 = vcmp.eq.s32.totalorder %v8549_v37, %v4989_v34 }
0x10fe   : > { %v3653_v50 = vpop.f32.mrb[48].mxu1 }
0x10ff   : > { %v3659_v45 = vpack.c.bf16 %v3653_v50, %v3613_v62  ;;  %v5306_v20 = vpop.f32.mrb[49].mxu1 }
0x1100   : > { %v3656_v16 = vpop.f32.mrb[50].mxu1 }
0x1101   : > { %v5307_v40 = vpop.f32.mrb[51].mxu1  ;;  %4957 = vmatmul.mubr.msk.bf16.vlgmr.msra.gmra.mrb[52].mxu0 %vm1282_vm4, %v3659_v45  ;;  %vm4118_vm4 = vcmp.eq.s32.totalorder %v9111_v8, %v4988_v0 }
0x1102   : > { %3827 = vmatpush1.bf16.msra.mxu0 %v5687_v7  ;;  %3858 = vmatprep.mubr.bf16.mxu0 %v9070_v30  ;;  %vm5022_vm15 = vmpackc.low %vm4119_vm14, %vm4118_vm4  ;;  %vm4128_vm4 = vcmp.eq.s32.totalorder %v8593_v31, %v4988_v0  ;;  %vm4129_vm14 = vcmp.eq.s32.totalorder %v8596_v2, %v4988_v0 }
0x1103   : > { %3828 = vmatprep.subr.bf16.mxu0 %v5692_v54 }
0x1106   : > { %3829 = vmatpush1.bf16.msra.mxu0 %v5690_v15  ;;  %v4979_v15 = vld [vmem:[#allocation29] ss:$0 sm:$0xff] }
0x1107   : > { %3830 = vmatprep.subr.bf16.mxu0 %v5695_v13 }
0x110a   : > { %3831 = vmatpush1.bf16.msra.mxu0 %v5693_v24 }
0x110b   : > { %3832 = vmatprep.subr.bf16.mxu0 %v5698_v28 }
0x110e   : > { %3833 = vmatpush1.bf16.msra.mxu0 %v5696_v51 }
0x110f   : > { %3834 = vmatprep.subr.bf16.mxu0 %v5701_v21 }
0x1112   : > { %3835 = vmatpush1.bf16.msra.mxu0 %v5699_v58 }
0x1113   : > { %3836 = vmatprep.subr.bf16.mxu0 %v5704_v33 }
0x1116   : > { %3837 = vmatpush1.bf16.msra.mxu0 %v5702_v12 }
0x1117   : > { %3838 = vmatprep.subr.bf16.mxu0 %v5707_v59 }
0x111a   : > { %3839 = vmatpush1.bf16.msra.mxu0 %v5705_v48 }
0x111b   : > { %3840 = vmatprep.subr.bf16.mxu0 %v5710_v26 }
0x111e   : > { %3841 = vmatpush1.bf16.msra.mxu0 %v5708_v46 }
0x111f   : > { %3881 = vmatprep.subr.bf16.mxu0 %v5713_v53 }
0x1121   : > { %3859 = vmatmul.mubr.bf16.vlgmr.msra.gmra.mrb[52].mxu0 %v8453_v55  ;;  %v8552_v55 = vadd.s32 24, %v9111_v8 }
0x1122   : > { %3882 = vmatpush1.bf16.msra.mxu0 %v5711_v14  ;;  %3913 = vmatprep.mubr.bf16.mxu0 %v9070_v30  ;;  %v6770_v30 = vmov 1.0|1.0  }
0x1123   : > { %5328 = vmatprep.subr.bf16.mxu0 %v9109_v36  ;;  %vm4121_vm5 = vcmp.eq.s32.totalorder %v8552_v55, %v4988_v0  ;;  %vm4137_vm12 = vcmp.eq.s32.totalorder %v8552_v55, %v4989_v34 }
0x1124   : > { %vm5024_vm6 = vmpackc.low %vm4121_vm5, %vm4120_vm0  ;;  %vm4130_vm0 = vcmp.eq.s32.totalorder %v8603_v25, %v4988_v0  ;;  %vm4131_vm5 = vcmp.eq.s32.totalorder %v8606_v4, %v4988_v0 }
0x112d   : > { %4976 = vmatmul.mubr.msk.bf16.vlgmr.msra.gmra.mrb[52].mxu0 %vm1380_vm2, %v6064_v17  ;;  %vm4122_vm2 = vcmp.eq.s32.totalorder %v8563_v18, %v4988_v0 }
0x112e   : > { %5329 = vmatpush3.bf16.xpose.msk.msra.mxu0 %vm5022_vm15, %v6770_v30  ;;  %5344 = vmatprep.mubr.msk.bf16.mxu0 %vm6768_vm1, %v9109_v36  ;;  %vm5026_vm8 = vmpackc.low %vm4123_vm7, %vm4122_vm2  ;;  %vm4132_vm2 = vcmp.eq.s32.totalorder %v8613_v3, %v4988_v0  ;;  %vm4133_vm7 = vcmp.eq.s32.totalorder %v8616_v1, %v4988_v0 }
0x112f   : > { %5330 = vmatprep.subr.bf16.mxu0 %v9109_v36  ;;  %vm5032_vm15 = vmpackc.low %vm4129_vm14, %vm4128_vm4  ;;  %vm4138_vm4 = vcmp.eq.s32.totalorder %v8563_v18, %v4989_v34  ;;  %vm4139_vm14 = vcmp.eq.s32.totalorder %v8566_v19, %v4989_v34 }
0x1136   : > { %5331 = vmatpush3.bf16.xpose.msk.msra.mxu0 %vm5024_vm6, %v6770_v30  ;;  %vm5034_vm6 = vmpackc.low %vm4131_vm5, %vm4130_vm0  ;;  %vm4141_vm0 = vcmp.eq.s32.totalorder %v8576_v63, %v4989_v34 }
0x1137   : > { %5332 = vmatprep.subr.bf16.mxu0 %v9109_v36 }
0x113e   : > { %5333 = vmatpush3.bf16.xpose.msk.msra.mxu0 %vm5026_vm8, %v6770_v30  ;;  %vm5036_vm8 = vmpackc.low %vm4133_vm7, %vm4132_vm2  ;;  %vm4143_vm2 = vcmp.eq.s32.totalorder %v8586_v60, %v4989_v34 }
0x113f   : > { %5334 = vmatprep.subr.bf16.mxu0 %v9109_v36 }
0x1146   : > { %5335 = vmatpush3.bf16.xpose.msk.msra.mxu0 %vm5028_vm10, %v6770_v30  ;;  %vm5038_vm10 = vmpackc.low %vm4135_vm9, %vm4134_vm3  ;;  %vm4145_vm3 = vcmp.eq.s32.totalorder %v8596_v2, %v4989_v34 }
0x1147   : > { %5336 = vmatprep.subr.bf16.mxu0 %v9109_v36 }
0x114e   : > { %5337 = vmatpush3.bf16.xpose.msk.msra.mxu0 %vm5030_vm13, %v6770_v30  ;;  %vm5040_vm13 = vmpackc.low %vm4137_vm12, %vm4136_vm11  ;;  %vm4147_vm11 = vcmp.eq.s32.totalorder %v8606_v4, %v4989_v34 }
0x114f   : > { %5338 = vmatprep.subr.bf16.mxu0 %v9109_v36 }
0x1156   : > { %5339 = vmatpush3.bf16.xpose.msk.msra.mxu0 %vm5032_vm15, %v6770_v30  ;;  %vm4140_vm15 = vcmp.eq.s32.totalorder %v8573_v5, %v4989_v34 }
0x1157   : > { %5340 = vmatprep.subr.bf16.mxu0 %v9109_v36  ;;  %vm5044_vm5 = vmpackc.low %vm4141_vm0, %vm4140_vm15 }
0x115e   : > { %5341 = vmatpush3.bf16.xpose.msk.msra.mxu0 %vm5034_vm6, %v6770_v30  ;;  %vm4142_vm6 = vcmp.eq.s32.totalorder %v8583_v56, %v4989_v34 }
0x115f   : > { %5342 = vmatprep.subr.bf16.mxu0 %v9109_v36  ;;  %vm5046_vm7 = vmpackc.low %vm4143_vm2, %vm4142_vm6 }
0x1166   : > { %5343 = vmatpush3.bf16.xpose.msk.msra.mxu0 %vm5036_vm8, %v6770_v30  ;;  %vm4144_vm8 = vcmp.eq.s32.totalorder %v8593_v31, %v4989_v34 }
0x1167   : > { %vm5048_vm9 = vmpackc.low %vm4145_vm3, %vm4144_vm8 }
0x116d   : > { %5345 = vmatmul.mubr.bf16.vlgmr.msra.gmra.mrb[56].mxu0 %v8521_v43 }
0x1200   : > { %v3915_v6 = vpop.f32.mrb[52].mxu0 }
0x1201   : > { %v3940_v43 = vadd.f32 %v3933_v38, %v3915_v6  ;;  %v3917_v27 = vpop.f32.mrb[53].mxu0 }
0x1202   : > { %v8629_v61 = vadd.f32 %v3937_v42, %v3917_v27  ;;  %v3919_v41 = vpop.f32.mrb[54].mxu0 }
0x1203   : > { %v3942_v52 = vadd.f32 %v3933_v38, %v3919_v41  ;;  %v3921_v29 = vpop.f32.mrb[55].mxu0  ;;  %5994 = vtanh.f32 %v3940_v43 }
0x1204   : > { %v3943_v35 = vadd.f32 %v3937_v42, %v3921_v29  ;;  %v4977_v40 = vmul.f32 -1.442695, %v8629_v61 }
0x1205   : > { %5996 = vtanh.f32 %v3942_v52 }
0x1206   : > { %v4978_v62 = vmul.f32 -1.442695, %v3943_v35 }
0x1208   : > { %5998 = vpow2.f32 %v4978_v62 }
0x120d   : > { %v5995_v10 = vpop.eup %5994 }
0x120f   : > { %v5997_v23 = vpop.eup %5996 }
0x1210   : > { %v3946_v22 = vpack.c.bf16 %v5997_v23, %v5995_v10 }
0x1212   : > { %v5999_v49 = vpop.eup %5998  ;;  %5325 = vmatmul.mubr.bf16.vlgmr.msra.gmra.mrb[52].mxu1 %v3946_v22 }
0x1213   : > { %v3954_v50 = vadd.f32 1.0, %v5999_v49  ;;  %5349 = vmatpush3.bf16.xpose.msk.msra.mxu1 %vm5038_vm10, %v6770_v30  ;;  %5364 = vmatprep.mubr.msk.bf16.mxu1 %vm6768_vm1, %v9109_v36  ;;  %vm5042_vm1 = vmpackc.low %vm4139_vm14, %vm4138_vm4  ;;  %vm4146_vm10 = vcmp.eq.s32.totalorder %v8603_v25, %v4989_v34  ;;  %vm4149_vm4 = vcmp.eq.s32.totalorder %v8616_v1, %v4989_v34 }
0x1214   : > { %5350 = vmatprep.subr.bf16.mxu1 %v9109_v36  ;;  %vm5050_vm12 = vmpackc.low %vm4147_vm11, %vm4146_vm10 }
0x1215   : > { %6000 = vrcp.f32 %v3954_v50 }
0x1216   : > { %6002 = vpow2.f32 %v4977_v40 }
0x121b   : > { %5351 = vmatpush3.bf16.xpose.msk.msra.mxu1 %vm5040_vm13, %v6770_v30  ;;  %vm4148_vm13 = vcmp.eq.s32.totalorder %v8613_v3, %v4989_v34 }
0x121c   : > { %5352 = vmatprep.subr.bf16.mxu1 %v9109_v36  ;;  %vm5052_vm14 = vmpackc.low %vm4149_vm4, %vm4148_vm13 }
0x121f   : > { %v8645_v7 = vpop.eup %6000 }
0x1220   : > { %4317 = vperm.xlu0 %5594, %v8645_v7   ;;  %v6003_v58 = vpop.eup %6002 }
0x1221   : > { %v3953_v33 = vadd.f32 1.0, %v6003_v58 }
0x1223   : > { %5353 = vmatpush3.bf16.xpose.msk.msra.mxu1 %vm5042_vm1, %v6770_v30  ;;  %6004 = vrcp.f32 %v3953_v33 }
0x1224   : > { %5354 = vmatprep.subr.bf16.mxu1 %v9109_v36 }
0x122b   : > { %5355 = vmatpush3.bf16.xpose.msk.msra.mxu1 %vm5044_vm5, %v6770_v30 }
0x122c   : > { %5356 = vmatprep.subr.bf16.mxu1 %v9109_v36 }
0x122d   : > { %v6005_v12 = vpop.eup %6004 }
0x122e   : > { %v4091_v59 = vsub.f32 1.0, %v6005_v12 }
0x1233   : > { %5357 = vmatpush3.bf16.xpose.msk.msra.mxu1 %vm5046_vm7, %v6770_v30 }
0x1234   : > { %5358 = vmatprep.subr.bf16.mxu1 %v9109_v36 }
0x123b   : > { %5359 = vmatpush3.bf16.xpose.msk.msra.mxu1 %vm5048_vm9, %v6770_v30 }
0x123c   : > { %5360 = vmatprep.subr.bf16.mxu1 %v9109_v36 }
0x1240   : > { %v8664_v45 = vpop.f32.mrb[56].mxu0 }
0x1241   : > { %v5346_v20 = vpop.f32.mrb[57].mxu0 }
0x1242   : > { %v4267_v54 = vpop.f32.mrb[58].mxu0 }
0x1243   : > { %v5347_v16 = vpop.f32.mrb[59].mxu0  ;;  %5361 = vmatpush3.bf16.xpose.msk.msra.mxu1 %vm5050_vm12, %v6770_v30 }
0x1244   : > { %5362 = vmatprep.subr.bf16.mxu1 %v9109_v36 }
0x124b   : > { %5363 = vmatpush3.bf16.xpose.msk.msra.mxu1 %vm5052_vm14, %v6770_v30  ;;  %v4092_v30 = vsub.f32 1.0, %v8645_v7 }
0x1252   : > { %5365 = vmatmul.mubr.bf16.vlgmr.msra.gmra.mrb[56].mxu1 %v8526_v11 }
0x12e5   : > { %v4064_v13 = vpop.f32.mrb[52].mxu1 }
0x12e6   : > { %v4065_v24 = vadd.f32 %v4979_v15, %v4064_v13  ;;  %v5326_v28 = vpop.f32.mrb[53].mxu1 }
0x12e7   : > { %v4067_v51 = vpop.f32.mrb[54].mxu1 }
0x12e8   : > { %4071 = vmax.xlane.f32.xlu1 %v4065_v24  ;;  %v5327_v21 = vpop.f32.mrb[55].mxu1  ;;  %v4068_v36 = vadd.f32 %v4979_v15, %v4067_v51 }
0x12ec   : > { %4073 = vmax.xlane.f32.xlu1 %v4068_v36 }
0x12fd   : > { %4312 = vperm.xlu1 %5593, %v6005_v12  }
0x1301   : > { %4324 = vperm.xlu1 %5593, %v4091_v59  }
0x1325   : > { %v8673_v11 = vpop.f32.mrb[56].mxu1 }
0x1326   : > { %v5366_v48 = vpop.f32.mrb[57].mxu1 }
0x1327   : > { %v4307_v26 = vpop.f32.mrb[58].mxu1 }
0x1328   : > { %v5367_v46 = vpop.f32.mrb[59].mxu1 }
0x1375   : > { %v4072_v53 = vpop.xlane.xlu1 %4071 }
0x1376   : > { %v4075_v14 = vsub.f32 %v4065_v24, %v4072_v53 }
0x1378   : > { %v4077_v8 = vmul.f32 1.442695, %v4075_v14 }
0x1379   : > { %v4074_v9 = vpop.xlane.xlu1 %4073 }
0x137a   : > { %6006 = vpow2.f32 %v4077_v8  ;;  %v4076_v0 = vsub.f32 %v4068_v36, %v4074_v9 }
0x137c   : > { %v4079_v37 = vmul.f32 1.442695, %v4076_v0 }
0x137e   : > { %6008 = vpow2.f32 %v4079_v37 }
0x1384   : > { %v8675_v55 = vpop.eup %6006 }
0x1385   : > { %4081 = vadd.xlane.f32.xlu1 %v8675_v55 }
0x1388   : > { %v8678_v17 = vpop.eup %6008 }
0x1389   : > { %4083 = vadd.xlane.f32.xlu1 %v8678_v17 }
0x139a   : > { %4329 = vperm.xlu1 %5593, %v4092_v30  }
0x139b   : > { %6564 = shalt.err (!%p6561_p3)
}
0x139c   : > { %s6565_s9 = scalar_lea.hbm %s8689_s3, 256  ;;  %s6569_s26 = scalar_lea.hbm %s9114_s25, 512 }
0x139d   : > { %p6566_p5 = scmp.ne.s32.totalorder %s8689_s3, %s6565_s9  ;;  %p6570_p6 = scmp.lt.u32.totalorder %s8689_s3, %s9114_s25 }
0x139e   : > { %p6571_p11 = scmp.lt.u32.totalorder %s6569_s26, %s6565_s9  ;;  %p6573_p1 = scmp.lt.u32.totalorder %s6565_s9, %s8689_s3 }
0x139f   : > { %p6567_p9 = pnand %p6566_p5, %p9115_p8 }
0x13a0   : > { %p6572_p12 = por %p6571_p11, %p6570_p6 }
0x13a1   : > { %p6568_p0 = pneg %p6567_p9 }
0x13a2   : > { %p6574_p13 = por %p6573_p1, %p6572_p12 }
0x13a4   : > { %p6575_p2 = pnand %p6574_p13, %p6568_p0 }
0x13a6   : > { %6578 = shalt.err (!%p6575_p2)
}
0x13a7   : > { %s8973_s7 = smov 128   ;;  %s6773_s2 = smov 8  }
0x13a8   : > { %5435 = dma.vmem_to_hbm [thread:$0]  (%p9115_p8), %s8691_s14, 256, %s8689_s3, %s4344_s0, %s8973_s7, %s8973_s7, %s6773_s2  }
0x13a9   : > { %s5076_s28 = sshll.u32 %s9048_s21, 5  ;;  %s9116_s9 = sld [smem:[#allocation87_spill]] }
0x13aa   : > { %s4399_s29 = sshll.u32 %s8449_s17, 4  ;;  %s6774_s18 = smov [#allocation33]   ;;  %s8729_s29 = int_to_ptr.vmem [resolvable:$true] %s4399_s29 }
0x13ab   : > { %s6579_s26 = scalar_lea.vmem %s8729_s29, 32  ;;  %s6583_s14 = sshll.u32 %s6774_s18, 4  ;;  %s6584_s14 = int_to_ptr.vmem [resolvable:$false] %s6583_s14 }
0x13ac   : > { %p6580_p7 = scmp.ne.s32.totalorder %s8729_s29, %s6579_s26  ;;  %s6585_s3 = scalar_lea.vmem %s6584_s14, 64 }
0x13ad   : > { %p6586_p3 = scmp.lt.s32.totalorder %s8729_s29, %s6584_s14  ;;  %p6587_p5 = scmp.lt.s32.totalorder %s6585_s3, %s6579_s26 }
0x13ae   : > { %p6581_p4 = pnand %p6580_p7, %p9115_p8 }
0x13af   : > { %s8726_s30 = scalar_lea.hbm %s9116_s9, %s5076_s28  ;;  %p6588_p9 = por %p6587_p5, %p6586_p3 }
0x13b0   : > { %p6582_p10 = pneg %p6581_p4 }
0x13b2   : > { %p6589_p0 = pnand %p6588_p9, %p6582_p10 }
0x13b4   : > { %6592 = shalt.err (!%p6589_p0)
}
0x13b5   : > { %s6593_s17 = scalar_lea.hbm %s8726_s30, 32  ;;  %s6597_s27 = scalar_lea.hbm %s9116_s9, 64 }
0x13b6   : > { %p6594_p6 = scmp.ne.s32.totalorder %s8726_s30, %s6593_s17  ;;  %p6598_p1 = scmp.lt.u32.totalorder %s8726_s30, %s9116_s9 }
0x13b7   : > { %p6599_p13 = scmp.lt.u32.totalorder %s6597_s27, %s6593_s17  ;;  %p6601_p7 = scmp.lt.u32.totalorder %s6593_s17, %s8726_s30 }
0x13b8   : > { %p6595_p11 = pnand %p6594_p6, %p9115_p8 }
0x13b9   : > { %p6600_p2 = por %p6599_p13, %p6598_p1 }
0x13ba   : > { %p6596_p12 = pneg %p6595_p11 }
0x13bb   : > { %p6602_p4 = por %p6601_p7, %p6600_p2 }
0x13bd   : > { %p6603_p10 = pnand %p6602_p4, %p6596_p12 }
0x13bf   : > { %6606 = shalt.err (!%p6603_p10)
}
0x13c0   : > { %s6775_s26 = smov 16   ;;  %s6776_s3 = smov 1  }
0x13c1   : > { %5436 = dma.vmem_to_hbm [thread:$0]  (%p9115_p8), %s8729_s29, 32, %s8726_s30, %s4344_s0, %s6775_s26, %s6775_s26, %s6776_s3  }
0x13c2   : > { %s9117_s8 = sld [smem:[#allocation88_spill]]  ;;  %s4415_s18 = sshll.u32 %s8437_s20, 4  ;;  %s8765_s18 = int_to_ptr.vmem [resolvable:$true] %s4415_s18 }
0x13c3   : > { %s4354_s14 = scalar_lea.sflag [#allocation35], %s7431_s11  ;;  %s6607_s7 = scalar_lea.vmem %s8765_s18, 32 }
0x13c4   : > { %p6608_p3 = scmp.ne.s32.totalorder %s8765_s18, %s6607_s7  ;;  %s6777_s22 = smov [#allocation34]  }
0x13c5   : > { %s6611_s0 = sshll.u32 %s6777_s22, 4  ;;  %s6612_s0 = int_to_ptr.vmem [resolvable:$false] %s6611_s0 }
0x13c6   : > { %p6609_p5 = pnand %p6608_p3, %p9115_p8  ;;  %s6613_s30 = scalar_lea.vmem %s6612_s0, 64 }
0x13c7   : > { %p6614_p0 = scmp.lt.s32.totalorder %s8765_s18, %s6612_s0  ;;  %p6615_p6 = scmp.lt.s32.totalorder %s6613_s30, %s6607_s7 }
0x13c8   : > { %s8762_s27 = scalar_lea.hbm %s9117_s8, %s5076_s28  ;;  %p6610_p9 = pneg %p6609_p5 }
0x13c9   : > { %p6616_p11 = por %p6615_p6, %p6614_p0 }
0x13cb   : > { %p6617_p12 = pnand %p6616_p11, %p6610_p9 }
0x13cd   : > { %6620 = shalt.err (!%p6617_p12)
}
0x13ce   : > { %s6621_s20 = scalar_lea.hbm %s8762_s27, 32  ;;  %s6625_s17 = scalar_lea.hbm %s9117_s8, 64 }
0x13cf   : > { %p6622_p1 = scmp.ne.s32.totalorder %s8762_s27, %s6621_s20  ;;  %p6626_p7 = scmp.lt.u32.totalorder %s8762_s27, %s9117_s8 }
0x13d0   : > { %p6627_p4 = scmp.lt.u32.totalorder %s6625_s17, %s6621_s20  ;;  %p6629_p3 = scmp.lt.u32.totalorder %s6621_s20, %s8762_s27 }
0x13d1   : > { %p6623_p13 = pnand %p6622_p1, %p9115_p8 }
0x13d2   : > { %p6628_p10 = por %p6627_p4, %p6626_p7 }
0x13d3   : > { %p6624_p2 = pneg %p6623_p13 }
0x13d4   : > { %p6630_p5 = por %p6629_p3, %p6628_p10 }
0x13d6   : > { %p6631_p9 = pnand %p6630_p5, %p6624_p2 }
0x13d8   : > { %6634 = shalt.err (!%p6631_p9)
}
0x13d9   : > { %5437 = dma.vmem_to_hbm [thread:$0]  (%p9115_p8), %s8765_s18, 32, %s8762_s27, %s4354_s14, %s6775_s26, %s6775_s26, %s6776_s3   ;;  %v4313_v18 = vpop.permute.xlu1 %4312  ;;  %v4318_v44 = vpop.permute.xlu0 %4317 }
0x13da   : > { %s975_s7 = scalar_lea.vmem [#allocation30], %s7465_s13  ;;  %s9118_s18 = sld [smem:[#allocation85_spill]] }
0x13db   : > { %s4367_s26 = sshll.u32 %s975_s7, 4  ;;  %s4339_s13 = scalar_lea.sflag [#allocation5], %s7431_s11  ;;  %s8799_s26 = int_to_ptr.vmem [resolvable:$true] %s4367_s26 }
0x13dc   : > { %s6635_s0 = scalar_lea.vmem %s8799_s26, 256  ;;  %s6778_s30 = smov [#allocation30]  }
0x13dd   : > { %v4325_v19 = vpop.permute.xlu1 %4324  ;;  %p6636_p0 = scmp.ne.s32.totalorder %s8799_s26, %s6635_s0  ;;  %s6639_s20 = sshll.u32 %s6778_s30, 4  ;;  %s6640_s20 = int_to_ptr.vmem [resolvable:$false] %s6639_s20 }
0x13de   : > { %v4332_v31 = vmul.f32 %v4325_v19, %v8664_v45  ;;  %s6641_s28 = scalar_lea.vmem %s6640_s20, 512  ;;  %p6642_p12 = scmp.lt.s32.totalorder %s8799_s26, %s6640_s20 }
0x13df   : > { %p6637_p6 = pnand %p6636_p0, %p9115_p8  ;;  %p6643_p1 = scmp.lt.s32.totalorder %s6641_s28, %s6635_s0 }
0x13e0   : > { %s8806_s14 = scalar_lea.hbm %s9118_s18, %s5074_s23 }
0x13e1   : > { %p6638_p11 = pneg %p6637_p6  ;;  %p6644_p13 = por %p6643_p1, %p6642_p12 }
0x13e3   : > { %p6645_p2 = pnand %p6644_p13, %p6638_p11 }
0x1412   : > { %v4082_v5 = vpop.xlane.xlu1 %4081 }
0x1413   : > { %6010 = vrcp.f32 %v4082_v5 }
0x1416   : > { %v4084_v63 = vpop.xlane.xlu1 %4083 }
0x1417   : > { %6012 = vrcp.f32 %v4084_v63 }
0x141a   : > { %v4330_v4 = vpop.permute.xlu1 %4329 }
0x141b   : > { %v4333_v32 = vmul.f32 %v4330_v4, %v8673_v11 }
0x141d   : > { %v6011_v56 = vpop.eup %6010 }
0x141e   : > { %v4087_v60 = vmul.f32 %v6011_v56, %v8675_v55 }
0x1420   : > { %v4320_v2 = vmul.f32 %v4313_v18, %v4087_v60 }
0x1421   : > { %v6013_v25 = vpop.eup %6012 }
0x1422   : > { %v4334_v3 = vadd.f32 %v4332_v31, %v4320_v2  ;;  %v4088_v1 = vmul.f32 %v6013_v25, %v8678_v17 }
0x1424   : > { %v4321_v57 = vmul.f32 %v4318_v44, %v4088_v1  ;;  %4336 = vst [vmem:[%s975_s7] sm:$0xff] %v4334_v3 }
0x1426   : > { %v4335_v39 = vadd.f32 %v4333_v32, %v4321_v57 }
0x1428   : > { %4337 = vst [vmem:[%s975_s7 + $0x8] sm:$0xff] %v4335_v39 }
0x1429   : > { %6648 = shalt.err (!%p6645_p2)
}
0x142a   : > { %s6649_s21 = scalar_lea.hbm %s8806_s14, 256  ;;  %s6653_s17 = scalar_lea.hbm %s9118_s18, 512 }
0x142b   : > { %p6650_p7 = scmp.ne.s32.totalorder %s8806_s14, %s6649_s21  ;;  %p6654_p3 = scmp.lt.u32.totalorder %s8806_s14, %s9118_s18 }
0x142c   : > { %p6655_p5 = scmp.lt.u32.totalorder %s6653_s17, %s6649_s21  ;;  %p6657_p0 = scmp.lt.u32.totalorder %s6649_s21, %s8806_s14 }
0x142d   : > { %p6651_p4 = pnand %p6650_p7, %p9115_p8 }
0x142e   : > { %p6656_p9 = por %p6655_p5, %p6654_p3 }
0x142f   : > { %p6652_p10 = pneg %p6651_p4 }
0x1430   : > { %p6658_p6 = por %p6657_p0, %p6656_p9 }
0x1432   : > { %p6659_p11 = pnand %p6658_p6, %p6652_p10 }
0x1434   : > { %6662 = shalt.err (!%p6659_p11)
}
0x1435   : > { %s9119_s7 = smov 128  }
0x1436   : > { %5434 = dma.vmem_to_hbm [thread:$0]  (%p9115_p8), %s8799_s26, 256, %s8806_s14, %s4339_s13, %s9119_s7, %s9119_s7, %s6773_s2  }
0x1437 PF: > { %s9120_s3 = sld [smem:[#allocation48_spill]]  ;;  %s9121_s27 = sld [smem:[#allocation57_spill]] }
0x1438   : > { %p9123_p1 = scmp.ge.s32.totalorder %s6741_s24, 2 }
0x143d   : > { %s4430_s0 = sand.u32 1, %s9120_s3   ;;  %p9122_p12 = scmp.ne.s32.totalorder %s9121_s27, 0 }
0x143e   : > { %s4431_s30 = scalar_lea.sflag [#allocation5], %s4430_s0 }
0x143f   : > { %p5496_p13 = pnand %p9123_p1, %p9122_p12 }
0x1441   : > { %6716 = dma.done.wait (!%p5496_p13), %s4431_s30, 256  }
0x1442   : > { %6718 = vsyncadd (!%p5496_p13), %s4431_s30, 4294967040  ;;  %s9124_s1 = sadd.s32 4294967294, %s6741_s24  }
0x1443   : > { %s4439_s20 = sand.u32 1, %s9124_s1  }
0x1444   : > { %s4440_s28 = scalar_lea.sflag [#allocation32], %s4439_s20 }
0x1445   : > { %6720 = dma.done.wait (!%p5496_p13), %s4440_s28, 288  }
0x1446   : > { %6722 = vsyncadd (!%p5496_p13), %s4440_s28, 4294967008  ;;  %s4458_s11 = scalar_lea.sflag [#allocation35], %s4430_s0 }
0x1447   : > { %6724 = dma.done.wait (!%p5496_p13), %s4458_s11, 32  }
0x1448   : > { %6726 = vsyncadd (!%p5496_p13), %s4458_s11, 4294967264  ;;  %s9125_s24 = sld [smem:[#allocation53_spill]]  ;;  %s9126_s1 = sld [smem:[#allocation49_spill]] }
0x1449   : > { %s9127_s22 = sld [smem:[#allocation50_spill]]  ;;  %s9128_s23 = sld [smem:[#allocation54_spill]] }
0x144e   : > { %p52_p8 = scmp.ge.s32.totalorder %s9125_s24, 4  }
0x1450   :  { %54 = sbr.rel (!%p52_p8) target bundleno = 39 (0x27), region = 278 }
0x1457   :  { %4463 = vsyncpa [#allocation4], 1 }
0x1458   :  { %4465 = vsyncpa [#allocation4 + $0x1], 1 }
0x1459   :  { %4466 = vsyncpa [#allocation7], 1 }
0x145a   :  { %4468 = vsyncpa [#allocation7 + $0x1], 1 }
0x145b   :  { %4469 = vsyncpa [#allocation10], 1 }
0x145c   :  { %4471 = vsyncpa [#allocation10 + $0x1], 1 }
0x145d   :  { %4472 = vsyncpa [#allocation13], 1 }
0x145e   :  { %4473 = vsyncpa [#allocation16], 1 }
0x145f   :  { %4474 = vsyncpa [#allocation19], 1 }
0x1460   :  { %4475 = vsyncpa [#allocation22], 1 }
0x1461   :  { %4476 = vsyncpa [#allocation25], 1 }
0x1462   :  { %4477 = vsyncpa [#allocation28], 1 }
0x1463   :  { %4478 = vsyncpa [#allocation5], 1 }
0x1464   :  { %4480 = vsyncpa [#allocation5 + $0x1], 1 }
0x1465   :  { %4481 = vsyncpa [#allocation32], 1 }
0x1466   :  { %4483 = vsyncpa [#allocation32 + $0x1], 1 }
0x1467   :  { %4484 = vsyncpa [#allocation35], 1 }
0x1468   :  { %4486 = vsyncpa [#allocation35 + $0x1], 1 }

</bundles_post_ra>
